<compile_context>
chip_gen: v5e
topology: v5e:2x2
jax: 0.10.0
libtpu: 0.0.40
codegen_flags: <defaults>
</compile_context>

<pallas_src>
import functools
import math

import jax
import jax.numpy as jnp
from jax.experimental import pallas as pl
from jax.experimental.pallas import tpu as pltpu


# ----------------------------------------------------------------------------
# Fused whole-stack Pallas kernel (all layers, all batches, one call)
# ----------------------------------------------------------------------------

def _stack_kernel(x_ref, mask_ref, cos_ref, sin_ref,
                  rms1_ref, wattn_ref, wcproj_ref, rms2_ref,
                  wfc_ref, wproj_ref, o_ref, x_acc,
                  *, n_head, d_head, eps, scale):
    """One transformer layer per grid step; residual carried in VMEM scratch.

    x_ref       : (B*T, C)        fp32, initial residual (read once, step 0)
    mask_ref    : (H*B*T, H*B*T)  fp32 additive mask (block-diag head/batch,
                                  causal inside each block)
    cos/sin_ref : (B*T, C)        fp32 RoPE tables (tiled over heads & batch)
    rms1/2_ref  : (1, 1, C)       fp32
    wattn_ref   : (1, C, 5C)      bf16 packed [Wq, Wq@R, Wk, Wk@R, Wv]
    wcproj_ref  : (1, C, C)       bf16
    wfc_ref     : (1, C, 2*Hd)    bf16 packed [Wfc1 | Wfc2]
    wproj_ref   : (1, Hd, C)      bf16
    o_ref       : (B*T, C)        fp32 output (constant index -> one writeback)
    x_acc       : (B*T, C)        fp32 VMEM scratch residual accumulator
    """
    layer = pl.program_id(0)

    @pl.when(layer == 0)
    def _():
        x_acc[...] = x_ref[...]

    BT, C = x_acc.shape
    x = x_acc[...]                                           # (BT, C) fp32

    # ---- RMSNorm 1 (fp32) ----
    h = rms1_ref[0] * (
        x * jax.lax.rsqrt(jnp.mean(x * x, axis=-1, keepdims=True) + eps))

    # ---- Packed projection [q, q_rot, k, k_rot, v]: ONE lane-dense MXU call
    qkvr = jnp.dot(h.astype(jnp.bfloat16), wattn_ref[0],
                   preferred_element_type=jnp.float32)       # (BT, 5C)

    cos = cos_ref[...]
    sin = sin_ref[...]
    # RoPE is purely elementwise: rotate_half was folded into the weights.
    q = qkvr[:, 0 * C:1 * C] * cos + qkvr[:, 1 * C:2 * C] * sin
    k = qkvr[:, 2 * C:3 * C] * cos + qkvr[:, 3 * C:4 * C] * sin
    v = qkvr[:, 4 * C:5 * C]

    # ---- Pack heads onto the row (sublane) axis: (n_head*BT, d_head) ----
    def pack_heads(t):
        return jnp.concatenate(
            [t[:, hh * d_head:(hh + 1) * d_head] for hh in range(n_head)],
            axis=0)

    qp = pack_heads(q).astype(jnp.bfloat16)
    kp = pack_heads(k).astype(jnp.bfloat16)
    vp = pack_heads(v).astype(jnp.bfloat16)

    # ---- Attention: two full-width matmuls + masked softmax ----
    s = jax.lax.dot_general(qp, kp, (((1,), (1,)), ((), ())),
                            preferred_element_type=jnp.float32) * scale
    s = s + mask_ref[...]                    # -1e30 outside (same head, same
    s = s - jnp.max(s, axis=-1, keepdims=True)        # batch, causal) blocks
    p = jnp.exp(s)
    p = p * pl.reciprocal(jnp.sum(p, axis=-1, keepdims=True), approx=True)
    yp = jnp.dot(p.astype(jnp.bfloat16), vp,
                 preferred_element_type=jnp.float32)         # (H*BT, d_head)

    # ---- Output projection: head-unpack folded into c_proj (K=32 accum) ----
    wc = wcproj_ref[0]
    attn = None
    for hh in range(n_head):
        part = jnp.dot(yp[hh * BT:(hh + 1) * BT].astype(jnp.bfloat16),
                       wc[hh * d_head:(hh + 1) * d_head],
                       preferred_element_type=jnp.float32)
        attn = part if attn is None else attn + part
    x = x + attn

    # ---- RMSNorm 2 + SwiGLU MLP (packed fc1|fc2) + residual ----
    h2 = rms2_ref[0] * (
        x * jax.lax.rsqrt(jnp.mean(x * x, axis=-1, keepdims=True) + eps))
    g = jnp.dot(h2.astype(jnp.bfloat16), wfc_ref[0],
                preferred_element_type=jnp.float32)          # (BT, 2*Hd)
    Hd = g.shape[1] // 2
    g1 = g[:, :Hd]
    g2 = g[:, Hd:]
    hidden = (g1 * jax.nn.sigmoid(g1)) * g2                  # SiLU(g1)*g2 fp32
    x = x + jnp.dot(hidden.astype(jnp.bfloat16), wproj_ref[0],
                    preferred_element_type=jnp.float32)

    x_acc[...] = x
    o_ref[...] = x     # constant out index -> single HBM writeback at the end


def transformer_stack(x_bt, stacked, mask, cos_bt, sin_bt, *, n_head, d_head):
    """x_bt: (B*T, C) fp32 -> (B*T, C) fp32.  ONE pallas_call for all layers."""
    BT, C = x_bt.shape
    L = stacked["rms1"].shape[0]
    Hd2 = stacked["wfc"].shape[2]
    Hd = stacked["wproj"].shape[1]
    M = n_head * BT

    kernel = functools.partial(_stack_kernel, n_head=n_head, d_head=d_head,
                               eps=1e-5, scale=1.0 / math.sqrt(d_head))

    return pl.pallas_call(
        kernel,
        grid=(L,),
        in_specs=[
            pl.BlockSpec((BT, C), lambda l: (0, 0)),            # x0 (once)
            pl.BlockSpec((M, M), lambda l: (0, 0)),             # additive mask
            pl.BlockSpec((BT, C), lambda l: (0, 0)),            # cos (once)
            pl.BlockSpec((BT, C), lambda l: (0, 0)),            # sin (once)
            pl.BlockSpec((1, 1, C), lambda l: (l, 0, 0)),       # rms1[l]
            pl.BlockSpec((1, C, 5 * C), lambda l: (l, 0, 0)),   # packed qkv+rot
            pl.BlockSpec((1, C, C), lambda l: (l, 0, 0)),       # c_proj[l]
            pl.BlockSpec((1, 1, C), lambda l: (l, 0, 0)),       # rms2[l]
            pl.BlockSpec((1, C, Hd2), lambda l: (l, 0, 0)),     # packed fc1|fc2
            pl.BlockSpec((1, Hd, C), lambda l: (l, 0, 0)),      # mlp proj[l]
        ],
        out_specs=pl.BlockSpec((BT, C), lambda l: (0, 0)),
        out_shape=jax.ShapeDtypeStruct((BT, C), jnp.float32),
        scratch_shapes=[pltpu.VMEM((BT, C), jnp.float32)],
        compiler_params=pltpu.CompilerParams(
            dimension_semantics=("arbitrary",)),
    )(x_bt, mask, cos_bt, sin_bt, stacked["rms1"], stacked["wattn"],
      stacked["wcproj"], stacked["rms2"], stacked["wfc"], stacked["wproj"])


# ----------------------------------------------------------------------------
# Glue: RoPE tables, mask, scaler, lagged features, weight packing, assembly
# ----------------------------------------------------------------------------

def rotary_cos_sin(dim, seq_len, base=10000.0):
    inv_freq = 1.0 / (base ** (jnp.arange(0, dim, 2, dtype=jnp.float32) / dim))
    t = jnp.arange(seq_len, dtype=jnp.float32)
    freqs = jnp.outer(t, inv_freq)
    emb = jnp.concatenate([freqs, freqs], axis=-1)
    return jnp.cos(emb), jnp.sin(emb)


def build_attention_mask(B, T, n_head):
    """(H*B*T, H*B*T) additive mask: 0 inside same (head,batch) causal block."""
    M = n_head * B * T
    idx = jnp.arange(M)
    h = idx // (B * T)
    b = (idx // T) % B
    t = idx % T
    same = (h[:, None] == h[None, :]) & (b[:, None] == b[None, :])
    causal = t[None, :] <= t[:, None]
    return jnp.where(same & causal, 0.0, -1e30).astype(jnp.float32)


def rmsnorm_ref(x, w, eps=1e-5):
    return w * (x * jax.lax.rsqrt(jnp.mean(x * x, axis=-1, keepdims=True) + eps))


def mean_scaler(data, weights, minimum_scale=1e-10):
    """gluonts MeanScaler(dim=1, keepdim=True)."""
    ts_sum = jnp.sum(jnp.abs(data * weights), axis=1, keepdims=True)
    num_observed = jnp.sum(weights, axis=1, keepdims=True)
    scale = ts_sum / jnp.maximum(num_observed, 1.0)
    batch_sum = jnp.sum(ts_sum, axis=0)
    batch_obs = jnp.maximum(jnp.sum(num_observed, axis=0), 1.0)
    default_scale = jnp.squeeze(batch_sum / batch_obs)
    scale = jnp.where(num_observed > 0, scale, default_scale)
    scale = jnp.maximum(scale, minimum_scale)
    loc = jnp.zeros_like(scale)
    return data / scale, loc, scale


def lagged_sequence_values(lags_seq, prior_sequence, sequence):
    full = jnp.concatenate([prior_sequence, sequence], axis=-1)
    T = sequence.shape[-1]
    L = full.shape[-1]
    vals = []
    for lag in lags_seq:
        end = L - lag
        vals.append(full[..., end - T:end])
    return jnp.stack(vals, axis=-1)  # (B, T, len(lags_seq))


def prepare_input(lags_seq, past_target, past_observed_values,
                  past_time_feat, future_time_feat, future_target):
    max_lag = max(lags_seq)
    scaled_past, loc, scale = mean_scaler(past_target, past_observed_values)
    if future_target is not None:
        inp = jnp.concatenate(
            [scaled_past[..., max_lag:], (future_target[..., :-1] - loc) / scale],
            axis=-1)
    else:
        inp = scaled_past[..., max_lag:]
    time_feat = jnp.concatenate(
        [past_time_feat[..., max_lag:, :], future_time_feat[..., :-1, :]], axis=1)
    prior_input = (past_target[..., :max_lag] - loc) / scale
    lags = lagged_sequence_values(lags_seq, prior_input, inp)
    static_feat = jnp.concatenate(
        [jnp.log1p(jnp.abs(loc)), jnp.log(scale)], axis=-1)  # (B, 2)
    expanded_static = jnp.broadcast_to(
        static_feat[:, None, :],
        (lags.shape[0], lags.shape[1], static_feat.shape[-1]))
    transformer_input = jnp.concatenate([lags, expanded_static, time_feat], axis=-1)
    return transformer_input, loc, scale


def find_multiple(n, k):
    return n if n % k == 0 else n + k - (n % k)


def _rotate_half_matrix(d):
    """R such that rotate_half(t) == t @ R  (R = [[0, I], [-I, 0]])."""
    half = d // 2
    z = jnp.zeros((half, half), jnp.float32)
    eye = jnp.eye(half, dtype=jnp.float32)
    return jnp.concatenate(
        [jnp.concatenate([z, eye], axis=1),
         jnp.concatenate([-eye, z], axis=1)], axis=0)


def init_params(key, feature_size, n_embd, n_layer, n_hidden, num_distr_args=3):
    """PyTorch-layout (out_features, in_features) weights."""
    std = 0.02 / math.sqrt(2 * n_layer)
    keys = iter(jax.random.split(key, 4 + 6 * n_layer))

    def nrm(shape):
        return std * jax.random.normal(next(keys), shape, jnp.float32)

    params = {
        "wte_w": nrm((n_embd, feature_size)),
        "wte_b": nrm((n_embd,)),
        "ln_f": jnp.ones((n_embd,), jnp.float32),
        "proj_w": nrm((num_distr_args, n_embd)),
        "proj_b": nrm((num_distr_args,)),
        "layers": [],
    }
    for _ in range(n_layer):
        params["layers"].append({
            "rms1": jnp.ones((n_embd,), jnp.float32),
            "q_w": nrm((n_embd, n_embd)),
            "kv_w": nrm((2 * n_embd, n_embd)),
            "c_proj_w": nrm((n_embd, n_embd)),
            "rms2": jnp.ones((n_embd,), jnp.float32),
            "fc1_w": nrm((n_hidden, n_embd)),
            "fc2_w": nrm((n_hidden, n_embd)),
            "mlp_proj_w": nrm((n_embd, n_hidden)),
        })
    return params


def pack_params(params, n_head, d_head):
    """Pre-transpose weights to (K, N), pack q/kv (+ folded RoPE rotation) into
    one lane-dense (C, 5C) matrix, pack fc1|fc2 into (C, 2Hd), cast MXU
    operands to bfloat16 once, and stack everything over a leading layer axis."""
    C = n_head * d_head
    R = jnp.kron(jnp.eye(n_head, dtype=jnp.float32), _rotate_half_matrix(d_head))
    rms1, rms2, wattn, wcproj, wfc, wproj = [], [], [], [], [], []
    for layer in params["layers"]:
        q_t = layer["q_w"].T                 # (C, C)
        k_t = layer["kv_w"][:C].T            # (C, C)
        v_t = layer["kv_w"][C:].T            # (C, C)
        wattn.append(jnp.concatenate(
            [q_t, q_t @ R, k_t, k_t @ R, v_t], axis=1).astype(jnp.bfloat16))
        wcproj.append(layer["c_proj_w"].T.astype(jnp.bfloat16))
        wfc.append(jnp.concatenate(
            [layer["fc1_w"].T, layer["fc2_w"].T], axis=1).astype(jnp.bfloat16))
        wproj.append(layer["mlp_proj_w"].T.astype(jnp.bfloat16))
        rms1.append(layer["rms1"].reshape(1, C))
        rms2.append(layer["rms2"].reshape(1, C))
    stacked = {
        "rms1": jnp.stack(rms1), "rms2": jnp.stack(rms2),
        "wattn": jnp.stack(wattn), "wcproj": jnp.stack(wcproj),
        "wfc": jnp.stack(wfc), "wproj": jnp.stack(wproj),
    }
    return {
        "wte_w": params["wte_w"], "wte_b": params["wte_b"],
        "ln_f": params["ln_f"],
        "proj_w": params["proj_w"], "proj_b": params["proj_b"],
        "stacked": stacked,
    }


def _distr_head(raw):
    # TODO(synk): exact head depends on the unspecified QuantizedDistributionOutput;
    # StudentT-style (df, loc, scale) projection assumed.
    df = 2.0 + jax.nn.softplus(raw[..., 0])
    d_loc = raw[..., 1]
    d_scale = jax.nn.softplus(raw[..., 2])
    return df, d_loc, d_scale


def model_forward(packed, lags_seq, n_head, d_head,
                  past_target, past_observed_values,
                  past_time_feat, future_time_feat, future_target):
    transformer_input, loc, scale = prepare_input(
        lags_seq, past_target, past_observed_values,
        past_time_feat, future_time_feat, future_target)

    # Tiny K=feature_size wte, 3-wide param_proj and final RMSNorm stay in XLA.
    x = transformer_input @ packed["wte_w"].T + packed["wte_b"]
    B, T, C = x.shape

    cos, sin = rotary_cos_sin(d_head, T)
    cos_bt = jnp.tile(jnp.tile(cos, (1, n_head)), (B, 1))    # (B*T, C)
    sin_bt = jnp.tile(jnp.tile(sin, (1, n_head)), (B, 1))    # (B*T, C)
    mask = build_attention_mask(B, T, n_head)                # (H*B*T, H*B*T)

    x_bt = x.reshape(B * T, C)
    x_bt = transformer_stack(x_bt, packed["stacked"], mask, cos_bt, sin_bt,
                             n_head=n_head, d_head=d_head)
    x = x_bt.reshape(B, T, C)

    x = rmsnorm_ref(x, packed["ln_f"])
    raw = x @ packed["proj_w"].T + packed["proj_b"]          # (B, T, 3)
    return _distr_head(raw), loc, scale


# ----------------------------------------------------------------------------
# Pure-JAX fp32 reference (validates bf16/packed-weight Pallas path)
# ----------------------------------------------------------------------------

def reference_forward(params, lags_seq, n_head, d_head,
                      past_target, past_observed_values,
                      past_time_feat, future_time_feat, future_target):
    transformer_input, loc, scale = prepare_input(
        lags_seq, past_target, past_observed_values,
        past_time_feat, future_time_feat, future_target)
    x = transformer_input @ params["wte_w"].T + params["wte_b"]
    B, T, C = x.shape
    cos, sin = rotary_cos_sin(d_head, T)

    def rope(t):  # t: (B, H, T, D)
        half = d_head // 2
        rot = jnp.concatenate([-t[..., half:], t[..., :half]], axis=-1)
        return t * cos + rot * sin

    row = jax.lax.broadcasted_iota(jnp.int32, (T, T), 0)
    col = jax.lax.broadcasted_iota(jnp.int32, (T, T), 1)
    causal = col <= row

    for layer in params["layers"]:
        h = rmsnorm_ref(x, layer["rms1"])
        q = h @ layer["q_w"].T
        kv = h @ layer["kv_w"].T
        k, v = kv[..., :C], kv[..., C:]

        def heads(t):
            return t.reshape(B, T, n_head, d_head).transpose(0, 2, 1, 3)

        q, k, v = rope(heads(q)), rope(heads(k)), heads(v)
        s = jnp.einsum("bhqd,bhkd->bhqk", q, k) / math.sqrt(d_head)
        s = jnp.where(causal, s, -jnp.inf)
        p = jax.nn.softmax(s, axis=-1)
        y = jnp.einsum("bhqk,bhkd->bhqd", p, v)
        y = y.transpose(0, 2, 1, 3).reshape(B, T, C)
        x = x + y @ layer["c_proj_w"].T

        h2 = rmsnorm_ref(x, layer["rms2"])
        g1 = h2 @ layer["fc1_w"].T
        g2 = h2 @ layer["fc2_w"].T
        x = x + (jax.nn.silu(g1) * g2) @ layer["mlp_proj_w"].T

    x = rmsnorm_ref(x, params["ln_f"])
    raw = x @ params["proj_w"].T + params["proj_b"]
    return _distr_head(raw), loc, scale


# ----------------------------------------------------------------------------
# Main
# ----------------------------------------------------------------------------

if __name__ == "__main__":
    # Small (but TPU-lane-friendly) synthetic config: C = 128, T = 32, B = 2.
    context_length = 29
    prediction_length = 4
    lags_seq = [1, 2, 4]
    max_lag = max(lags_seq)
    input_size = 1
    n_layer = 2
    n_head = 4
    n_embd_per_head = 32
    n_embd = n_head * n_embd_per_head                        # 128
    time_feat_dim = 6
    feature_size = input_size * len(lags_seq) + 2 * input_size + time_feat_dim  # 11
    n_hidden = find_multiple(int(2 * (4 * n_embd) / 3), 256)                    # 512

    key = jax.random.PRNGKey(0)
    k_params, k_pt, k_obs, k_ptf, k_ftf, k_ft = jax.random.split(key, 6)

    B = 2
    past_len = context_length + max_lag                      # 33
    past_target = jax.random.normal(k_pt, (B, past_len), jnp.float32) + 3.0
    past_observed_values = (jax.random.uniform(k_obs, (B, past_len)) > 0.1
                            ).astype(jnp.float32)
    past_time_feat = jax.random.normal(k_ptf, (B, past_len, time_feat_dim),
                                       jnp.float32)
    future_time_feat = jax.random.normal(k_ftf, (B, prediction_length,
                                                 time_feat_dim), jnp.float32)
    future_target = jax.random.normal(k_ft, (B, prediction_length),
                                      jnp.float32) + 3.0

    params = init_params(k_params, feature_size, n_embd, n_layer, n_hidden)
    packed = pack_params(params, n_head, n_embd_per_head)

    fwd = jax.jit(functools.partial(model_forward, packed, lags_seq,
                                    n_head, n_embd_per_head))
    ref_fwd = jax.jit(functools.partial(reference_forward, params, lags_seq,
                                        n_head, n_embd_per_head))

    (distr_args, loc, scale) = fwd(past_target, past_observed_values,
                                   past_time_feat, future_time_feat,
                                   future_target)
    jax.block_until_ready(distr_args)

    (ref_args, ref_loc, ref_scale) = ref_fwd(past_target, past_observed_values,
                                             past_time_feat, future_time_feat,
                                             future_target)

    T_expected = context_length + prediction_length - 1      # 32
    assert distr_args[0].shape == (B, T_expected)
    assert loc.shape == (B, 1) and scale.shape == (B, 1)
    for a in distr_args:
        assert bool(jnp.all(jnp.isfinite(a)))
    # bf16-MXU fused Pallas path vs fp32 pure-JAX reference.
    for a, r in zip(distr_args, ref_args):
        assert bool(jnp.allclose(a, r, atol=5e-2, rtol=5e-2)), \
            float(jnp.max(jnp.abs(a - r)))
    assert bool(jnp.allclose(loc, ref_loc, atol=1e-5))
    assert bool(jnp.allclose(scale, ref_scale, atol=1e-5))
    print("KERNEL_OK")
</pallas_src>

<mosaic_0001>
module attributes {stable_mosaic.version = 11 : i64} {
  func.func @_stack_kernel(%arg0: i32, %arg1: memref<64x128xf32, #tpu.memory_space<vmem>>, %arg2: memref<256x256xf32, #tpu.memory_space<vmem>>, %arg3: memref<64x128xf32, #tpu.memory_space<vmem>>, %arg4: memref<64x128xf32, #tpu.memory_space<vmem>>, %arg5: memref<1x1x128xf32, #tpu.memory_space<vmem>>, %arg6: memref<1x128x640xbf16, #tpu.memory_space<vmem>>, %arg7: memref<1x128x128xbf16, #tpu.memory_space<vmem>>, %arg8: memref<1x1x128xf32, #tpu.memory_space<vmem>>, %arg9: memref<1x128x1024xbf16, #tpu.memory_space<vmem>>, %arg10: memref<1x512x128xbf16, #tpu.memory_space<vmem>>, %arg11: memref<64x128xf32, #tpu.memory_space<vmem>>, %arg12: memref<64x128xf32, #tpu.memory_space<vmem>>) attributes {dimension_semantics = [#tpu.dimension_semantics<arbitrary>], iteration_bounds = array<i64: 2>, scalar_prefetch = 0 : i64, scratch_operands = 1 : i64, tpu.core_type = #tpu.core_type<tc>, window_params = [{pipeline_mode = #tpu.pipeline_mode<synchronous>, transform_indices = @transform_0, window_bounds = array<i64: 64, 128>}, {pipeline_mode = #tpu.pipeline_mode<synchronous>, transform_indices = @transform_1, window_bounds = array<i64: 256, 256>}, {pipeline_mode = #tpu.pipeline_mode<synchronous>, transform_indices = @transform_2, window_bounds = array<i64: 64, 128>}, {pipeline_mode = #tpu.pipeline_mode<synchronous>, transform_indices = @transform_3, window_bounds = array<i64: 64, 128>}, {transform_indices = @transform_4, window_bounds = array<i64: 1, 1, 128>}, {transform_indices = @transform_5, window_bounds = array<i64: 1, 128, 640>}, {transform_indices = @transform_6, window_bounds = array<i64: 1, 128, 128>}, {transform_indices = @transform_7, window_bounds = array<i64: 1, 1, 128>}, {transform_indices = @transform_8, window_bounds = array<i64: 1, 128, 1024>}, {transform_indices = @transform_9, window_bounds = array<i64: 1, 512, 128>}, {pipeline_mode = #tpu.pipeline_mode<synchronous>, transform_indices = @transform_10, window_bounds = array<i64: 64, 128>}]} {
    %c0_i32 = arith.constant 0 : i32
    %0 = arith.cmpi eq, %arg0, %c0_i32 : i32
    %1 = arith.extui %0 : i1 to i32
    %c0_i32_0 = arith.constant 0 : i32
    %2 = arith.cmpi ne, %1, %c0_i32_0 : i32
    scf.if %2 {
      %c0_48 = arith.constant 0 : index
      %c0_49 = arith.constant 0 : index
      %126 = vector.load %arg1[%c0_48, %c0_49] : memref<64x128xf32, #tpu.memory_space<vmem>>, vector<64x128xf32>
      %c0_50 = arith.constant 0 : index
      %c0_51 = arith.constant 0 : index
      %127 = vector.load %arg12[%c0_50, %c0_51] : memref<64x128xf32, #tpu.memory_space<vmem>>, vector<64x128xf32>
      tpu.vector_store %arg12[%c0_50, %c0_51], %126 {strides = array<i32>} : memref<64x128xf32, #tpu.memory_space<vmem>>, vector<64x128xf32>,
    } else {
    }
    %c0 = arith.constant 0 : index
    %c0_1 = arith.constant 0 : index
    %3 = vector.load %arg12[%c0, %c0_1] : memref<64x128xf32, #tpu.memory_space<vmem>>, vector<64x128xf32>
    %c0_2 = arith.constant 0 : index
    %c0_3 = arith.constant 0 : index
    %c0_4 = arith.constant 0 : index
    %4 = vector.load %arg5[%c0_2, %c0_3, %c0_4] : memref<1x1x128xf32, #tpu.memory_space<vmem>>, vector<1x1x128xf32>
    %5 = vector.shape_cast %4 : vector<1x1x128xf32> to vector<1x128xf32>
    %6 = arith.mulf %3, %3 : vector<64x128xf32>
    %cst = arith.constant dense<0.000000e+00> : vector<64xf32>
    %7 = vector.multi_reduction <add>, %6, %cst [1] : vector<64x128xf32> to vector<64xf32>
    %8 = vector.shape_cast %7 : vector<64xf32> to vector<64x1xf32>
    %cst_5 = arith.constant 1.280000e+02 : f32
    %9 = vector.broadcast %cst_5 : f32 to vector<64x1xf32>
    %10 = arith.divf %8, %9 : vector<64x1xf32>
    %cst_6 = arith.constant 9.99999974E-6 : f32
    %11 = vector.broadcast %cst_6 : f32 to vector<64x1xf32>
    %12 = arith.addf %10, %11 : vector<64x1xf32>
    %13 = math.rsqrt %12 : vector<64x1xf32>
    %14 = vector.broadcast %13 : vector<64x1xf32> to vector<64x128xf32>
    %15 = arith.mulf %3, %14 : vector<64x128xf32>
    %16 = vector.broadcast %5 : vector<1x128xf32> to vector<64x128xf32>
    %17 = arith.mulf %16, %15 : vector<64x128xf32>
    %18 = arith.truncf %17 : vector<64x128xf32> to vector<64x128xbf16>
    %c0_7 = arith.constant 0 : index
    %c0_8 = arith.constant 0 : index
    %c0_9 = arith.constant 0 : index
    %19 = vector.load %arg6[%c0_7, %c0_8, %c0_9] : memref<1x128x640xbf16, #tpu.memory_space<vmem>>, vector<1x128x640xbf16>
    %20 = vector.shape_cast %19 : vector<1x128x640xbf16> to vector<128x640xbf16>
    %cst_10 = arith.constant dense<0.000000e+00> : vector<64x640xf32>
    %21 = tpu.matmul %18, %20, %cst_10 {dimension_numbers = #tpu.dot_dimension_numbers<[1], [0], [0], [1], [0, 0, 1, 1], [], []>} : vector<64x128xbf16>, vector<128x640xbf16>, vector<64x640xf32> -> vector<64x640xf32>
    %c0_11 = arith.constant 0 : index
    %c0_12 = arith.constant 0 : index
    %22 = vector.load %arg3[%c0_11, %c0_12] : memref<64x128xf32, #tpu.memory_space<vmem>>, vector<64x128xf32>
    %c0_13 = arith.constant 0 : index
    %c0_14 = arith.constant 0 : index
    %23 = vector.load %arg4[%c0_13, %c0_14] : memref<64x128xf32, #tpu.memory_space<vmem>>, vector<64x128xf32>
    %24 = vector.extract_strided_slice %21 {offsets = [0, 0], sizes = [64, 128], strides = [1, 1]} : vector<64x640xf32> to vector<64x128xf32>
    %25 = arith.mulf %24, %22 : vector<64x128xf32>
    %26 = vector.extract_strided_slice %21 {offsets = [0, 128], sizes = [64, 128], strides = [1, 1]} : vector<64x640xf32> to vector<64x128xf32>
    %27 = arith.mulf %26, %23 : vector<64x128xf32>
    %28 = arith.addf %25, %27 : vector<64x128xf32>
    %29 = vector.extract_strided_slice %21 {offsets = [0, 256], sizes = [64, 128], strides = [1, 1]} : vector<64x640xf32> to vector<64x128xf32>
    %30 = arith.mulf %29, %22 : vector<64x128xf32>
    %31 = vector.extract_strided_slice %21 {offsets = [0, 384], sizes = [64, 128], strides = [1, 1]} : vector<64x640xf32> to vector<64x128xf32>
    %32 = arith.mulf %31, %23 : vector<64x128xf32>
    %33 = arith.addf %30, %32 : vector<64x128xf32>
    %34 = vector.extract_strided_slice %21 {offsets = [0, 512], sizes = [64, 128], strides = [1, 1]} : vector<64x640xf32> to vector<64x128xf32>
    %35 = vector.extract_strided_slice %28 {offsets = [0, 0], sizes = [64, 32], strides = [1, 1]} : vector<64x128xf32> to vector<64x32xf32>
    %36 = vector.extract_strided_slice %28 {offsets = [0, 32], sizes = [64, 32], strides = [1, 1]} : vector<64x128xf32> to vector<64x32xf32>
    %37 = vector.extract_strided_slice %28 {offsets = [0, 64], sizes = [64, 32], strides = [1, 1]} : vector<64x128xf32> to vector<64x32xf32>
    %38 = vector.extract_strided_slice %28 {offsets = [0, 96], sizes = [64, 32], strides = [1, 1]} : vector<64x128xf32> to vector<64x32xf32>
    %39 = tpu.concatenate %35, %36, %37, %38 in 0 : vector<64x32xf32>, vector<64x32xf32>, vector<64x32xf32>, vector<64x32xf32> -> vector<256x32xf32>
    %40 = arith.truncf %39 : vector<256x32xf32> to vector<256x32xbf16>
    %41 = vector.extract_strided_slice %33 {offsets = [0, 0], sizes = [64, 32], strides = [1, 1]} : vector<64x128xf32> to vector<64x32xf32>
    %42 = vector.extract_strided_slice %33 {offsets = [0, 32], sizes = [64, 32], strides = [1, 1]} : vector<64x128xf32> to vector<64x32xf32>
    %43 = vector.extract_strided_slice %33 {offsets = [0, 64], sizes = [64, 32], strides = [1, 1]} : vector<64x128xf32> to vector<64x32xf32>
    %44 = vector.extract_strided_slice %33 {offsets = [0, 96], sizes = [64, 32], strides = [1, 1]} : vector<64x128xf32> to vector<64x32xf32>
    %45 = tpu.concatenate %41, %42, %43, %44 in 0 : vector<64x32xf32>, vector<64x32xf32>, vector<64x32xf32>, vector<64x32xf32> -> vector<256x32xf32>
    %46 = arith.truncf %45 : vector<256x32xf32> to vector<256x32xbf16>
    %47 = vector.extract_strided_slice %34 {offsets = [0, 0], sizes = [64, 32], strides = [1, 1]} : vector<64x128xf32> to vector<64x32xf32>
    %48 = vector.extract_strided_slice %34 {offsets = [0, 32], sizes = [64, 32], strides = [1, 1]} : vector<64x128xf32> to vector<64x32xf32>
    %49 = vector.extract_strided_slice %34 {offsets = [0, 64], sizes = [64, 32], strides = [1, 1]} : vector<64x128xf32> to vector<64x32xf32>
    %50 = vector.extract_strided_slice %34 {offsets = [0, 96], sizes = [64, 32], strides = [1, 1]} : vector<64x128xf32> to vector<64x32xf32>
    %51 = tpu.concatenate %47, %48, %49, %50 in 0 : vector<64x32xf32>, vector<64x32xf32>, vector<64x32xf32>, vector<64x32xf32> -> vector<256x32xf32>
    %52 = arith.truncf %51 : vector<256x32xf32> to vector<256x32xbf16>
    %cst_15 = arith.constant dense<0.000000e+00> : vector<256x256xf32>
    %53 = tpu.matmul %40, %46, %cst_15 {dimension_numbers = #tpu.dot_dimension_numbers<[1], [1], [0], [0], [0, 0, 1, 0], [], []>} : vector<256x32xbf16>, vector<256x32xbf16>, vector<256x256xf32> -> vector<256x256xf32>
    %cst_16 = arith.constant 0.176776692 : f32
    %54 = vector.broadcast %cst_16 : f32 to vector<256x256xf32>
    %55 = arith.mulf %53, %54 : vector<256x256xf32>
    %c0_17 = arith.constant 0 : index
    %c0_18 = arith.constant 0 : index
    %56 = vector.load %arg2[%c0_17, %c0_18] : memref<256x256xf32, #tpu.memory_space<vmem>>, vector<256x256xf32>
    %57 = arith.addf %55, %56 : vector<256x256xf32>
    %cst_19 = arith.constant dense<0xFF800000> : vector<256xf32>
    %58 = vector.multi_reduction <maximumf>, %57, %cst_19 [1] : vector<256x256xf32> to vector<256xf32>
    %59 = vector.shape_cast %58 : vector<256xf32> to vector<256x1xf32>
    %60 = vector.broadcast %59 : vector<256x1xf32> to vector<256x256xf32>
    %61 = arith.subf %57, %60 : vector<256x256xf32>
    %62 = math.exp %61 : vector<256x256xf32>
    %cst_20 = arith.constant dense<0.000000e+00> : vector<256xf32>
    %63 = vector.multi_reduction <add>, %62, %cst_20 [1] : vector<256x256xf32> to vector<256xf32>
    %64 = vector.shape_cast %63 : vector<256xf32> to vector<256x1xf32>
    %65 = tpu.reciprocal %64 {approx = true} : vector<256x1xf32> -> vector<256x1xf32>
    %66 = vector.broadcast %65 : vector<256x1xf32> to vector<256x256xf32>
    %67 = arith.mulf %62, %66 : vector<256x256xf32>
    %68 = arith.truncf %67 : vector<256x256xf32> to vector<256x256xbf16>
    %cst_21 = arith.constant dense<0.000000e+00> : vector<256x32xf32>
    %69 = tpu.matmul %68, %52, %cst_21 {dimension_numbers = #tpu.dot_dimension_numbers<[1], [0], [0], [1], [0, 0, 1, 1], [], []>} : vector<256x256xbf16>, vector<256x32xbf16>, vector<256x32xf32> -> vector<256x32xf32>
    %c0_22 = arith.constant 0 : index
    %c0_23 = arith.constant 0 : index
    %c0_24 = arith.constant 0 : index
    %70 = vector.load %arg7[%c0_22, %c0_23, %c0_24] : memref<1x128x128xbf16, #tpu.memory_space<vmem>>, vector<1x128x128xbf16>
    %71 = vector.shape_cast %70 : vector<1x128x128xbf16> to vector<128x128xbf16>
    %72 = vector.extract_strided_slice %69 {offsets = [0, 0], sizes = [64, 32], strides = [1, 1]} : vector<256x32xf32> to vector<64x32xf32>
    %73 = arith.truncf %72 : vector<64x32xf32> to vector<64x32xbf16>
    %74 = vector.extract_strided_slice %71 {offsets = [0, 0], sizes = [32, 128], strides = [1, 1]} : vector<128x128xbf16> to vector<32x128xbf16>
    %cst_25 = arith.constant dense<0.000000e+00> : vector<64x128xf32>
    %75 = tpu.matmul %73, %74, %cst_25 {dimension_numbers = #tpu.dot_dimension_numbers<[1], [0], [0], [1], [0, 0, 1, 1], [], []>} : vector<64x32xbf16>, vector<32x128xbf16>, vector<64x128xf32> -> vector<64x128xf32>
    %76 = vector.extract_strided_slice %69 {offsets = [64, 0], sizes = [64, 32], strides = [1, 1]} : vector<256x32xf32> to vector<64x32xf32>
    %77 = arith.truncf %76 : vector<64x32xf32> to vector<64x32xbf16>
    %78 = vector.extract_strided_slice %71 {offsets = [32, 0], sizes = [32, 128], strides = [1, 1]} : vector<128x128xbf16> to vector<32x128xbf16>
    %cst_26 = arith.constant dense<0.000000e+00> : vector<64x128xf32>
    %79 = tpu.matmul %77, %78, %cst_26 {dimension_numbers = #tpu.dot_dimension_numbers<[1], [0], [0], [1], [0, 0, 1, 1], [], []>} : vector<64x32xbf16>, vector<32x128xbf16>, vector<64x128xf32> -> vector<64x128xf32>
    %80 = arith.addf %75, %79 : vector<64x128xf32>
    %81 = vector.extract_strided_slice %69 {offsets = [128, 0], sizes = [64, 32], strides = [1, 1]} : vector<256x32xf32> to vector<64x32xf32>
    %82 = arith.truncf %81 : vector<64x32xf32> to vector<64x32xbf16>
    %83 = vector.extract_strided_slice %71 {offsets = [64, 0], sizes = [32, 128], strides = [1, 1]} : vector<128x128xbf16> to vector<32x128xbf16>
    %cst_27 = arith.constant dense<0.000000e+00> : vector<64x128xf32>
    %84 = tpu.matmul %82, %83, %cst_27 {dimension_numbers = #tpu.dot_dimension_numbers<[1], [0], [0], [1], [0, 0, 1, 1], [], []>} : vector<64x32xbf16>, vector<32x128xbf16>, vector<64x128xf32> -> vector<64x128xf32>
    %85 = arith.addf %80, %84 : vector<64x128xf32>
    %86 = vector.extract_strided_slice %69 {offsets = [192, 0], sizes = [64, 32], strides = [1, 1]} : vector<256x32xf32> to vector<64x32xf32>
    %87 = arith.truncf %86 : vector<64x32xf32> to vector<64x32xbf16>
    %88 = vector.extract_strided_slice %71 {offsets = [96, 0], sizes = [32, 128], strides = [1, 1]} : vector<128x128xbf16> to vector<32x128xbf16>
    %cst_28 = arith.constant dense<0.000000e+00> : vector<64x128xf32>
    %89 = tpu.matmul %87, %88, %cst_28 {dimension_numbers = #tpu.dot_dimension_numbers<[1], [0], [0], [1], [0, 0, 1, 1], [], []>} : vector<64x32xbf16>, vector<32x128xbf16>, vector<64x128xf32> -> vector<64x128xf32>
    %90 = arith.addf %85, %89 : vector<64x128xf32>
    %91 = arith.addf %3, %90 : vector<64x128xf32>
    %c0_29 = arith.constant 0 : index
    %c0_30 = arith.constant 0 : index
    %c0_31 = arith.constant 0 : index
    %92 = vector.load %arg8[%c0_29, %c0_30, %c0_31] : memref<1x1x128xf32, #tpu.memory_space<vmem>>, vector<1x1x128xf32>
    %93 = vector.shape_cast %92 : vector<1x1x128xf32> to vector<1x128xf32>
    %94 = arith.mulf %91, %91 : vector<64x128xf32>
    %cst_32 = arith.constant dense<0.000000e+00> : vector<64xf32>
    %95 = vector.multi_reduction <add>, %94, %cst_32 [1] : vector<64x128xf32> to vector<64xf32>
    %96 = vector.shape_cast %95 : vector<64xf32> to vector<64x1xf32>
    %cst_33 = arith.constant 1.280000e+02 : f32
    %97 = vector.broadcast %cst_33 : f32 to vector<64x1xf32>
    %98 = arith.divf %96, %97 : vector<64x1xf32>
    %cst_34 = arith.constant 9.99999974E-6 : f32
    %99 = vector.broadcast %cst_34 : f32 to vector<64x1xf32>
    %100 = arith.addf %98, %99 : vector<64x1xf32>
    %101 = math.rsqrt %100 : vector<64x1xf32>
    %102 = vector.broadcast %101 : vector<64x1xf32> to vector<64x128xf32>
    %103 = arith.mulf %91, %102 : vector<64x128xf32>
    %104 = vector.broadcast %93 : vector<1x128xf32> to vector<64x128xf32>
    %105 = arith.mulf %104, %103 : vector<64x128xf32>
    %106 = arith.truncf %105 : vector<64x128xf32> to vector<64x128xbf16>
    %c0_35 = arith.constant 0 : index
    %c0_36 = arith.constant 0 : index
    %c0_37 = arith.constant 0 : index
    %107 = vector.load %arg9[%c0_35, %c0_36, %c0_37] : memref<1x128x1024xbf16, #tpu.memory_space<vmem>>, vector<1x128x1024xbf16>
    %108 = vector.shape_cast %107 : vector<1x128x1024xbf16> to vector<128x1024xbf16>
    %cst_38 = arith.constant dense<0.000000e+00> : vector<64x1024xf32>
    %109 = tpu.matmul %106, %108, %cst_38 {dimension_numbers = #tpu.dot_dimension_numbers<[1], [0], [0], [1], [0, 0, 1, 1], [], []>} : vector<64x128xbf16>, vector<128x1024xbf16>, vector<64x1024xf32> -> vector<64x1024xf32>
    %110 = vector.extract_strided_slice %109 {offsets = [0, 0], sizes = [64, 512], strides = [1, 1]} : vector<64x1024xf32> to vector<64x512xf32>
    %111 = vector.extract_strided_slice %109 {offsets = [0, 512], sizes = [64, 512], strides = [1, 1]} : vector<64x1024xf32> to vector<64x512xf32>
    %112 = arith.negf %110 : vector<64x512xf32>
    %113 = math.exp %112 : vector<64x512xf32>
    %cst_39 = arith.constant 1.000000e+00 : f32
    %114 = vector.broadcast %cst_39 : f32 to vector<64x512xf32>
    %115 = arith.addf %114, %113 : vector<64x512xf32>
    %116 = arith.divf %114, %115 : vector<64x512xf32>
    %117 = arith.mulf %110, %116 : vector<64x512xf32>
    %118 = arith.mulf %117, %111 : vector<64x512xf32>
    %119 = arith.truncf %118 : vector<64x512xf32> to vector<64x512xbf16>
    %c0_40 = arith.constant 0 : index
    %c0_41 = arith.constant 0 : index
    %c0_42 = arith.constant 0 : index
    %120 = vector.load %arg10[%c0_40, %c0_41, %c0_42] : memref<1x512x128xbf16, #tpu.memory_space<vmem>>, vector<1x512x128xbf16>
    %121 = vector.shape_cast %120 : vector<1x512x128xbf16> to vector<512x128xbf16>
    %cst_43 = arith.constant dense<0.000000e+00> : vector<64x128xf32>
    %122 = tpu.matmul %119, %121, %cst_43 {dimension_numbers = #tpu.dot_dimension_numbers<[1], [0], [0], [1], [0, 0, 1, 1], [], []>} : vector<64x512xbf16>, vector<512x128xbf16>, vector<64x128xf32> -> vector<64x128xf32>
    %123 = arith.addf %91, %122 : vector<64x128xf32>
    %c0_44 = arith.constant 0 : index
    %c0_45 = arith.constant 0 : index
    %124 = vector.load %arg12[%c0_44, %c0_45] : memref<64x128xf32, #tpu.memory_space<vmem>>, vector<64x128xf32>
    tpu.vector_store %arg12[%c0_44, %c0_45], %123 {strides = array<i32>} : memref<64x128xf32, #tpu.memory_space<vmem>>, vector<64x128xf32>,
    %c0_46 = arith.constant 0 : index
    %c0_47 = arith.constant 0 : index
    %125 = vector.load %arg11[%c0_46, %c0_47] : memref<64x128xf32, #tpu.memory_space<vmem>>, vector<64x128xf32>
    tpu.vector_store %arg11[%c0_46, %c0_47], %123 {strides = array<i32>} : memref<64x128xf32, #tpu.memory_space<vmem>>, vector<64x128xf32>,
    return
  }
  func.func @transform_0(%arg0: i32) -> (i32, i32) {
    %c0_i32 = arith.constant 0 : i32
    %c0_i32_0 = arith.constant 0 : i32
    %c0_i32_1 = arith.constant 0 : i32
    return %c0_i32, %c0_i32_0 : i32, i32
  }
  func.func @transform_1(%arg0: i32) -> (i32, i32) {
    %c0_i32 = arith.constant 0 : i32
    %c0_i32_0 = arith.constant 0 : i32
    %c0_i32_1 = arith.constant 0 : i32
    return %c0_i32, %c0_i32_0 : i32, i32
  }
  func.func @transform_2(%arg0: i32) -> (i32, i32) {
    %c0_i32 = arith.constant 0 : i32
    %c0_i32_0 = arith.constant 0 : i32
    %c0_i32_1 = arith.constant 0 : i32
    return %c0_i32, %c0_i32_0 : i32, i32
  }
  func.func @transform_3(%arg0: i32) -> (i32, i32) {
    %c0_i32 = arith.constant 0 : i32
    %c0_i32_0 = arith.constant 0 : i32
    %c0_i32_1 = arith.constant 0 : i32
    return %c0_i32, %c0_i32_0 : i32, i32
  }
  func.func @transform_4(%arg0: i32) -> (i32, i32, i32) {
    %c0_i32 = arith.constant 0 : i32
    %c0_i32_0 = arith.constant 0 : i32
    %c0_i32_1 = arith.constant 0 : i32
    return %arg0, %c0_i32, %c0_i32_0 : i32, i32, i32
  }
  func.func @transform_5(%arg0: i32) -> (i32, i32, i32) {
    %c0_i32 = arith.constant 0 : i32
    %c0_i32_0 = arith.constant 0 : i32
    %c0_i32_1 = arith.constant 0 : i32
    return %arg0, %c0_i32, %c0_i32_0 : i32, i32, i32
  }
  func.func @transform_6(%arg0: i32) -> (i32, i32, i32) {
    %c0_i32 = arith.constant 0 : i32
    %c0_i32_0 = arith.constant 0 : i32
    %c0_i32_1 = arith.constant 0 : i32
    return %arg0, %c0_i32, %c0_i32_0 : i32, i32, i32
  }
  func.func @transform_7(%arg0: i32) -> (i32, i32, i32) {
    %c0_i32 = arith.constant 0 : i32
    %c0_i32_0 = arith.constant 0 : i32
    %c0_i32_1 = arith.constant 0 : i32
    return %arg0, %c0_i32, %c0_i32_0 : i32, i32, i32
  }
  func.func @transform_8(%arg0: i32) -> (i32, i32, i32) {
    %c0_i32 = arith.constant 0 : i32
    %c0_i32_0 = arith.constant 0 : i32
    %c0_i32_1 = arith.constant 0 : i32
    return %arg0, %c0_i32, %c0_i32_0 : i32, i32, i32
  }
  func.func @transform_9(%arg0: i32) -> (i32, i32, i32) {
    %c0_i32 = arith.constant 0 : i32
    %c0_i32_0 = arith.constant 0 : i32
    %c0_i32_1 = arith.constant 0 : i32
    return %arg0, %c0_i32, %c0_i32_0 : i32, i32, i32
  }
  func.func @transform_10(%arg0: i32) -> (i32, i32) {
    %c0_i32 = arith.constant 0 : i32
    %c0_i32_0 = arith.constant 0 : i32
    %c0_i32_1 = arith.constant 0 : i32
    return %c0_i32, %c0_i32_0 : i32, i32
  }
}

</mosaic_0001>

<bundles_post_ra>
// kernel: model_forward.1
= control target key start
LH: loop header
LB: loop body
LE: loop exit
PB: predicated region body
PF: predicated region fallthrough
CT: control target
= control target key end

     0   :  { %s9557_s0 = inlined_call_operand.vmem [shape: f32[64,128], index: 0, kind: input, shape index: {}]   ;;  %s9558_s1 = inlined_call_operand.vmem [shape: f32[256,256], index: 1, kind: input, shape index: {}]   ;;  %s9559_s2 = inlined_call_operand.vmem [shape: f32[64,128], index: 2, kind: input, shape index: {}]   ;;  %s9560_s3 = inlined_call_operand.vmem [shape: f32[64,128], index: 3, kind: input, shape index: {}]   ;;  %s9561_s4 = inlined_call_operand.vmem [shape: f32[2,1,128], index: 4, kind: input, shape index: {}, may-alias: {4,7}]   ;;  %s9562_s5 = inlined_call_operand.hbm [shape: bf16[2,128,640], index: 5, kind: input, shape index: {}]   ;;  %s9563_s6 = inlined_call_operand.hbm [shape: bf16[2,128,128], index: 6, kind: input, shape index: {}]   ;;  %s9564_s7 = inlined_call_operand.vmem [shape: f32[2,1,128], index: 7, kind: input, shape index: {}, may-alias: {4,7}]   ;;  %s9565_s8 = inlined_call_operand.vmem [shape: bf16[2,128,1024], index: 8, kind: input, shape index: {}]   ;;  %s9566_s9 = inlined_call_operand.vmem [shape: bf16[2,512,128], index: 9, kind: input, shape index: {}]   ;;  %s9567_s10 = inlined_call_operand.vmem [shape: f32[64,128], index: 10, kind: output, shape index: {}]  }
   0x1   :  { %9589 = sst [smem:[#allocation35_spill]] %s9562_s5 }
   0x2   :  { %15 = vsyncpa [#allocation4], 0 }
   0x3   :  { %17 = vsyncpa [#allocation4 + $0x1], 0 }
   0x4   :  { %18 = vsyncpa [#allocation6], 0 }
   0x5   :  { %20 = vsyncpa [#allocation6 + $0x1], 0  ;;  %s6382_s13 = smov 0   ;;  %s6384_s14 = smov 0  }
   0x6   :  { %s6386_s15 = smov 0   ;;  %s6388_s16 = smov 0  }
   0x7 LB: > { %9590 = sst [smem:[#allocation9_spill]] %s6313_s15  ;;  %s6401_s17 = sadd.s32 4294967295, %s6317_s16   ;;  %s6317_s16 = sphi %s6388_s16, %s9772_s16   ;;  %s6313_s15 = sphi %s6386_s15, %s9774_s15   ;;  %s6309_s14 = sphi %s6384_s14, %s9776_s14   ;;  %s6305_s13 = sphi %s6382_s13, %s9775_s13  }
   0x8   : > { %s6404_s18 = sadd.s32 1, %s6317_s16   ;;  %s143_s20 = sadd.s32 1, %s6313_s15 }
   0x9   : > { %9591 = sst [smem:[#allocation10_spill]] %s6404_s18  ;;  %s140_s19 = ssub.s32 %s6317_s16, %s6404_s18 }
   0xa   : > { %p141_p0 = scmp.eq.s32.totalorder %s140_s19, 0  ;;  %p150_p1 = scmp.ne.s32.totalorder %s6313_s15, %s6309_s14 }
   0xb   : > { %p151_p2 = scmp.eq.s32.totalorder %s6317_s16, 0  ;;  %p156_p3 = scmp.ne.s32.totalorder %s6309_s14, %s6305_s13 }
   0xc   : > { %s6414_s21 = scalar_select %p141_p0, %s6313_s15, %s143_s20  }
   0xd   : > { %p152_p4 = por %p151_p2, %p150_p1  ;;  %p157_p5 = scmp.eq.s32.totalorder %s6401_s17, 0 }
   0xe   : > { %9592 = sst [smem:[#allocation11_spill]] %s6414_s21  ;;  %p5634_p6 = scmp.lt.s32.totalorder %s6317_s16, 2 }
   0xf   : > { %p6418_p7 = por %p157_p5, %p156_p3  ;;  %s6423_s23 = sand.u32 1, %s6313_s15  }
  0x10   : > { %s5620_s24 = smul.u32 320, %s6423_s23  ;;  %p6427_p8 = pnand %p5634_p6, %p152_p4 }
  0x11   : > { %s5621_s25 = smul.u32 320, %s6317_s16  ;;  %s9595_s5 = sld [smem:[#allocation35_spill]] }
  0x12   : > { %s327_s30 = scalar_lea.vmem [#allocation3], %s5620_s24  ;;  %p4790_p9 = scmp.ge.s32.totalorder %s6317_s16, 1 }
  0x13   : > { %s335_s11 = sshll.u32 %s327_s30, 4  ;;  %s324_s13 = scalar_lea.sflag [#allocation4], %s6423_s23  ;;  %s336_s11 = int_to_ptr.vmem [resolvable:$true] %s335_s11 }
  0x14   : > { %p6223_p11 = pneg %p6427_p8 }
  0x17   : > { %s332_s29 = scalar_lea.hbm %s9595_s5, %s5621_s25  ;;  %s6226_s24 = scalar_lea.hbm %s9595_s5, 640 }
  0x18   : > { %s333_s12 = sshll.u32 %s332_s29, 4  ;;  %s334_s12 = int_to_ptr.hbm [resolvable:$true] %s333_s12 }
  0x19   : > { %s6219_s19 = sshra.s32 %s334_s12, 4  ;;  %s6220_s19 = int_to_ptr.hbm [resolvable:$true] %s6219_s19 }
  0x1a   : > { %s6221_s20 = scalar_lea.hbm %s6220_s19, 320  ;;  %p6227_p0 = scmp.lt.s32.totalorder %s6220_s19, %s9595_s5 }
  0x1b   : > { %p6222_p10 = scmp.ne.s32.totalorder %s6220_s19, %s6221_s20  ;;  %p6228_p1 = scmp.lt.s32.totalorder %s6226_s24, %s6221_s20 }
  0x1d   : > { %p6224_p12 = pnand %p6223_p11, %p6222_p10  ;;  %p6229_p2 = por %p6228_p1, %p6227_p0 }
  0x1f   : > { %p6225_p13 = pneg %p6224_p12 }
  0x21   : > { %p6230_p3 = pnand %p6229_p2, %p6225_p13 }
  0x23   : > { %6233 = shalt.err (!%p6230_p3)
}
  0x24   : > { %s6319_s30 = smov 320   ;;  %s6320_s21 = smov 20  }
  0x25   : > { %5630 = dma.hbm_to_vmem [thread:$0]  (!%p6427_p8), %s334_s12, 5120, %s336_s11, %s324_s13, %s6319_s30, %s6319_s30, %s6320_s21  }
  0x26   : > { %p387_p4 = scmp.lt.s32.totalorder %s6317_s16, 3  ;;  %s4787_s27 = sshll.u32 %s6423_s23, 6 }
  0x27   : > { %s5455_s28 = sshll.u32 %s6317_s16, 6  ;;  %s349_s29 = scalar_lea.vmem [#allocation5], %s4787_s27 }
  0x28   : > { %p6454_p5 = pnand %p4790_p9, %p387_p4  ;;  %s354_s25 = scalar_lea.hbm %s9563_s6, %s5455_s28 }
  0x29   : > { %s357_s5 = sshll.u32 %s349_s29, 4  ;;  %s355_s15 = sshll.u32 %s354_s25, 4  ;;  %s358_s5 = int_to_ptr.vmem [resolvable:$true] %s357_s5  ;;  %s356_s15 = int_to_ptr.hbm [resolvable:$true] %s355_s15 }
  0x2a   : > { %s346_s18 = scalar_lea.sflag [#allocation6], %s6423_s23  ;;  %s6249_s21 = sshra.s32 %s356_s15, 4  ;;  %s6250_s21 = int_to_ptr.hbm [resolvable:$true] %s6249_s21 }
  0x2b   : > { %s6251_s11 = scalar_lea.hbm %s6250_s21, 64  ;;  %s6256_s13 = scalar_lea.hbm %s9563_s6, 128 }
  0x2c   : > { %p6252_p6 = scmp.ne.s32.totalorder %s6250_s21, %s6251_s11  ;;  %p6257_p12 = scmp.lt.s32.totalorder %s6250_s21, %s9563_s6 }
  0x2d   : > { %p6258_p13 = scmp.lt.s32.totalorder %s6256_s13, %s6251_s11 }
  0x2e   : > { %p6254_p9 = pnand %p6252_p6, %p6223_p11 }
  0x2f   : > { %p6259_p0 = por %p6258_p13, %p6257_p12 }
  0x30   : > { %p6255_p10 = pneg %p6254_p9 }
  0x32   : > { %p6260_p1 = pnand %p6259_p0, %p6255_p10 }
  0x34   : > { %6263 = shalt.err (!%p6260_p1)
}
  0x35   : > { %s6321_s23 = smov 64   ;;  %s6322_s27 = smov 4  }
  0x36   : > { %5633 = dma.hbm_to_vmem [thread:$0]  (!%p6427_p8), %s356_s15, 1024, %s358_s5, %s346_s18, %s6321_s23, %s6321_s23, %s6322_s27  }
  0x37   : > { %391 = sbr.rel (%p6454_p5) target bundleno = 2312 (0x908), region = 60 }
  0x3c   : > { %s393_s20 = sand.u32 1, %s6309_s14  }
  0x3d   : > { %s5622_s24 = smul.u32 320, %s393_s20  ;;  %s394_s25 = scalar_lea.sflag [#allocation4], %s393_s20 }
  0x3f   : > { %s6476_s29 = scalar_lea.vmem [#allocation3], %s5622_s24 }
  0x40   : > { %6296 = dma.done.wait (%p6418_p7), %s394_s25, 5120  }
  0x41   : > { %6298 = vsyncadd (%p6418_p7), %s394_s25, 4294962176  ;;  %s4791_s21 = sshll.u32 %s393_s20, 6  ;;  %s404_s11 = scalar_lea.sflag [#allocation6], %s393_s20 }
  0x42   : > { %s6482_s26 = scalar_lea.vmem [#allocation5], %s4791_s21 }
  0x43   : > { %6300 = dma.done.wait (%p6418_p7), %s404_s11, 1024  }
  0x44   : > { %6302 = vsyncadd (%p6418_p7), %s404_s11, 4294966272  ;;  %p461_p8 = scmp.lt.s32.totalorder %s6401_s17, 1  ;;  %p4796_p7 = scmp.ne.s32.totalorder %s6401_s17, 0 }
  0x46   : > { %s6490_s5 = scalar_select %p461_p8, %s6401_s17, 1 }
  0x47   : > { %481 = sbr.rel (%p4796_p7) target bundleno = 85 (0x55), region = 72 }
  0x48   : > { %s463_s19 = scalar_lea.vmem %s9561_s4, %s6490_s5  ;;  %s466_s13 = scalar_lea.vmem %s9564_s7, %s6490_s5 }
  0x49   : > { %s5456_s30 = sshll.u32 %s6490_s5, 9  ;;  %s5457_s22 = sshll.u32 %s6490_s5, 8 }
  0x4a   : > { %s6505_s27 = scalar_lea.vmem %s9565_s8, %s5456_s30  ;;  %s6510_s25 = scalar_lea.vmem %s9566_s9, %s5457_s22 }
  0x4c   : > { %v482_v0 = vld [vmem:[%s9557_s0] sm:$0xff]  ;;  %v483_v1 = vld [vmem:[%s9557_s0 + $0x8] sm:$0xff]  ;;  %v484_v2 = vld [vmem:[%s9557_s0 + $0x10] sm:$0xff] }
  0x4d   : > { %490 = vst [vmem:[#allocation2 + $0x30] sm:$0xff] %v482_v0  ;;  %v485_v3 = vld [vmem:[%s9557_s0 + $0x18] sm:$0xff]  ;;  %v486_v4 = vld [vmem:[%s9557_s0 + $0x20] sm:$0xff]  ;;  %v487_v5 = vld [vmem:[%s9557_s0 + $0x28] sm:$0xff] }
  0x4e   : > { %491 = vst [vmem:[#allocation2] sm:$0xff] %v483_v1  ;;  %v488_v6 = vld [vmem:[%s9557_s0 + $0x30] sm:$0xff]  ;;  %v489_v7 = vld [vmem:[%s9557_s0 + $0x38] sm:$0xff] }
  0x4f   : > { %492 = vst [vmem:[#allocation2 + $0x18] sm:$0xff] %v484_v2 }
  0x50   : > { %493 = vst [vmem:[#allocation2 + $0x10] sm:$0xff] %v485_v3 }
  0x51   : > { %494 = vst [vmem:[#allocation2 + $0x8] sm:$0xff] %v486_v4 }
  0x52   : > { %495 = vst [vmem:[#allocation2 + $0x20] sm:$0xff] %v487_v5 }
  0x53   : > { %496 = vst [vmem:[#allocation2 + $0x28] sm:$0xff] %v488_v6 }
  0x54   : > { %497 = vst [vmem:[#allocation2 + $0x38] sm:$0xff] %v489_v7 }
  0x55 PF: > { %v6541_v10 = vld [vmem:[#allocation2 + $0x30] sm:$0xff]  ;;  %v6553_v16 = vld [vmem:[#allocation2] sm:$0xff]  ;;  %v6323_v24 = vmov 128.0   ;;  %v4939_v25 = vld [vmem:[%s6476_s29 + $0x118] sm:$0xf]  ;;  %s6324_s24 = smov 32  }
  0x56   : > { %v6539_v9 = vld [vmem:[#allocation2 + $0x18] sm:$0xff]  ;;  %v507_v13 = vmul.f32 %v6541_v10, %v6541_v10  ;;  %v508_v19 = vmul.f32 %v6553_v16, %v6553_v16  ;;  %5857 = vrcp.f32 %v6323_v24  ;;  %v5495_v26 = vld [vmem:[%s6476_s29 + $0x128] sm:$0xf0]  ;;  %v4947_v27 = vld [vmem:[%s6476_s29 + $0x120] sm:$0xf]  ;;  %s6325_s30 = smov 64  }
  0x57   : > { %v509_v12 = vmul.f32 %v6539_v9, %v6539_v9  ;;  %v6551_v15 = vld [vmem:[#allocation2 + $0x10] sm:$0xff]  ;;  %v4940_v28 = vor.u32 %v5495_v26, %v4939_v25  ;;  %v5494_v30 = vld [vmem:[%s6476_s29 + $0x124] sm:$0xf]  ;;  %v4949_v31 = vld [vmem:[%s6476_s29 + $0x134] sm:$0xf0]  ;;  %s6326_s28 = smov 96  }
  0x58   : > { %v6537_v8 = vld [vmem:[#allocation2 + $0x8] sm:$0xff]  ;;  %515 = vadd.xlane.f32.xlu0 %v507_v13  ;;  %v510_v18 = vmul.f32 %v6551_v15, %v6551_v15  ;;  %v5496_v29 = vld [vmem:[%s6476_s29 + $0x130] sm:$0xf0]  ;;  %v4952_v33 = vor.u32 %v5494_v30, %v4949_v31  ;;  %v4919_v35 = vld [vmem:[%s6476_s29 + $0xf0] sm:$0xf] }
  0x59   : > { %v511_v11 = vmul.f32 %v6537_v8, %v6537_v8  ;;  %519 = vadd.xlane.f32.xlu1 %v509_v12  ;;  %v6549_v14 = vld [vmem:[#allocation2 + $0x20] sm:$0xff]  ;;  %v4948_v32 = vor.u32 %v5496_v29, %v4947_v27  ;;  %913 = vmatpush.bf16.msra.mxu0 %v4940_v28  ;;  %v4927_v37 = vld [vmem:[%s6476_s29 + $0xf8] sm:$0xf]  ;;  %v5491_v39 = vld [vmem:[%s6476_s29 + $0x108] sm:$0xf0] }
  0x5a   : > { %v512_v17 = vmul.f32 %v6549_v14, %v6549_v14  ;;  %v6563_v21 = vld [vmem:[#allocation2 + $0x28] sm:$0xff]  ;;  %5602 = vmatpush.bf16.msra.mxu1 %v4940_v28  ;;  %1000 = vmatpush.bf16.msra.mxu3 %v4952_v33  ;;  %v5490_v36 = vld [vmem:[%s6476_s29 + $0x100] sm:$0xf0]  ;;  %v5489_v40 = vld [vmem:[%s6476_s29 + $0xfc] sm:$0xf]  ;;  %v4928_v42 = vor.u32 %v5491_v39, %v4927_v37 }
  0x5b   : > { %523 = vadd.xlane.f32.xlu2 %v511_v11  ;;  %v6561_v20 = vld [vmem:[#allocation2 + $0x38] sm:$0xff]  ;;  %v513_v23 = vmul.f32 %v6563_v21, %v6563_v21  ;;  %971 = vmatpush.bf16.msra.mxu2 %v4948_v32  ;;  %v4920_v38 = vor.u32 %v5490_v36, %v4919_v35  ;;  %v4929_v41 = vld [vmem:[%s6476_s29 + $0x10c] sm:$0xf0]  ;;  %v4899_v45 = vld [vmem:[%s6476_s29 + $0xc8] sm:$0xf] }
  0x5c   : > { %v514_v22 = vmul.f32 %v6561_v20, %v6561_v20  ;;  %v6575_v34 = vpop.eup %5857  ;;  %v4932_v43 = vor.u32 %v5489_v40, %v4929_v41  ;;  %v5485_v46 = vld [vmem:[%s6476_s29 + $0xd8] sm:$0xf0]  ;;  %v4907_v47 = vld [vmem:[%s6476_s29 + $0xd0] sm:$0xf]  ;;  %v5486_v49 = vld [vmem:[%s6476_s29 + $0xe0] sm:$0xf0] }
  0x5d   : > { %v532_v44 = vmul.f32 128.0, %v6575_v34  ;;  %914 = vmatpush.bf16.msra.mxu0 %v4920_v38  ;;  %v4900_v48 = vor.u32 %v5485_v46, %v4899_v45  ;;  %v5484_v50 = vld [vmem:[%s6476_s29 + $0xd4] sm:$0xf]  ;;  %v4909_v51 = vld [vmem:[%s6476_s29 + $0xe4] sm:$0xf0]  ;;  %v4908_v52 = vor.u32 %v5486_v49, %v4907_v47  ;;  %vm536_vm0 = vweird.f32 %v6575_v34 }
  0x5e   : > { %5603 = vmatpush.bf16.msra.mxu1 %v4920_v38  ;;  %1001 = vmatpush.bf16.msra.mxu3 %v4932_v43  ;;  %v4912_v53 = vor.u32 %v5484_v50, %v4909_v51  ;;  %v4879_v55 = vld [vmem:[%s6476_s29 + $0xa0] sm:$0xf]  ;;  %v5480_v56 = vld [vmem:[%s6476_s29 + $0xb0] sm:$0xf0]  ;;  %v4887_v57 = vld [vmem:[%s6476_s29 + $0xa8] sm:$0xf] }
  0x5f   : > { %972 = vmatpush.bf16.msra.mxu2 %v4928_v42  ;;  %v533_v54 = vsub.f32 1.0, %v532_v44  ;;  %v4880_v58 = vor.u32 %v5480_v56, %v4879_v55  ;;  %v5481_v59 = vld [vmem:[%s6476_s29 + $0xb8] sm:$0xf0]  ;;  %v5479_v60 = vld [vmem:[%s6476_s29 + $0xac] sm:$0xf] }
  0x60   : > { %517 = vadd.xlane.f32.xlu0 %v508_v19  ;;  %v4889_v61 = vld [vmem:[%s6476_s29 + $0xbc] sm:$0xf0]  ;;  %v4888_v62 = vor.u32 %v5481_v59, %v4887_v57  ;;  %v4859_v0 = vld [vmem:[%s6476_s29 + $0x78] sm:$0xf]  ;;  %v5475_v1 = vld [vmem:[%s6476_s29 + $0x88] sm:$0xf0] }
  0x61   : > { %521 = vadd.xlane.f32.xlu1 %v510_v18  ;;  %915 = vmatpush.bf16.msra.mxu0 %v4900_v48  ;;  %v4892_v63 = vor.u32 %v5479_v60, %v4889_v61  ;;  %v4867_v2 = vld [vmem:[%s6476_s29 + $0x80] sm:$0xf]  ;;  %v534_v3 = vmul.f32 %v6575_v34, %v533_v54  ;;  %v4860_v4 = vor.u32 %v5475_v1, %v4859_v0  ;;  %v5476_v5 = vld [vmem:[%s6476_s29 + $0x90] sm:$0xf0]  ;;  %v5474_v6 = vld [vmem:[%s6476_s29 + $0x84] sm:$0xf] }
  0x62   : > { %5604 = vmatpush.bf16.msra.mxu1 %v4900_v48  ;;  %1002 = vmatpush.bf16.msra.mxu3 %v4912_v53  ;;  %v4869_v7 = vld [vmem:[%s6476_s29 + $0x94] sm:$0xf0]  ;;  %v4868_v11 = vor.u32 %v5476_v5, %v4867_v2  ;;  %v4839_v13 = vld [vmem:[%s6476_s29 + $0x50] sm:$0xf]  ;;  %v5469_v24 = vld [vmem:[%s6476_s29 + $0x5c] sm:$0xf] }
  0x63   : > { %525 = vadd.xlane.f32.xlu2 %v512_v17  ;;  %973 = vmatpush.bf16.msra.mxu2 %v4908_v52  ;;  %v4872_v12 = vor.u32 %v5474_v6, %v4869_v7  ;;  %v5470_v17 = vld [vmem:[%s6476_s29 + $0x60] sm:$0xf0]  ;;  %v4847_v18 = vld [vmem:[%s6476_s29 + $0x58] sm:$0xf]  ;;  %v535_v19 = vadd.f32 %v6575_v34, %v534_v3  ;;  %v4849_v25 = vld [vmem:[%s6476_s29 + $0x6c] sm:$0xf0] }
  0x64   : > { %v4852_v27 = vor.u32 %v5469_v24, %v4849_v25  ;;  %v4819_v28 = vld [vmem:[%s6476_s29 + $0x28] sm:$0xf]  ;;  %v5465_v29 = vld [vmem:[%s6476_s29 + $0x38] sm:$0xf0]  ;;  %v4827_v30 = vld [vmem:[%s6476_s29 + $0x30] sm:$0xf] }
  0x65   : > { %916 = vmatpush.bf16.msra.mxu0 %v4880_v58  ;;  %v6615_v31 = vsel %vm536_vm0, %v6575_v34, %v535_v19  ;;  %v4820_v32 = vor.u32 %v5465_v29, %v4819_v28  ;;  %v5466_v33 = vld [vmem:[%s6476_s29 + $0x40] sm:$0xf0]  ;;  %v5464_v35 = vld [vmem:[%s6476_s29 + $0x34] sm:$0xf]  ;;  %v4829_v36 = vld [vmem:[%s6476_s29 + $0x44] sm:$0xf0] }
  0x66   : > { %5605 = vmatpush.bf16.msra.mxu1 %v4880_v58  ;;  %1003 = vmatpush.bf16.msra.mxu3 %v4892_v63  ;;  %v4828_v39 = vor.u32 %v5466_v33, %v4827_v30  ;;  %v4832_v40 = vor.u32 %v5464_v35, %v4829_v36  ;;  %v4799_v43 = vld [vmem:[%s6476_s29] sm:$0xf]  ;;  %v5460_v44 = vld [vmem:[%s6476_s29 + $0x10] sm:$0xf0]  ;;  %v4807_v45 = vld [vmem:[%s6476_s29 + $0x8] sm:$0xf] }
  0x67   : > { %974 = vmatpush.bf16.msra.mxu2 %v4888_v62  ;;  %v4800_v47 = vor.u32 %v5460_v44, %v4799_v43  ;;  %v5461_v48 = vld [vmem:[%s6476_s29 + $0x18] sm:$0xf0]  ;;  %v5459_v52 = vld [vmem:[%s6476_s29 + $0xc] sm:$0xf]  ;;  %v4809_v53 = vld [vmem:[%s6476_s29 + $0x1c] sm:$0xf0] }
  0x68   : > { %527 = vadd.xlane.f32.xlu0 %v513_v23  ;;  %v5471_v23 = vld [vmem:[%s6476_s29 + $0x68] sm:$0xf0]  ;;  %v4808_v51 = vor.u32 %v5461_v48, %v4807_v45  ;;  %v4812_v54 = vor.u32 %v5459_v52, %v4809_v53  ;;  %v5493_v55 = vld [vmem:[%s6476_s29 + $0x11c] sm:$0xf]  ;;  %v4941_v56 = vld [vmem:[%s6476_s29 + $0x12c] sm:$0xf0] }
  0x69   : > { %529 = vadd.xlane.f32.xlu1 %v514_v22  ;;  %917 = vmatpush.bf16.msra.mxu0 %v4860_v4  ;;  %v4840_v22 = vor.u32 %v5470_v17, %v4839_v13  ;;  %v4848_v26 = vor.u32 %v5471_v23, %v4847_v18  ;;  %v4955_v57 = vld [vmem:[%s6476_s29 + $0x128] sm:$0xf]  ;;  %v4944_v58 = vor.u32 %v5493_v55, %v4941_v56  ;;  %v5497_v59 = vld [vmem:[%s6476_s29 + $0x138] sm:$0xf0]  ;;  %v4935_v6 = vld [vmem:[%s6476_s29 + $0x100] sm:$0xf] }
  0x6a   : > { %5606 = vmatpush.bf16.msra.mxu1 %v4860_v4  ;;  %1004 = vmatpush.bf16.msra.mxu3 %v4872_v12  ;;  %v4956_v63 = vor.u32 %v5497_v59, %v4955_v57  ;;  %v5488_v4 = vld [vmem:[%s6476_s29 + $0xf4] sm:$0xf]  ;;  %v4921_v5 = vld [vmem:[%s6476_s29 + $0x104] sm:$0xf0]  ;;  %v4915_v28 = vld [vmem:[%s6476_s29 + $0xd8] sm:$0xf] }
  0x6b   : > { %975 = vmatpush.bf16.msra.mxu2 %v4868_v11  ;;  %v4924_v13 = vor.u32 %v5488_v4, %v4921_v5  ;;  %v5492_v17 = vld [vmem:[%s6476_s29 + $0x110] sm:$0xf0]  ;;  %v5487_v29 = vld [vmem:[%s6476_s29 + $0xe8] sm:$0xf0]  ;;  %v4895_v43 = vld [vmem:[%s6476_s29 + $0xb0] sm:$0xf] }
  0x6c   : > { %v4916_v36 = vor.u32 %v5487_v29, %v4915_v28  ;;  %v5482_v44 = vld [vmem:[%s6476_s29 + $0xc0] sm:$0xf0]  ;;  %v4875_v4 = vld [vmem:[%s6476_s29 + $0x88] sm:$0xf]  ;;  %v5477_v5 = vld [vmem:[%s6476_s29 + $0x98] sm:$0xf0] }
  0x6d   : > { %918 = vmatpush.bf16.msra.mxu0 %v4840_v22  ;;  %v4876_v29 = vor.u32 %v5477_v5, %v4875_v4 }
  0x6e   : > { %5607 = vmatpush.bf16.msra.mxu1 %v4840_v22  ;;  %1005 = vmatpush.bf16.msra.mxu3 %v4852_v27  ;;  %v4936_v22 = vor.u32 %v5492_v17, %v4935_v6  ;;  %v4901_v27 = vld [vmem:[%s6476_s29 + $0xdc] sm:$0xf0] }
  0x6f   : > { %976 = vmatpush.bf16.msra.mxu2 %v4848_v26  ;;  %v5483_v26 = vld [vmem:[%s6476_s29 + $0xcc] sm:$0xf] }
  0x70   : > { %v4904_v35 = vor.u32 %v5483_v26, %v4901_v27 }
  0x71   : > { %919 = vmatpush.bf16.msra.mxu0 %v4820_v32 }
  0x72   : > { %5608 = vmatpush.bf16.msra.mxu1 %v4820_v32  ;;  %1006 = vmatpush.bf16.msra.mxu3 %v4832_v40 }
  0x73   : > { %977 = vmatpush.bf16.msra.mxu2 %v4828_v39  ;;  %v4881_v39 = vld [vmem:[%s6476_s29 + $0xb4] sm:$0xf0] }
  0x75   : > { %920 = vmatpush.bf16.msra.mxu0 %v4800_v47 }
  0x76   : > { %5609 = vmatpush.bf16.msra.mxu1 %v4800_v47  ;;  %1007 = vmatpush.bf16.msra.mxu3 %v4812_v54 }
  0x77   : > { %978 = vmatpush.bf16.msra.mxu2 %v4808_v51 }
  0x79   : > { %1029 = vmatpush.bf16.msrb.mxu0 %v4956_v63  ;;  %v4861_v63 = vld [vmem:[%s6476_s29 + $0x8c] sm:$0xf0] }
  0x7a   : > { %942 = vmatpush.bf16.msrb.mxu1 %v4944_v58 }
  0x7d   : > { %1030 = vmatpush.bf16.msrb.mxu0 %v4936_v22 }
  0x7e   : > { %943 = vmatpush.bf16.msrb.mxu1 %v4924_v13  ;;  %v5468_v13 = vld [vmem:[%s6476_s29 + $0x54] sm:$0xf] }
  0x81   : > { %1031 = vmatpush.bf16.msrb.mxu0 %v4916_v36  ;;  %v6759_v36 = vld [vmem:[%s463_s19] ss:$0 sm:$0xff] }
  0x82   : > { %944 = vmatpush.bf16.msrb.mxu1 %v4904_v35 }
  0xcb   : > { %v516_v42 = vpop.xlane.xlu0 %515 }
  0xcc   : > { %v520_v38 = vpop.xlane.xlu1 %519  ;;  %v538_v34 = vmul.f32 %v6615_v31, %v516_v42 }
  0xcd   : > { %v540_v49 = vmul.f32 %v6615_v31, %v520_v38  ;;  %v5478_v38 = vld [vmem:[%s6476_s29 + $0xa4] sm:$0xf] }
  0xce   : > { %v524_v37 = vpop.xlane.xlu2 %523  ;;  %v6629_v50 = vadd.f32 1e-05, %v538_v34  ;;  %v4884_v34 = vor.u32 %v5478_v38, %v4881_v39 }
  0xcf   : > { %v542_v41 = vmul.f32 %v6615_v31, %v524_v37  ;;  %v6639_v60 = vadd.f32 1e-05, %v540_v49  ;;  %v4896_v49 = vor.u32 %v5482_v44, %v4895_v43  ;;  %v5467_v43 = vld [vmem:[%s6476_s29 + $0x48] sm:$0xf0] }
  0xd0   : > { %945 = vmatpush.bf16.msrb.mxu1 %v4884_v34  ;;  %vm560_vm7 = vweird.f32 %v6629_v50  ;;  %v4835_v34 = vld [vmem:[%s6476_s29 + $0x38] sm:$0xf] }
  0xd1   : > { %v6625_v46 = vadd.f32 1e-05, %v542_v41  ;;  %1032 = vmatpush.bf16.msrb.mxu0 %v4896_v49 }
  0xd3   : > { %5859 = vrsqrt.f32 %v6625_v46  ;;  %v518_v2 = vpop.xlane.xlu0 %517  ;;  %vm600_vm1 = vweird.f32 %v6625_v46 }
  0xd4   : > { %5861 = vrsqrt.f32 %v6629_v50  ;;  %v522_v62 = vpop.xlane.xlu1 %521  ;;  %v539_v3 = vmul.f32 %v6615_v31, %v518_v2 }
  0xd5   : > { %v541_v1 = vmul.f32 %v6615_v31, %v522_v62  ;;  %5863 = vrsqrt.f32 %v6639_v60  ;;  %v5473_v62 = vld [vmem:[%s6476_s29 + $0x7c] sm:$0xf]  ;;  %1033 = vmatpush.bf16.msrb.mxu0 %v4876_v29 }
  0xd6   : > { %v526_v61 = vpop.xlane.xlu2 %525  ;;  %v6657_v19 = vadd.f32 1e-05, %v539_v3  ;;  %v4864_v28 = vor.u32 %v5473_v62, %v4861_v63 }
  0xd7   : > { %v543_v0 = vmul.f32 %v6615_v31, %v526_v61  ;;  %v6651_v12 = vadd.f32 1e-05, %v541_v1 }
  0xd8   : > { %vm570_vm11 = vweird.f32 %v6657_v19  ;;  %946 = vmatpush.bf16.msrb.mxu1 %v4864_v28 }
  0xd9   : > { %v6647_v7 = vpop.eup %5859  ;;  %v6649_v11 = vadd.f32 1e-05, %v543_v0  ;;  %vm590_vm15 = vweird.f32 %v6651_v12 }
  0xda   : > { %v595_v18 = vmul.f32 %v6647_v7, %v6625_v46  ;;  %v6659_v23 = vpop.eup %5861  ;;  %vm601_vm2 = vweird.f32 %v6647_v7 }
  0xdb   : > { %5865 = vrsqrt.f32 %v6649_v11  ;;  %v555_v25 = vmul.f32 %v6659_v23, %v6629_v50  ;;  %v6676_v40 = vpop.eup %5863  ;;  %v528_v48 = vpop.xlane.xlu0 %527  ;;  %vm6696_vm3 = vmor %vm600_vm1, %vm601_vm2  ;;  %vm561_vm4 = vweird.f32 %v6659_v23  ;;  %vm610_vm5 = vweird.f32 %v6649_v11 }
  0xdc   : > { %v596_v24 = vmul.f32 %v6647_v7, %v595_v18  ;;  %5867 = vrsqrt.f32 %v6651_v12  ;;  %v530_v33 = vpop.xlane.xlu1 %529  ;;  %v575_v58 = vmul.f32 %v6676_v40, %v6639_v60  ;;  %v544_v46 = vmul.f32 %v6615_v31, %v528_v48  ;;  %vm6727_vm8 = vmor %vm560_vm7, %vm561_vm4 }
  0xdd   : > { %5869 = vrsqrt.f32 %v6657_v19  ;;  %v556_v32 = vmul.f32 %v6659_v23, %v555_v25  ;;  %v545_v37 = vmul.f32 %v6615_v31, %v530_v33  ;;  %v4841_v25 = vld [vmem:[%s6476_s29 + $0x64] sm:$0xf0]  ;;  %vm580_vm1 = vweird.f32 %v6639_v60 }
  0xde   : > { %v597_v30 = vmul.f32 0.5, %v596_v24  ;;  %v576_v17 = vmul.f32 %v6676_v40, %v575_v58  ;;  %v6731_v24 = vadd.f32 1e-05, %v544_v46  ;;  %v5462_v46 = vld [vmem:[%s6476_s29 + $0x20] sm:$0xf0] }
  0xdf   : > { %v557_v42 = vmul.f32 0.5, %v556_v32  ;;  %v6683_v47 = vadd.f32 1e-05, %v545_v37  ;;  %v5472_v32 = vld [vmem:[%s6476_s29 + $0x70] sm:$0xf0] }
  0xe0   : > { %v598_v41 = vsub.f32 1.5, %v597_v30  ;;  %v4855_v30 = vld [vmem:[%s6476_s29 + $0x60] sm:$0xf]  ;;  %v577_v48 = vmul.f32 0.5, %v576_v17 }
  0xe1   : > { %v6681_v45 = vpop.eup %5865  ;;  %v558_v53 = vsub.f32 1.5, %v557_v42  ;;  %5871 = vrsqrt.f32 %v6683_v47  ;;  %v4856_v42 = vor.u32 %v5472_v32, %v4855_v30  ;;  %vm630_vm13 = vweird.f32 %v6683_v47 }
  0xe2   : > { %v6685_v51 = vpop.eup %5867  ;;  %v599_v52 = vmul.f32 %v6647_v7, %v598_v41  ;;  %v605_v54 = vmul.f32 %v6681_v45, %v6649_v11  ;;  %vm611_vm6 = vweird.f32 %v6681_v45  ;;  %5873 = vrsqrt.f32 %v6731_v24 }
  0xe3   : > { %v6690_v55 = vpop.eup %5869  ;;  %v585_v57 = vmul.f32 %v6685_v51, %v6651_v12  ;;  %v559_v1 = vmul.f32 %v6659_v23, %v558_v53  ;;  %vm6741_vm9 = vmor %vm610_vm5, %vm611_vm6  ;;  %v4821_v53 = vld [vmem:[%s6476_s29 + $0x3c] sm:$0xf0]  ;;  %1034 = vmatpush.bf16.msrb.mxu0 %v4856_v42  ;;  %v578_v62 = vsub.f32 1.5, %v577_v48  ;;  %vm591_vm0 = vweird.f32 %v6685_v51  ;;  %v1059_v42 = vld [vmem:[%s9559_s2 + $0x8] sm:$0xff] }
  0xe4   : > { %v606_v59 = vmul.f32 %v6681_v45, %v605_v54  ;;  %v565_v61 = vmul.f32 %v6690_v55, %v6657_v19  ;;  %v603_v0 = vsel %vm6696_vm3, %v6647_v7, %v599_v52  ;;  %vm571_vm10 = vweird.f32 %v6690_v55  ;;  %vm6810_vm4 = vmor %vm590_vm15, %vm591_vm0 }
  0xe5   : > { %v586_v6 = vmul.f32 %v6685_v51, %v585_v57  ;;  %v638_v50 = vmul.f32 %v603_v0, %v6537_v8  ;;  %v563_v33 = vsel %vm6727_vm8, %v6659_v23, %v559_v1  ;;  %v4844_v23 = vor.u32 %v5468_v13, %v4841_v25  ;;  %vm572_vm12 = vmor %vm570_vm11, %vm571_vm10  ;;  %v5458_v1 = vld [vmem:[%s6476_s29 + $0x4] sm:$0xf] }
  0xe6   : > { %v607_v2 = vmul.f32 0.5, %v606_v59  ;;  %v566_v3 = vmul.f32 %v6690_v55, %v565_v61  ;;  %v634_v49 = vmul.f32 %v563_v33, %v6541_v10  ;;  %v4836_v10 = vor.u32 %v5467_v43, %v4835_v34  ;;  %v4815_v61 = vld [vmem:[%s6476_s29 + $0x10] sm:$0xf] }
  0xe7   : > { %v6734_v26 = vpop.eup %5871  ;;  %v587_v37 = vmul.f32 0.5, %v586_v6  ;;  %v649_v44 = vmul.f32 %v6759_v36, %v638_v50  ;;  %947 = vmatpush.bf16.msrb.mxu1 %v4844_v23  ;;  %v4816_v13 = vor.u32 %v5462_v46, %v4815_v61  ;;  %vm581_vm3 = vweird.f32 %v6676_v40  ;;  %v1058_v23 = vld [vmem:[%s9559_s2] sm:$0xff]  ;;  %v1061_v46 = vld [vmem:[%s9559_s2 + $0x18] sm:$0xff] }
  0xe8   : > { %v608_v18 = vsub.f32 1.5, %v607_v2  ;;  %v567_v22 = vmul.f32 0.5, %v566_v3  ;;  %v625_v11 = vmul.f32 %v6734_v26, %v6683_v47  ;;  %vm631_vm14 = vweird.f32 %v6734_v26  ;;  %v4801_v2 = vld [vmem:[%s6476_s29 + $0x14] sm:$0xf0]  ;;  %1035 = vmatpush.bf16.msrb.mxu0 %v4836_v10  ;;  %vm582_vm7 = vmor %vm580_vm1, %vm581_vm3  ;;  %v1068_v10 = vld [vmem:[%s9560_s3 + $0x10] sm:$0xff] }
  0xe9   : > { %v645_v63 = vmul.f32 %v6759_v36, %v634_v49  ;;  %vm6799_vm2 = vmor %vm630_vm13, %vm631_vm14  ;;  %vm620_vm5 = vweird.f32 %v6731_v24 }
  0xea   : > { %v609_v8 = vmul.f32 %v6681_v45, %v608_v18  ;;  %v568_v35 = vsub.f32 1.5, %v567_v22  ;;  %v626_v41 = vmul.f32 %v6734_v26, %v625_v11  ;;  %v4804_v18 = vor.u32 %v5458_v1, %v4801_v2 }
  0xeb   : > { %v579_v22 = vmul.f32 %v6676_v40, %v578_v62 }
  0xec   : > { %v613_v38 = vsel %vm6741_vm9, %v6681_v45, %v609_v8  ;;  %v569_v39 = vmul.f32 %v6690_v55, %v568_v35  ;;  %v5463_v45 = vld [vmem:[%s6476_s29 + $0x2c] sm:$0xf]  ;;  %v627_v56 = vmul.f32 0.5, %v626_v41  ;;  %1036 = vmatpush.bf16.msrb.mxu0 %v4816_v13  ;;  %vm1410_vm9 = vcmask 261120  }
  0xed   : > { %v639_v52 = vmul.f32 %v613_v38, %v6549_v14  ;;  %v588_v14 = vsub.f32 1.5, %v587_v37  ;;  %v4824_v59 = vor.u32 %v5463_v45, %v4821_v53  ;;  %v1066_v37 = vld [vmem:[%s9560_s3] sm:$0xff]  ;;  %v1067_v38 = vld [vmem:[%s9560_s3 + $0x8] sm:$0xff] }
  0xee   : > { %v573_v54 = vsel %vm572_vm12, %v6690_v55, %v569_v39  ;;  %v628_v19 = vsub.f32 1.5, %v627_v56  ;;  %v5874_v55 = vpop.eup %5873 }
  0xef   : > { %v650_v57 = vmul.f32 %v6759_v36, %v639_v52  ;;  %v635_v58 = vmul.f32 %v573_v54, %v6553_v16  ;;  %v615_v4 = vmul.f32 %v5874_v55, %v6731_v24  ;;  %v589_v17 = vmul.f32 %v6685_v51, %v588_v14  ;;  %948 = vmatpush.bf16.msrb.mxu1 %v4824_v59  ;;  %v1060_v14 = vld [vmem:[%s9559_s2 + $0x10] sm:$0xff] }
  0xf0   : > { %v629_v3 = vmul.f32 %v6734_v26, %v628_v19  ;;  %vm621_vm6 = vweird.f32 %v5874_v55  ;;  %v1069_v19 = vld [vmem:[%s9560_s3 + $0x18] sm:$0xff] }
  0xf1   : > { %v646_v16 = vmul.f32 %v6759_v36, %v635_v58  ;;  %v655_v0 = vpack.c.bf16 %v650_v57, %v649_v44  ;;  %v616_v7 = vmul.f32 %v5874_v55, %v615_v4  ;;  %v593_v12 = vsel %vm6810_vm4, %v6685_v51, %v589_v17  ;;  %vm622_vm8 = vmor %vm620_vm5, %vm621_vm6 }
  0xf2   : > { %v633_v25 = vsel %vm6799_vm2, %v6734_v26, %v629_v3  ;;  %v583_v26 = vsel %vm582_vm7, %v6676_v40, %v579_v22  ;;  %v637_v24 = vmul.f32 %v593_v12, %v6551_v15  ;;  %v1070_v12 = vld [vmem:[%s9560_s3 + $0x20] sm:$0xff] }
  0xf3   : > { %v653_v6 = vpack.c.bf16 %v646_v16, %v645_v63  ;;  %931 = vmatmul.bf16.vlgmr.msra.gmra.mxu1 %v655_v0  ;;  %v617_v50 = vmul.f32 0.5, %v616_v7  ;;  %v641_v28 = vmul.f32 %v633_v25, %v6561_v20  ;;  %v636_v32 = vmul.f32 %v583_v26, %v6539_v9  ;;  %v1071_v26 = vld [vmem:[%s9560_s3 + $0x28] sm:$0xff] }
  0xf4   : > { %949 = vmatpush.bf16.msrb.mxu1 %v4804_v18  ;;  %v648_v8 = vmul.f32 %v6759_v36, %v637_v24 }
  0xf5   : > { %921 = vmatmul.bf16.vlgmr.msra.gmra.mxu0 %v653_v6  ;;  %979 = vmatmul.bf16.vlgmr.msra.gmra.mxu2 %v653_v6  ;;  %v618_v27 = vsub.f32 1.5, %v617_v50  ;;  %v652_v60 = vmul.f32 %v6759_v36, %v641_v28  ;;  %v647_v35 = vmul.f32 %v6759_v36, %v636_v32  ;;  %v1062_v28 = vld [vmem:[%s9559_s2 + $0x20] sm:$0xff] }
  0xf6   : > { %1008 = vmatmul.bf16.vlgmr.msra.gmra.mxu3 %v653_v6 }
  0xf7   : > { %v619_v29 = vmul.f32 %v5874_v55, %v618_v27  ;;  %v654_v11 = vpack.c.bf16 %v648_v8, %v647_v35 }
  0xf9   : > { %v623_v30 = vsel %vm622_vm8, %v5874_v55, %v619_v29  ;;  %v1063_v29 = vld [vmem:[%s9559_s2 + $0x28] sm:$0xff] }
  0xfa   : > { %v640_v33 = vmul.f32 %v623_v30, %v6563_v21 }
  0xfc   : > { %v651_v51 = vmul.f32 %v6759_v36, %v640_v33 }
  0xfe   : > { %v656_v20 = vpack.c.bf16 %v652_v60, %v651_v51 }
 0x103   : > { %936 = vmatmul.bf16.gmra.mxu1 %v656_v20 }
 0x105   : > { %926 = vmatmul.bf16.gmra.mxu0 %v654_v11  ;;  %984 = vmatmul.bf16.gmra.mxu2 %v654_v11 }
 0x106   : > { %1013 = vmatmul.bf16.gmra.mxu3 %v654_v11 }
 0x113   : > { %950 = vmatmul.bf16.vlgmr.msrb.gmra.mxu1 %v653_v6 }
 0x115   : > { %989 = vmatmul.bf16.gmra.mxu2 %v655_v0  ;;  %1037 = vmatmul.bf16.vlgmr.msrb.gmra.mxu0 %v653_v6 }
 0x116   : > { %1018 = vmatmul.bf16.gmra.mxu3 %v655_v0 }
 0x123   : > { %955 = vmatmul.bf16.gmra.mxu1 %v654_v11 }
 0x125   : > { %994 = vmatmul.bf16.gmra.mxu2 %v656_v20  ;;  %1042 = vmatmul.bf16.gmra.mxu0 %v654_v11 }
 0x126   : > { %1023 = vmatmul.bf16.gmra.mxu3 %v656_v20 }
 0x133   : > { %960 = vmatmul.bf16.gmra.mxu1 %v655_v0 }
 0x135   : > { %1047 = vmatmul.bf16.gmra.mxu0 %v655_v0 }
 0x143   : > { %965 = vmatmul.bf16.gmra.mxu1 %v656_v20 }
 0x145   : > { %1052 = vmatmul.bf16.gmra.mxu0 %v656_v20 }
 0x170   : > { %v6832_v9 = vpop.f32.mrf.mxu1 }
 0x172   : > { %v922_v36 = vpop.f32.mrf.mxu0 }
 0x173   : > { %v1074_v17 = vmul.f32 %v1058_v23, %v922_v36 }
 0x178   : > { %v980_v15 = vpop.f32.mrf.mxu2  ;;  %v6834_v21 = vpop.f32.mrf.mxu1 }
 0x179   : > { %v1009_v40 = vpop.f32.mrf.mxu3  ;;  %v1098_v39 = vmul.f32 %v1058_v23, %v980_v15 }
 0x17a   : > { %v1106_v41 = vmul.f32 %v1066_v37, %v1009_v40  ;;  %v924_v54 = vpop.f32.mrf.mxu0 }
 0x17b   : > { %v1075_v7 = vmul.f32 %v1059_v42, %v924_v54 }
 0x17c   : > { %v6850_v52 = vadd.f32 %v1106_v41, %v1098_v39 }
 0x180   : > { %v982_v34 = vpop.f32.mrf.mxu2  ;;  %v6848_v43 = vpop.f32.mrf.mxu1 }
 0x181   : > { %v1099_v44 = vmul.f32 %v1059_v42, %v982_v34  ;;  %v1011_v48 = vpop.f32.mrf.mxu3 }
 0x182   : > { %v1107_v49 = vmul.f32 %v1067_v38, %v1011_v48  ;;  %v927_v63 = vpop.f32.mrf.mxu0  ;;  %v1072_v48 = vld [vmem:[%s9560_s3 + $0x30] sm:$0xff] }
 0x184   : > { %v6852_v45 = vadd.f32 %v1107_v49, %v1099_v44 }
 0x186   : > { %v1298_v53 = vpack.c.bf16 %v6852_v45, %v6850_v52  ;;  %v5705_v54 = vpack.i.bf16 %v6852_v45, %v6850_v52 }
 0x188   : > { %v985_v56 = vpop.f32.mrf.mxu2  ;;  %v6856_v57 = vpop.f32.mrf.mxu1 }
 0x189   : > { %v1014_v58 = vpop.f32.mrf.mxu3  ;;  %v1100_v59 = vmul.f32 %v1060_v14, %v985_v56  ;;  %v1064_v56 = vld [vmem:[%s9559_s2 + $0x30] sm:$0xff] }
 0x18a   : > { %v1108_v61 = vmul.f32 %v1068_v10, %v1014_v58  ;;  %v929_v47 = vpop.f32.mrf.mxu0 }
 0x18b   : > { %v1077_v39 = vmul.f32 %v1061_v46, %v929_v47 }
 0x18c   : > { %v6870_v2 = vadd.f32 %v1108_v61, %v1100_v59 }
 0x190   : > { %v987_v55 = vpop.f32.mrf.mxu2  ;;  %v951_v62 = vpop.f32.mrf.mxu1 }
 0x191   : > { %v1101_v16 = vmul.f32 %v1061_v46, %v987_v55  ;;  %v1016_v0 = vpop.f32.mrf.mxu3  ;;  %v1082_v5 = vmul.f32 %v1066_v37, %v951_v62 }
 0x192   : > { %v1109_v1 = vmul.f32 %v1069_v19, %v1016_v0  ;;  %v6900_v11 = vpop.f32.mrf.mxu0 }
 0x193   : > { %v6876_v25 = vadd.f32 %v1082_v5, %v1074_v17  ;;  %v1078_v17 = vmul.f32 %v1062_v28, %v6832_v9 }
 0x194   : > { %v6872_v3 = vadd.f32 %v1109_v1, %v1101_v16 }
 0x196   : > { %v1299_v4 = vpack.c.bf16 %v6872_v3, %v6870_v2 }
 0x198   : > { %v990_v6 = vpop.f32.mrf.mxu2  ;;  %v953_v13 = vpop.f32.mrf.mxu1 }
 0x199   : > { %v1019_v18 = vpop.f32.mrf.mxu3  ;;  %v1083_v22 = vmul.f32 %v1067_v38, %v953_v13  ;;  %v1102_v24 = vmul.f32 %v1062_v28, %v990_v6  ;;  %v1076_v38 = vmul.f32 %v1060_v14, %v927_v63  ;;  %v1065_v14 = vld [vmem:[%s9559_s2 + $0x38] sm:$0xff] }
 0x19a   : > { %v1110_v30 = vmul.f32 %v1070_v12, %v1019_v18  ;;  %v6917_v58 = vpop.f32.mrf.mxu0 }
 0x19b   : > { %v6878_v50 = vadd.f32 %v1083_v22, %v1075_v7  ;;  %v1079_v7 = vmul.f32 %v1063_v29, %v6834_v21 }
 0x19c   : > { %v6896_v35 = vadd.f32 %v1110_v30, %v1102_v24 }
 0x19d   : > { %v6885_v27 = vpack.c.bf16 %v6878_v50, %v6876_v25 }
 0x1a0   : > { %v992_v32 = vpop.f32.mrf.mxu2  ;;  %v956_v60 = vpop.f32.mrf.mxu1 }
 0x1a1   : > { %v1103_v33 = vmul.f32 %v1063_v29, %v992_v32  ;;  %v1021_v8 = vpop.f32.mrf.mxu3  ;;  %v1084_v36 = vmul.f32 %v1068_v10, %v956_v60  ;;  %v1073_v10 = vld [vmem:[%s9560_s3 + $0x38] sm:$0xff]  ;;  %v5735_v32 = vpack.i.bf16 %v6878_v50, %v6876_v25  ;;  %v1080_v29 = vmul.f32 %v1064_v56, %v6848_v43 }
 0x1a2   : > { %v1111_v51 = vmul.f32 %v1071_v26, %v1021_v8  ;;  %v6939_v22 = vpop.f32.mrf.mxu0  ;;  %v1081_v60 = vmul.f32 %v1065_v14, %v6856_v57 }
 0x1a3   : > { %v1092_v34 = vadd.f32 %v1084_v36, %v1076_v38 }
 0x1a4   : > { %v6898_v20 = vadd.f32 %v1111_v51, %v1103_v33 }
 0x1a6   : > { %v5685_v15 = vpack.i.bf16 %v6898_v20, %v6896_v35  ;;  %v1300_v40 = vpack.c.bf16 %v6898_v20, %v6896_v35  ;;  %v1463_v20 = vsel %vm1410_vm9, %v1299_v4, 0 }
 0x1a8   : > { %5686 = vrot.lane.b32.xlu1 %v5685_v15, %s6324_s24  ;;  %v995_v37 = vpop.f32.mrf.mxu2  ;;  %v958_v23 = vpop.f32.mrf.mxu1 }
 0x1a9   : > { %v1024_v41 = vpop.f32.mrf.mxu3  ;;  %v1085_v42 = vmul.f32 %v1069_v19, %v958_v23  ;;  %v1104_v19 = vmul.f32 %v1064_v56, %v995_v37 }
 0x1aa   : > { %v1112_v59 = vmul.f32 %v1072_v48, %v1024_v41  ;;  %v6950_v21 = vpop.f32.mrf.mxu0 }
 0x1ab   : > { %v1093_v44 = vadd.f32 %v1085_v42, %v1077_v39  ;;  %v6985_v39 = vpack.i.bf16 %v6950_v21, %v6939_v22  ;;  %v6998_v42 = vpack.i.bf16 %v6917_v58, %v6900_v11 }
 0x1ac   : > { %v6926_v16 = vadd.f32 %v1112_v59, %v1104_v19 }
 0x1ad   : > { %v6910_v49 = vpack.c.bf16 %v1093_v44, %v1092_v34  ;;  %v5740_v43 = vpack.i.bf16 %v1093_v44, %v1092_v34 }
 0x1b0   : > { %5706 = vrot.lane.b32.xlu1 %v5705_v54, %s6324_s24  ;;  %v997_v61 = vpop.f32.mrf.mxu2  ;;  %v961_v46 = vpop.f32.mrf.mxu1 }
 0x1b1   : > { %v1105_v55 = vmul.f32 %v1065_v14, %v997_v61  ;;  %v1026_v62 = vpop.f32.mrf.mxu3  ;;  %v1086_v6 = vmul.f32 %v1070_v12, %v961_v46  ;;  %v5695_v12 = vpack.i.bf16 %v6872_v3, %v6870_v2  ;;  %v1460_v2 = vsel %vm1410_vm9, %v1298_v53, 0 }
 0x1b2   : > { %v1113_v63 = vmul.f32 %v1073_v10, %v1026_v62  ;;  %v6958_v36 = vpop.f32.mrf.mxu0  ;;  %v1395_v53 = vpack.c.bf16 %v6950_v21, %v6939_v22 }
 0x1b3   : > { %v1094_v47 = vadd.f32 %v1086_v6, %v1078_v17 }
 0x1b4   : > { %v6928_v0 = vadd.f32 %v1113_v63, %v1105_v55 }
 0x1b6   : > { %v5680_v1 = vpack.i.bf16 %v6928_v0, %v6926_v16  ;;  %v1301_v5 = vpack.c.bf16 %v6928_v0, %v6926_v16  ;;  %v1466_v16 = vsel %vm1410_vm9, %v1300_v40, 0 }
 0x1b8   : > { %5721 = vrot.lane.b32.xlu1 %v5685_v15, %s6325_s30  ;;  %5681 = vrot.lane.b32.xlu0 %v5680_v1, %s6326_s28  ;;  %v963_v13 = vpop.f32.mrf.mxu1 }
 0x1b9   : > { %5676 = vrot.lane.b32.xlu2 %v5680_v1, %s6324_s24  ;;  %v1087_v18 = vmul.f32 %v1071_v26, %v963_v13 }
 0x1ba   : > { %v6964_v57 = vpop.f32.mrf.mxu0 }
 0x1bb   : > { %v1095_v24 = vadd.f32 %v1087_v18, %v1079_v7  ;;  %v6975_v23 = vpack.i.bf16 %v6964_v57, %v6958_v36  ;;  %v1396_v45 = vpack.c.bf16 %v6964_v57, %v6958_v36 }
 0x1bd   : > { %v6941_v30 = vpack.c.bf16 %v1095_v24, %v1094_v47 }
 0x1c0   : > { %5696 = vrot.lane.b32.xlu0 %v5695_v12, %s6324_s24  ;;  %5736 = vrot.lane.b32.xlu1 %v5735_v32, %s6326_s28  ;;  %v966_v9 = vpop.f32.mrf.mxu1 }
 0x1c1   : > { %5691 = vrot.lane.b32.xlu2 %v5685_v15, %s6326_s28  ;;  %v1088_v28 = vmul.f32 %v1072_v48, %v966_v9  ;;  %v5765_v15 = vpack.i.bf16 %v1095_v24, %v1094_v47 }
 0x1c2   : > { %v6971_v37 = vpop.f32.mrf.mxu0 }
 0x1c3   : > { %v1096_v50 = vadd.f32 %v1088_v28, %v1080_v29 }
 0x1c8   : > { %5711 = vrot.lane.b32.xlu0 %v5705_v54, %s6326_s28  ;;  %v968_v26 = vpop.f32.mrf.mxu1 }
 0x1c9   : > { %5701 = vrot.lane.b32.xlu2 %v5695_v12, %s6326_s28  ;;  %v1089_v25 = vmul.f32 %v1073_v10, %v968_v26 }
 0x1ca   : > { %v6981_v38 = vpop.f32.mrf.mxu0 }
 0x1cb   : > { %v1097_v33 = vadd.f32 %v1089_v25, %v1081_v60  ;;  %v6989_v41 = vpack.i.bf16 %v6981_v38, %v6971_v37  ;;  %v1397_v52 = vpack.c.bf16 %v6981_v38, %v6971_v37 }
 0x1cd   : > { %v5760_v8 = vpack.i.bf16 %v1097_v33, %v1096_v50  ;;  %v6956_v51 = vpack.c.bf16 %v1097_v33, %v1096_v50 }
 0x1cf   : > { %5761 = vrot.lane.b32.xlu1 %v5760_v8, %s6326_s28 }
 0x1d0   : > { %5726 = vrot.lane.b32.xlu0 %v5695_v12, %s6325_s30 }
 0x1d1   : > { %5716 = vrot.lane.b32.xlu2 %v5680_v1, %s6325_s30 }
 0x1d7   : > { %5766 = vrot.lane.b32.xlu1 %v5765_v15, %s6325_s30 }
 0x1d8   : > { %5741 = vrot.lane.b32.xlu0 %v5740_v43, %s6326_s28 }
 0x1d9   : > { %5731 = vrot.lane.b32.xlu2 %v5705_v54, %s6325_s30 }
 0x1df   : > { %5776 = vrot.lane.b32.xlu1 %v5740_v43, %s6324_s24 }
 0x1e0   : > { %5746 = vrot.lane.b32.xlu0 %v5735_v32, %s6325_s30 }
 0x1e1   : > { %5751 = vrot.lane.b32.xlu2 %v5740_v43, %s6325_s30 }
 0x1e7   : > { %5786 = vrot.lane.b32.xlu1 %v6975_v23, %s6326_s28 }
 0x1e8   : > { %5771 = vrot.lane.b32.xlu0 %v5735_v32, %s6324_s24 }
 0x1e9   : > { %5756 = vrot.lane.b32.xlu2 %v5765_v15, %s6326_s28 }
 0x1ef   : > { %5801 = vrot.lane.b32.xlu1 %v6985_v39, %s6326_s28 }
 0x1f0   : > { %5791 = vrot.lane.b32.xlu0 %v5765_v15, %s6324_s24 }
 0x1f1   : > { %5781 = vrot.lane.b32.xlu2 %v6989_v41, %s6326_s28 }
 0x1f7   : > { %5811 = vrot.lane.b32.xlu1 %v6998_v42, %s6326_s28 }
 0x1f8   : > { %5826 = vrot.lane.b32.xlu0 %v5760_v8, %s6325_s30 }
 0x1f9   : > { %5796 = vrot.lane.b32.xlu2 %v6989_v41, %s6324_s24 }
 0x201   : > { %5806 = vrot.lane.b32.xlu2 %v6975_v23, %s6324_s24 }
 0x209   : > { %5816 = vrot.lane.b32.xlu2 %v6985_v39, %s6324_s24 }
 0x211   : > { %5821 = vrot.lane.b32.xlu2 %v6998_v42, %s6324_s24 }
 0x213   : > { %v5677_v34 = vpop.permute.xlu2 %5676 }
 0x214   : > { %v5679_v44 = vunpack.i.h.bf16 %v5677_v34  ;;  %v5678_v48 = vunpack.i.l.bf16 %v5677_v34 }
 0x216   : > { %v1313_v54 = vpack.c.bf16 %v5679_v44, %v5678_v48 }
 0x218   : > { %v1505_v56 = vsel %vm1410_vm9, %v1313_v54, 0 }
 0x219   : > { %1596 = vmatpush.bf16.xpose.msrb.mxu2 %v1505_v56  ;;  %5831 = vrot.lane.b32.xlu2 %v5760_v8, %s6324_s24 }
 0x21a   : > { %v5687_v10 = vpop.permute.xlu1 %5686 }
 0x21b   : > { %v5689_v14 = vunpack.i.h.bf16 %v5687_v10  ;;  %v5688_v19 = vunpack.i.l.bf16 %v5687_v10  ;;  %v5692_v59 = vpop.permute.xlu2 %5691 }
 0x21c   : > { %v5694_v7 = vunpack.i.h.bf16 %v5692_v59  ;;  %v5693_v18 = vunpack.i.l.bf16 %v5692_v59 }
 0x21d   : > { %v1312_v61 = vpack.c.bf16 %v5689_v14, %v5688_v19 }
 0x21e   : > { %v1304_v26 = vpack.c.bf16 %v5694_v7, %v5693_v18 }
 0x21f   : > { %v1502_v46 = vsel %vm1410_vm9, %v1312_v61, 0 }
 0x220   : > { %v1478_v8 = vsel %vm1410_vm9, %v1304_v26, 0 }
 0x221   : > { %1597 = vmatpush.bf16.xpose.msrb.mxu2 %v1502_v46 }
 0x222   : > { %v5707_v62 = vpop.permute.xlu1 %5706 }
 0x223   : > { %v5702_v55 = vpop.permute.xlu2 %5701  ;;  %v5709_v60 = vunpack.i.h.bf16 %v5707_v62  ;;  %v5708_v25 = vunpack.i.l.bf16 %v5707_v62 }
 0x224   : > { %v5704_v50 = vunpack.i.h.bf16 %v5702_v55  ;;  %v5703_v33 = vunpack.i.l.bf16 %v5702_v55 }
 0x225   : > { %v1310_v44 = vpack.c.bf16 %v5709_v60, %v5708_v25 }
 0x226   : > { %v1303_v34 = vpack.c.bf16 %v5704_v50, %v5703_v33 }
 0x227   : > { %v1496_v10 = vsel %vm1410_vm9, %v1310_v44, 0 }
 0x228   : > { %v1475_v56 = vsel %vm1410_vm9, %v1303_v34, 0 }
 0x22a   : > { %v5682_v63 = vpop.permute.xlu0 %5681  ;;  %v5722_v47 = vpop.permute.xlu1 %5721 }
 0x22b   : > { %v5684_v1 = vunpack.i.h.bf16 %v5682_v63  ;;  %v5683_v6 = vunpack.i.l.bf16 %v5682_v63  ;;  %v5717_v13 = vpop.permute.xlu2 %5716  ;;  %v5723_v7 = vunpack.i.l.bf16 %v5722_v47 }
 0x22c   : > { %v5719_v14 = vunpack.i.h.bf16 %v5717_v13  ;;  %v5718_v19 = vunpack.i.l.bf16 %v5717_v13 }
 0x22d   : > { %v1305_v17 = vpack.c.bf16 %v5684_v1, %v5683_v6 }
 0x22e   : > { %v1309_v63 = vpack.c.bf16 %v5719_v14, %v5718_v19 }
 0x22f   : > { %v1481_v24 = vsel %vm1410_vm9, %v1305_v17, 0  ;;  %v5724_v17 = vunpack.i.h.bf16 %v5722_v47 }
 0x230   : > { %1507 = vmatpush.bf16.xpose.msra.mxu1 %v1481_v24  ;;  %v1493_v6 = vsel %vm1410_vm9, %v1309_v63, 0 }
 0x232   : > { %v5697_v12 = vpop.permute.xlu0 %5696  ;;  %v7019_v43 = vpop.permute.xlu1 %5736 }
 0x233   : > { %v5699_v32 = vunpack.i.h.bf16 %v5697_v12  ;;  %v5698_v9 = vunpack.i.l.bf16 %v5697_v12  ;;  %v7015_v28 = vpop.permute.xlu2 %5731  ;;  %v5739_v22 = vunpack.i.h.bf16 %v7019_v43 }
 0x234   : > { %v5734_v0 = vunpack.i.h.bf16 %v7015_v28 }
 0x235   : > { %v1311_v29 = vpack.c.bf16 %v5699_v32, %v5698_v9  ;;  %v1308_v32 = vpack.c.bf16 %v5724_v17, %v5723_v7 }
 0x237   : > { %v1499_v15 = vsel %vm1410_vm9, %v1311_v29, 0  ;;  %v1469_v29 = vsel %vm1410_vm9, %v1301_v5, 0  ;;  %v1490_v47 = vsel %vm1410_vm9, %v1308_v32, 0  ;;  %v5733_v5 = vunpack.i.l.bf16 %v7015_v28 }
 0x238   : > { %1508 = vmatpush.bf16.xpose.msra.mxu1 %v1478_v8  ;;  %1598 = vmatpush.bf16.xpose.msrb.mxu2 %v1499_v15 }
 0x23a   : > { %v5712_v54 = vpop.permute.xlu0 %5711 }
 0x23b   : > { %v7021_v48 = vpop.permute.xlu2 %5751  ;;  %v5714_v59 = vunpack.i.h.bf16 %v5712_v54  ;;  %v5713_v61 = vunpack.i.l.bf16 %v5712_v54 }
 0x23d   : > { %v1302_v62 = vpack.c.bf16 %v5714_v59, %v5713_v61 }
 0x23f   : > { %v1472_v1 = vsel %vm1410_vm9, %v1302_v62, 0  ;;  %v1306_v62 = vpack.c.bf16 %v5734_v0, %v5733_v5 }
 0x240   : > { %1509 = vmatpush.bf16.xpose.msra.mxu1 %v1475_v56  ;;  %1599 = vmatpush.bf16.xpose.msrb.mxu2 %v1496_v10 }
 0x241   : > { %v7025_v46 = vpop.permute.xlu1 %5761  ;;  %v1484_v40 = vsel %vm1410_vm9, %v1306_v62, 0 }
 0x242   : > { %v5727_v9 = vpop.permute.xlu0 %5726  ;;  %v5764_v38 = vunpack.i.h.bf16 %v7025_v46 }
 0x243   : > { %v7027_v55 = vpop.permute.xlu2 %5756  ;;  %v5729_v60 = vunpack.i.h.bf16 %v5727_v9  ;;  %v5728_v25 = vunpack.i.l.bf16 %v5727_v9 }
 0x245   : > { %v1307_v34 = vpack.c.bf16 %v5729_v60, %v5728_v25 }
 0x247   : > { %v1487_v54 = vsel %vm1410_vm9, %v1307_v34, 0 }
 0x248   : > { %1510 = vmatpush.bf16.xpose.msra.mxu1 %v1472_v1  ;;  %1600 = vmatpush.bf16.xpose.msrb.mxu2 %v1493_v6 }
 0x249   : > { %v7031_v18 = vpop.permute.xlu1 %5766 }
 0x24b   : > { %v5782_v13 = vpop.permute.xlu2 %5781 }
 0x24c   : > { %v5784_v24 = vunpack.i.h.bf16 %v5782_v13  ;;  %v5783_v12 = vunpack.i.l.bf16 %v5782_v13 }
 0x24e   : > { %v1401_v26 = vpack.c.bf16 %v5784_v24, %v5783_v12 }
 0x250   : > { %2389 = vmatpush.bf16.msrb.mxu3 %v1401_v26  ;;  %1511 = vmatpush.bf16.xpose.msra.mxu1 %v1469_v29 }
 0x251   : > { %1601 = vmatpush.bf16.xpose.msrb.mxu2 %v1490_v47  ;;  %v7038_v50 = vpop.permute.xlu1 %5776 }
 0x253   : > { %v5797_v33 = vpop.permute.xlu2 %5796 }
 0x254   : > { %v5799_v8 = vunpack.i.h.bf16 %v5797_v33  ;;  %v5798_v15 = vunpack.i.l.bf16 %v5797_v33 }
 0x256   : > { %v1409_v44 = vpack.c.bf16 %v5799_v8, %v5798_v15 }
 0x258   : > { %2478 = vmatpush.bf16.msra.mxu0 %v1409_v44  ;;  %1512 = vmatpush.bf16.xpose.msra.mxu1 %v1466_v16  ;;  %v1750_v16 = vld [vmem:[%s9558_s1 + $0x8] sm:$0xff] }
 0x259   : > { %1602 = vmatpush.bf16.xpose.msrb.mxu2 %v1487_v54  ;;  %v5787_v56 = vpop.permute.xlu1 %5786 }
 0x25a   : > { %v5789_v10 = vunpack.i.h.bf16 %v5787_v56  ;;  %v5788_v14 = vunpack.i.l.bf16 %v5787_v56 }
 0x25b   : > { %v5807_v19 = vpop.permute.xlu2 %5806 }
 0x25c   : > { %v5809_v59 = vunpack.i.h.bf16 %v5807_v19  ;;  %v5808_v61 = vunpack.i.l.bf16 %v5807_v19  ;;  %v1400_v63 = vpack.c.bf16 %v5789_v10, %v5788_v14  ;;  %v5754_v10 = vunpack.i.h.bf16 %v7021_v48 }
 0x25d   : > { %v5753_v14 = vunpack.i.l.bf16 %v7021_v48 }
 0x25e   : > { %v1408_v35 = vpack.c.bf16 %v5809_v59, %v5808_v61  ;;  %2390 = vmatpush.bf16.msrb.mxu3 %v1400_v63  ;;  %v1751_v63 = vld [vmem:[%s9558_s1 + $0x10] sm:$0xff] }
 0x260   : > { %2479 = vmatpush.bf16.msra.mxu0 %v1408_v35  ;;  %1513 = vmatpush.bf16.xpose.msra.mxu1 %v1463_v20  ;;  %v1211_v20 = vpack.c.bf16 %v5754_v10, %v5753_v14 }
 0x261   : > { %1603 = vmatpush.bf16.xpose.msrb.mxu2 %v1484_v40  ;;  %v5802_v28 = vpop.permute.xlu1 %5801 }
 0x262   : > { %v5804_v1 = vunpack.i.h.bf16 %v5802_v28  ;;  %v5803_v6 = vunpack.i.l.bf16 %v5802_v28 }
 0x263   : > { %v5817_v17 = vpop.permute.xlu2 %5816 }
 0x264   : > { %v5819_v7 = vunpack.i.h.bf16 %v5817_v17  ;;  %v5818_v13 = vunpack.i.l.bf16 %v5817_v17  ;;  %v1399_v24 = vpack.c.bf16 %v5804_v1, %v5803_v6 }
 0x266   : > { %v1407_v12 = vpack.c.bf16 %v5819_v7, %v5818_v13  ;;  %2391 = vmatpush.bf16.msrb.mxu3 %v1399_v24  ;;  %v1754_v13 = vld [vmem:[%s9558_s1 + $0x28] sm:$0xff] }
 0x268   : > { %4973 = vmatmul.msk.bf16.vlgmr.msrb.gmra.mxu2 %vm1410_vm9, %v6885_v27  ;;  %2480 = vmatpush.bf16.msra.mxu0 %v1407_v12 }
 0x269   : > { %5610 = vmatpush.bf16.msra.mxu2 %v1409_v44  ;;  %1514 = vmatpush.bf16.xpose.msra.mxu1 %v1460_v2  ;;  %v5812_v3 = vpop.permute.xlu1 %5811 }
 0x26a   : > { %v5814_v4 = vunpack.i.h.bf16 %v5812_v3  ;;  %v5813_v32 = vunpack.i.l.bf16 %v5812_v3 }
 0x26b   : > { %v5822_v9 = vpop.permute.xlu2 %5821 }
 0x26c   : > { %v5824_v26 = vunpack.i.h.bf16 %v5822_v9  ;;  %v5823_v29 = vunpack.i.l.bf16 %v5822_v9  ;;  %v1398_v60 = vpack.c.bf16 %v5814_v4, %v5813_v32  ;;  %v5769_v32 = vunpack.i.h.bf16 %v7031_v18 }
 0x26d   : > { %5611 = vmatpush.bf16.msra.mxu2 %v1408_v35  ;;  %v1752_v35 = vld [vmem:[%s9558_s1 + $0x18] sm:$0xff]  ;;  %v5768_v9 = vunpack.i.l.bf16 %v7031_v18 }
 0x26e   : > { %v1406_v25 = vpack.c.bf16 %v5824_v26, %v5823_v29  ;;  %2392 = vmatpush.bf16.msrb.mxu3 %v1398_v60 }
 0x270   : > { %4957 = vmatmul.msk.bf16.vlgmr.msra.gmra.mxu1 %vm1410_vm9, %v6885_v27  ;;  %2481 = vmatpush.bf16.msra.mxu0 %v1406_v25  ;;  %v1394_v27 = vpack.c.bf16 %v6917_v58, %v6900_v11  ;;  %v5738_v11 = vunpack.i.l.bf16 %v7019_v43  ;;  %v5763_v43 = vunpack.i.l.bf16 %v7025_v46  ;;  %v1749_v46 = vld [vmem:[%s9558_s1] sm:$0xff] }
 0x271   : > { %5612 = vmatpush.bf16.msra.mxu2 %v1407_v12  ;;  %v1753_v12 = vld [vmem:[%s9558_s1 + $0x20] sm:$0xff] }
 0x272   : > { %2393 = vmatpush.bf16.msrb.mxu3 %v1397_v52  ;;  %v1206_v58 = vpack.c.bf16 %v5739_v22, %v5738_v11  ;;  %v1209_v47 = vpack.c.bf16 %v5764_v38, %v5763_v43 }
 0x275   : > { %5613 = vmatpush.bf16.msra.mxu2 %v1406_v25 }
 0x276   : > { %2394 = vmatpush.bf16.msrb.mxu3 %v1396_v45  ;;  %v1755_v45 = vld [vmem:[%s9558_s1 + $0x30] sm:$0xff] }
 0x278   : > { %4974 = vmatmul.msk.bf16.gmra.mxu2 %vm1410_vm9, %v6910_v49 }
 0x27a   : > { %2395 = vmatpush.bf16.msrb.mxu3 %v1395_v53  ;;  %v1756_v53 = vld [vmem:[%s9558_s1 + $0x38] sm:$0xff] }
 0x27e   : > { %2396 = vmatpush.bf16.msrb.mxu3 %v1394_v27  ;;  %v1212_v27 = vpack.c.bf16 %v5769_v32, %v5768_v9  ;;  %v1764_v32 = vld [vmem:[%s9558_s1 + $0x78] sm:$0xff] }
 0x280   : > { %4958 = vmatmul.msk.bf16.gmra.mxu1 %vm1410_vm9, %v6910_v49  ;;  %v5742_v49 = vpop.permute.xlu0 %5741 }
 0x281   : > { %v5744_v21 = vunpack.i.h.bf16 %v5742_v49  ;;  %v5743_v36 = vunpack.i.l.bf16 %v5742_v49 }
 0x283   : > { %v1207_v57 = vpack.c.bf16 %v5744_v21, %v5743_v36  ;;  %v1758_v36 = vld [vmem:[%s9558_s1 + $0x48] sm:$0xff] }
 0x288   : > { %4975 = vmatmul.msk.bf16.gmra.mxu2 %vm1410_vm9, %v6941_v30  ;;  %v5747_v33 = vpop.permute.xlu0 %5746 }
 0x289   : > { %v5749_v8 = vunpack.i.h.bf16 %v5747_v33  ;;  %v5748_v15 = vunpack.i.l.bf16 %v5747_v33 }
 0x28b   : > { %v1210_v34 = vpack.c.bf16 %v5749_v8, %v5748_v15 }
 0x290   : > { %4959 = vmatmul.msk.bf16.gmra.mxu1 %vm1410_vm9, %v6941_v30  ;;  %v5759_v30 = vunpack.i.h.bf16 %v7027_v55  ;;  %v7123_v6 = vpop.permute.xlu0 %5771 }
 0x298   : > { %4976 = vmatmul.msk.bf16.gmra.mxu2 %vm1410_vm9, %v6956_v51  ;;  %v7140_v25 = vpop.permute.xlu0 %5791 }
 0x2a0   : > { %4960 = vmatmul.msk.bf16.gmra.mxu1 %vm1410_vm9, %v6956_v51  ;;  %v5758_v51 = vunpack.i.l.bf16 %v7027_v55 }
 0x2a2   : > { %v1208_v37 = vpack.c.bf16 %v5759_v30, %v5758_v51  ;;  %v1757_v30 = vld [vmem:[%s9558_s1 + $0x40] sm:$0xff] }
 0x2a8   : > { %4977 = vmatmul.msk.bf16.gmra.mxu2 %vm1410_vm9, %v1206_v58 }
 0x2b0   : > { %4961 = vmatmul.msk.bf16.gmra.mxu1 %vm1410_vm9, %v1206_v58 }
 0x2b8   : > { %4978 = vmatmul.msk.bf16.gmra.mxu2 %vm1410_vm9, %v1207_v57 }
 0x2c0   : > { %4962 = vmatmul.msk.bf16.gmra.mxu1 %vm1410_vm9, %v1207_v57 }
 0x2c8   : > { %4979 = vmatmul.msk.bf16.gmra.mxu2 %vm1410_vm9, %v1208_v37 }
 0x2d0   : > { %4963 = vmatmul.msk.bf16.gmra.mxu1 %vm1410_vm9, %v1208_v37  ;;  %v5827_v37 = vpop.permute.xlu0 %5826 }
 0x2d1   : > { %v5828_v33 = vunpack.i.l.bf16 %v5827_v37 }
 0x2d8   : > { %4980 = vmatmul.msk.bf16.gmra.mxu2 %vm1410_vm9, %v1209_v47 }
 0x2e0   : > { %4964 = vmatmul.msk.bf16.gmra.mxu1 %vm1410_vm9, %v1209_v47  ;;  %v5829_v47 = vunpack.i.h.bf16 %v5827_v37 }
 0x2e8   : > { %4981 = vmatmul.msk.bf16.gmra.mxu2 %vm1410_vm9, %v1210_v34 }
 0x2eb   : > { %v1605_v55 = vpop.f32.mrf.mxu2 }
 0x2ec   : > { %v1686_v44 = vmul.f32 0.17677669, %v1605_v55 }
 0x2ed   : > { %v1516_v0 = vpop.f32.mrf.mxu1 }
 0x2ee   : > { %v1685_v5 = vmul.f32 0.17677669, %v1516_v0  ;;  %v7101_v54 = vadd.f32 %v1750_v16, %v1686_v44  ;;  %v1759_v44 = vld [vmem:[%s9558_s1 + $0x50] sm:$0xff]  ;;  %v1760_v16 = vld [vmem:[%s9558_s1 + $0x58] sm:$0xff]  ;;  %v1213_v0 = vpack.c.bf16 %v5829_v47, %v5828_v33  ;;  %v1766_v47 = vld [vmem:[%s9558_s1 + $0x88] sm:$0xff] }
 0x2f0   : > { %v7103_v56 = vadd.f32 %v1749_v46, %v1685_v5  ;;  %4965 = vmatmul.msk.bf16.gmra.mxu1 %vm1410_vm9, %v1210_v34 }
 0x2f2   : > { %v1877_v19 = vmax.f32 %v7103_v56, %v7101_v54 }
 0x2f3   : > { %v1607_v59 = vpop.f32.mrf.mxu2 }
 0x2f4   : > { %v1688_v61 = vmul.f32 0.17677669, %v1607_v59  ;;  %1878 = vmax.xlane.f32.xlu2 %v1877_v19 }
 0x2f5   : > { %v1518_v62 = vpop.f32.mrf.mxu1 }
 0x2f6   : > { %v1687_v40 = vmul.f32 0.17677669, %v1518_v62  ;;  %v7119_v28 = vadd.f32 %v1752_v35, %v1688_v61  ;;  %v1762_v61 = vld [vmem:[%s9558_s1 + $0x68] sm:$0xff] }
 0x2f8   : > { %4982 = vmatmul.msk.bf16.gmra.mxu2 %vm1410_vm9, %v1211_v20  ;;  %v7117_v48 = vadd.f32 %v1751_v63, %v1687_v40  ;;  %v1761_v63 = vld [vmem:[%s9558_s1 + $0x60] sm:$0xff] }
 0x2fa   : > { %v1880_v1 = vmax.f32 %v7117_v48, %v7119_v28 }
 0x2fb   : > { %v1610_v17 = vpop.f32.mrf.mxu2 }
 0x2fc   : > { %v1690_v7 = vmul.f32 0.17677669, %v1610_v17  ;;  %1881 = vmax.xlane.f32.xlu1 %v1880_v1  ;;  %v5774_v1 = vunpack.i.h.bf16 %v7123_v6  ;;  %v5773_v17 = vunpack.i.l.bf16 %v7123_v6 }
 0x2fd   : > { %v1521_v24 = vpop.f32.mrf.mxu1 }
 0x2fe   : > { %v1689_v2 = vmul.f32 0.17677669, %v1521_v24  ;;  %v7131_v3 = vadd.f32 %v1754_v13, %v1690_v7  ;;  %v1214_v9 = vpack.c.bf16 %v5774_v1, %v5773_v17 }
 0x300   : > { %v7133_v4 = vadd.f32 %v1753_v12, %v1689_v2  ;;  %4966 = vmatmul.msk.bf16.gmra.mxu1 %vm1410_vm9, %v1211_v20  ;;  %v1763_v2 = vld [vmem:[%s9558_s1 + $0x70] sm:$0xff] }
 0x302   : > { %v1883_v26 = vmax.f32 %v7133_v4, %v7131_v3 }
 0x303   : > { %v1612_v29 = vpop.f32.mrf.mxu2 }
 0x304   : > { %v1692_v60 = vmul.f32 0.17677669, %v1612_v29  ;;  %1884 = vmax.xlane.f32.xlu0 %v1883_v26 }
 0x305   : > { %v1523_v52 = vpop.f32.mrf.mxu1 }
 0x306   : > { %v1691_v22 = vmul.f32 0.17677669, %v1523_v52  ;;  %v7151_v11 = vadd.f32 %v1756_v53, %v1692_v60  ;;  %v5779_v52 = vunpack.i.h.bf16 %v7038_v50 }
 0x308   : > { %4983 = vmatmul.msk.bf16.gmra.mxu2 %vm1410_vm9, %v1212_v27  ;;  %v7149_v18 = vadd.f32 %v1755_v45, %v1691_v22  ;;  %v5778_v45 = vunpack.i.l.bf16 %v7038_v50  ;;  %v5793_v22 = vunpack.i.l.bf16 %v7140_v25 }
 0x30a   : > { %v1886_v58 = vmax.f32 %v7149_v18, %v7151_v11  ;;  %v1215_v53 = vpack.c.bf16 %v5779_v52, %v5778_v45 }
 0x30b   : > { %v1615_v49 = vpop.f32.mrf.mxu2 }
 0x30c   : > { %v1694_v21 = vmul.f32 0.17677669, %v1615_v49  ;;  %1887 = vmax.xlane.f32.xlu2 %v1886_v58  ;;  %v5832_v49 = vpop.permute.xlu2 %5831 }
 0x30d   : > { %v1526_v57 = vpop.f32.mrf.mxu1  ;;  %v5833_v50 = vunpack.i.l.bf16 %v5832_v49 }
 0x30e   : > { %v1693_v51 = vmul.f32 0.17677669, %v1526_v57  ;;  %v7161_v38 = vadd.f32 %v1758_v36, %v1694_v21  ;;  %v5834_v21 = vunpack.i.h.bf16 %v5832_v49 }
 0x310   : > { %v7163_v43 = vadd.f32 %v1757_v30, %v1693_v51  ;;  %4967 = vmatmul.msk.bf16.gmra.mxu1 %vm1410_vm9, %v1212_v27  ;;  %v5794_v27 = vunpack.i.h.bf16 %v7140_v25  ;;  %v1217_v36 = vpack.c.bf16 %v5834_v21, %v5833_v50  ;;  %v1772_v21 = vld [vmem:[%s9558_s1 + $0xb8] sm:$0xff] }
 0x312   : > { %v1889_v8 = vmax.f32 %v7163_v43, %v7161_v38  ;;  %v1216_v58 = vpack.c.bf16 %v5794_v27, %v5793_v22 }
 0x313   : > { %v1617_v15 = vpop.f32.mrf.mxu2 }
 0x314   : > { %v1696_v34 = vmul.f32 0.17677669, %v1617_v15  ;;  %1890 = vmax.xlane.f32.xlu0 %v1889_v8 }
 0x315   : > { %v1528_v55 = vpop.f32.mrf.mxu1 }
 0x316   : > { %v1695_v46 = vmul.f32 0.17677669, %v1528_v55  ;;  %v7177_v10 = vadd.f32 %v1760_v16, %v1696_v34 }
 0x318   : > { %4984 = vmatmul.msk.bf16.gmra.mxu2 %vm1410_vm9, %v1213_v0  ;;  %v7175_v5 = vadd.f32 %v1759_v44, %v1695_v46 }
 0x31a   : > { %v1892_v14 = vmax.f32 %v7175_v5, %v7177_v10 }
 0x31b   : > { %v1620_v19 = vpop.f32.mrf.mxu2 }
 0x31c   : > { %v1698_v59 = vmul.f32 0.17677669, %v1620_v19  ;;  %1893 = vmax.xlane.f32.xlu0 %v1892_v14 }
 0x31d   : > { %v1531_v62 = vpop.f32.mrf.mxu1 }
 0x31e   : > { %v1697_v35 = vmul.f32 0.17677669, %v1531_v62  ;;  %v7187_v20 = vadd.f32 %v1762_v61, %v1698_v59 }
 0x320   : > { %v7189_v40 = vadd.f32 %v1761_v63, %v1697_v35  ;;  %4968 = vmatmul.msk.bf16.gmra.mxu1 %vm1410_vm9, %v1213_v0 }
 0x322   : > { %v1895_v7 = vmax.f32 %v7189_v40, %v7187_v20 }
 0x323   : > { %v1622_v13 = vpop.f32.mrf.mxu2 }
 0x324   : > { %v1700_v24 = vmul.f32 0.17677669, %v1622_v13  ;;  %1896 = vmax.xlane.f32.xlu0 %v1895_v7 }
 0x325   : > { %v1533_v12 = vpop.f32.mrf.mxu1 }
 0x326   : > { %v1699_v26 = vmul.f32 0.17677669, %v1533_v12  ;;  %v7205_v29 = vadd.f32 %v1764_v32, %v1700_v24 }
 0x328   : > { %4985 = vmatmul.msk.bf16.gmra.mxu2 %vm1410_vm9, %v1214_v9  ;;  %v7203_v6 = vadd.f32 %v1763_v2, %v1699_v26 }
 0x32a   : > { %v1898_v60 = vmax.f32 %v7203_v6, %v7205_v29 }
 0x32b   : > { %v1625_v30 = vpop.f32.mrf.mxu2 }
 0x32c   : > { %1899 = vmax.xlane.f32.xlu1 %v1898_v60  ;;  %v1702_v25 = vmul.f32 0.17677669, %v1625_v30 }
 0x32d   : > { %v1536_v57 = vpop.f32.mrf.mxu1 }
 0x32e   : > { %v1701_v51 = vmul.f32 0.17677669, %v1536_v57  ;;  %v7232_v44 = vadd.f32 %v1766_v47, %v1702_v25 }
 0x330   : > { %4969 = vmatmul.msk.bf16.gmra.mxu1 %vm1410_vm9, %v1214_v9 }
 0x335   : > { %v7236_v0 = vpop.f32.mrf.mxu1 }
 0x338   : > { %4986 = vmatmul.msk.bf16.gmra.mxu2 %vm1410_vm9, %v1215_v53 }
 0x33d   : > { %v7248_v35 = vpop.f32.mrf.mxu1 }
 0x340   : > { %4970 = vmatmul.msk.bf16.gmra.mxu1 %vm1410_vm9, %v1215_v53 }
 0x345   : > { %5836 = vrot.lane.b32.xlu1 %v6989_v41, %s6325_s30  ;;  %v1765_v41 = vld [vmem:[%s9558_s1 + $0x80] sm:$0xff]  ;;  %v1543_v9 = vpop.f32.mrf.mxu1 }
 0x346   : > { %v7230_v15 = vadd.f32 %v1765_v41, %v1701_v51  ;;  %v1707_v53 = vmul.f32 0.17677669, %v1543_v9 }
 0x348   : > { %4987 = vmatmul.msk.bf16.gmra.mxu2 %vm1410_vm9, %v1216_v58  ;;  %v1901_v16 = vmax.f32 %v7230_v15, %v7232_v44 }
 0x34d   : > { %v7270_v22 = vpop.f32.mrf.mxu1 }
 0x350   : > { %4971 = vmatmul.msk.bf16.gmra.mxu1 %vm1410_vm9, %v1216_v58 }
 0x358   : > { %4988 = vmatmul.msk.bf16.gmra.mxu2 %vm1410_vm9, %v1217_v36 }
 0x360   : > { %4972 = vmatmul.msk.bf16.gmra.mxu1 %vm1410_vm9, %v1217_v36 }
 0x367   : > { %v1879_v37 = vpop.xlane.xlu2 %1878 }
 0x368   : > { %v1973_v33 = vsub.f32 %v7103_v56, %v1879_v37  ;;  %v1974_v8 = vsub.f32 %v7101_v54, %v1879_v37  ;;  %v7240_v54 = vpop.f32.mrf.mxu2 }
 0x36a   : > { %v2037_v34 = vmul.f32 1.442695, %v1973_v33  ;;  %v2039_v55 = vmul.f32 1.442695, %v1974_v8  ;;  %v1775_v33 = vld [vmem:[%s9558_s1 + $0xd0] sm:$0xff] }
 0x36c   : > { %5875 = vpow2.f32 %v2037_v34 }
 0x36d   : > { %5877 = vpow2.f32 %v2039_v55 }
 0x36f   : > { %v1882_v46 = vpop.xlane.xlu1 %1881  ;;  %1902 = vmax.xlane.f32.xlu1 %v1901_v16 }
 0x370   : > { %v1975_v14 = vsub.f32 %v7117_v48, %v1882_v46  ;;  %v1976_v56 = vsub.f32 %v7119_v28, %v1882_v46  ;;  %v7254_v28 = vpop.f32.mrf.mxu2 }
 0x372   : > { %v7242_v19 = vpop.eup %5875  ;;  %v2041_v59 = vmul.f32 1.442695, %v1975_v14  ;;  %v2043_v61 = vmul.f32 1.442695, %v1976_v56 }
 0x373   : > { %v7244_v62 = vpop.eup %5877 }
 0x374   : > { %5879 = vpow2.f32 %v2041_v59  ;;  %v2165_v63 = vadd.f32 %v7244_v62, %v7242_v19  ;;  %v1777_v59 = vld [vmem:[%s9558_s1 + $0xe0] sm:$0xff] }
 0x375   : > { %5881 = vpow2.f32 %v2043_v61 }
 0x376   : > { %2166 = vadd.xlane.f32.xlu2 %v2165_v63  ;;  %v1778_v63 = vld [vmem:[%s9558_s1 + $0xe8] sm:$0xff] }
 0x377   : > { %v7258_v7 = vpop.xlane.xlu0 %1884 }
 0x378   : > { %v1632_v26 = vpop.f32.mrf.mxu2 }
 0x37a   : > { %v7250_v1 = vpop.eup %5879 }
 0x37b   : > { %v7252_v48 = vpop.eup %5881 }
 0x37c   : > { %v2168_v17 = vadd.f32 %v7252_v48, %v7250_v1 }
 0x37e   : > { %2169 = vadd.xlane.f32.xlu0 %v2168_v17 }
 0x37f   : > { %v1888_v13 = vpop.xlane.xlu2 %1887 }
 0x380   : > { %v1979_v24 = vsub.f32 %v7149_v18, %v1888_v13  ;;  %v1980_v12 = vsub.f32 %v7151_v11, %v1888_v13  ;;  %v1771_v18 = vld [vmem:[%s9558_s1 + $0xb0] sm:$0xff]  ;;  %v1708_v11 = vmul.f32 0.17677669, %v1632_v26  ;;  %v7277_v58 = vpop.f32.mrf.mxu2 }
 0x381   : > { %v7284_v57 = vadd.f32 %v1771_v18, %v1707_v53  ;;  %v1703_v53 = vmul.f32 0.17677669, %v7236_v0 }
 0x382   : > { %v2049_v2 = vmul.f32 1.442695, %v1979_v24  ;;  %v2051_v32 = vmul.f32 1.442695, %v1980_v12  ;;  %v1977_v24 = vsub.f32 %v7133_v4, %v7258_v7  ;;  %v1978_v12 = vsub.f32 %v7131_v3, %v7258_v7  ;;  %v1767_v4 = vld [vmem:[%s9558_s1 + $0x90] sm:$0xff]  ;;  %v1768_v7 = vld [vmem:[%s9558_s1 + $0x98] sm:$0xff] }
 0x384   : > { %5883 = vpow2.f32 %v2049_v2  ;;  %v2047_v26 = vmul.f32 1.442695, %v1978_v12 }
 0x385   : > { %5885 = vpow2.f32 %v2051_v32  ;;  %v2045_v32 = vmul.f32 1.442695, %v1977_v24  ;;  %v1709_v24 = vmul.f32 0.17677669, %v7270_v22 }
 0x387   : > { %v7262_v60 = vpop.xlane.xlu0 %1890 }
 0x38a   : > { %v7264_v52 = vpop.eup %5883 }
 0x38b   : > { %v7266_v45 = vpop.eup %5885 }
 0x38c   : > { %v2174_v27 = vadd.f32 %v7266_v45, %v7264_v52 }
 0x38e   : > { %5846 = vrot.lane.b32.xlu2 %v6985_v39, %s6325_s30  ;;  %2175 = vadd.xlane.f32.xlu1 %v2174_v27  ;;  %v7288_v39 = vadd.f32 %v1772_v21, %v1708_v11  ;;  %v1704_v27 = vmul.f32 0.17677669, %v7240_v54  ;;  %v7338_v11 = vadd.f32 %v1767_v4, %v1703_v53 }
 0x38f   : > { %v1894_v49 = vpop.xlane.xlu0 %1893 }
 0x390   : > { %v1983_v50 = vsub.f32 %v7175_v5, %v1894_v49  ;;  %v1984_v36 = vsub.f32 %v7177_v10, %v1894_v49  ;;  %v1910_v41 = vmax.f32 %v7284_v57, %v7288_v39  ;;  %v1548_v5 = vpop.f32.mrf.mxu1  ;;  %v1637_v10 = vpop.f32.mrf.mxu2  ;;  %v7340_v21 = vadd.f32 %v1768_v7, %v1704_v27 }
 0x391   : > { %v1711_v47 = vmul.f32 0.17677669, %v1548_v5  ;;  %v1712_v8 = vmul.f32 0.17677669, %v1637_v10 }
 0x392   : > { %v2057_v30 = vmul.f32 1.442695, %v1983_v50  ;;  %v2059_v51 = vmul.f32 1.442695, %v1984_v36  ;;  %5841 = vrot.lane.b32.xlu0 %v6975_v23, %s6325_s30  ;;  %v1904_v10 = vmax.f32 %v7338_v11, %v7340_v21 }
 0x393   : > { %v7306_v34 = vadd.f32 %v1775_v33, %v1711_v47  ;;  %v1706_v47 = vmul.f32 0.17677669, %v7254_v28 }
 0x394   : > { %5887 = vpow2.f32 %v2057_v30 }
 0x395   : > { %5889 = vpow2.f32 %v2059_v51 }
 0x396   : > { %5851 = vrot.lane.b32.xlu2 %v6998_v42, %s6325_s30  ;;  %1911 = vmax.xlane.f32.xlu1 %v1910_v41  ;;  %v1776_v42 = vld [vmem:[%s9558_s1 + $0xd8] sm:$0xff]  ;;  %5891 = vpow2.f32 %v2045_v32  ;;  %v1705_v41 = vmul.f32 0.17677669, %v7248_v35  ;;  %v1710_v32 = vmul.f32 0.17677669, %v7277_v58 }
 0x397   : > { %v7308_v16 = vadd.f32 %v1776_v42, %v1712_v8  ;;  %5893 = vpow2.f32 %v2047_v26  ;;  %v1774_v26 = vld [vmem:[%s9558_s1 + $0xc8] sm:$0xff] }
 0x398   : > { %v1551_v55 = vpop.f32.mrf.mxu1  ;;  %v1640_v46 = vpop.f32.mrf.mxu2 }
 0x399   : > { %v1713_v14 = vmul.f32 0.17677669, %v1551_v55  ;;  %v1916_v56 = vmax.f32 %v7306_v34, %v7308_v16  ;;  %v1714_v61 = vmul.f32 0.17677669, %v1640_v46  ;;  %v1897_v46 = vpop.xlane.xlu0 %1896 }
 0x39a   : > { %v7294_v25 = vpop.eup %5887 }
 0x39b   : > { %v7296_v37 = vpop.eup %5889  ;;  %v7318_v17 = vadd.f32 %v1777_v59, %v1713_v14  ;;  %v7320_v13 = vadd.f32 %v1778_v63, %v1714_v61  ;;  %v1985_v61 = vsub.f32 %v7189_v40, %v1897_v46  ;;  %v1986_v63 = vsub.f32 %v7187_v20, %v1897_v46 }
 0x39c   : > { %v2180_v23 = vadd.f32 %v7296_v37, %v7294_v25  ;;  %v7344_v30 = vpop.eup %5891  ;;  %v7392_v20 = vadd.f32 %v1774_v26, %v1710_v32 }
 0x39d   : > { %v1919_v2 = vmax.f32 %v7318_v17, %v7320_v13  ;;  %v7348_v51 = vpop.eup %5893  ;;  %v2063_v40 = vmul.f32 1.442695, %v1986_v63 }
 0x39e   : > { %2181 = vadd.xlane.f32.xlu1 %v2180_v23 }
 0x39f   : > { %v1900_v9 = vpop.xlane.xlu1 %1899 }
 0x3a0   : > { %v1987_v18 = vsub.f32 %v7203_v6, %v1900_v9  ;;  %v1988_v3 = vsub.f32 %v7205_v29, %v1900_v9  ;;  %v1981_v6 = vsub.f32 %v7163_v43, %v7262_v60  ;;  %v1982_v29 = vsub.f32 %v7161_v38, %v7262_v60  ;;  %v1769_v43 = vld [vmem:[%s9558_s1 + $0xa0] sm:$0xff]  ;;  %v1770_v38 = vld [vmem:[%s9558_s1 + $0xa8] sm:$0xff]  ;;  %v1553_v27 = vpop.f32.mrf.mxu1  ;;  %v1642_v4 = vpop.f32.mrf.mxu2 }
 0x3a1   : > { %v2171_v60 = vadd.f32 %v7348_v51, %v7344_v30  ;;  %v7362_v33 = vadd.f32 %v1769_v43, %v1705_v41  ;;  %v7364_v8 = vadd.f32 %v1770_v38, %v1706_v47  ;;  %v2061_v9 = vmul.f32 1.442695, %v1985_v61  ;;  %v1781_v43 = vld [vmem:[%s9558_s1 + $0x100] sm:$0xff] }
 0x3a2   : > { %v2065_v49 = vmul.f32 1.442695, %v1987_v18  ;;  %v2067_v54 = vmul.f32 1.442695, %v1988_v3  ;;  %v2053_v23 = vmul.f32 1.442695, %v1981_v6 }
 0x3a3   : > { %v2055_v35 = vmul.f32 1.442695, %v1982_v29  ;;  %v1907_v55 = vmax.f32 %v7362_v33, %v7364_v8  ;;  %v1715_v3 = vmul.f32 0.17677669, %v1553_v27  ;;  %v1780_v6 = vld [vmem:[%s9558_s1 + $0xf8] sm:$0xff] }
 0x3a4   : > { %5895 = vpow2.f32 %v2065_v49  ;;  %v1779_v49 = vld [vmem:[%s9558_s1 + $0xf0] sm:$0xff] }
 0x3a5   : > { %5897 = vpow2.f32 %v2067_v54  ;;  %v7408_v54 = vadd.f32 %v1779_v49, %v1715_v3 }
 0x3a6   : > { %1917 = vmax.xlane.f32.xlu1 %v1916_v56  ;;  %5899 = vpow2.f32 %v2053_v23 }
 0x3a7   : > { %5901 = vpow2.f32 %v2055_v35  ;;  %v1782_v35 = vld [vmem:[%s9558_s1 + $0x108] sm:$0xff] }
 0x3a8   : > { %5903 = vpow2.f32 %v2061_v9  ;;  %v1645_v29 = vpop.f32.mrf.mxu2  ;;  %v1783_v9 = vld [vmem:[%s9558_s1 + $0x110] sm:$0xff] }
 0x3a9   : > { %5905 = vpow2.f32 %v2063_v40  ;;  %v1718_v38 = vmul.f32 0.17677669, %v1645_v29  ;;  %v1785_v29 = vld [vmem:[%s9558_s1 + $0x120] sm:$0xff] }
 0x3aa   : > { %v7366_v28 = vpop.eup %5895 }
 0x3ab   : > { %v7368_v42 = vpop.eup %5897 }
 0x3ac   : > { %v2186_v14 = vadd.f32 %v7368_v42, %v7366_v28  ;;  %v7374_v56 = vpop.eup %5899 }
 0x3ad   : > { %v7376_v59 = vpop.eup %5901 }
 0x3ae   : > { %1920 = vmax.xlane.f32.xlu1 %v1919_v2  ;;  %v2177_v12 = vadd.f32 %v7376_v59, %v7374_v56  ;;  %v1773_v2 = vld [vmem:[%s9558_s1 + $0xc0] sm:$0xff]  ;;  %v7396_v18 = vpop.eup %5903 }
 0x3af   : > { %v7390_v53 = vadd.f32 %v1773_v2, %v1709_v24  ;;  %v7398_v58 = vpop.eup %5905 }
 0x3b0   : > { %v2183_v7 = vadd.f32 %v7398_v58, %v7396_v18  ;;  %v1647_v63 = vpop.f32.mrf.mxu2 }
 0x3b1   : > { %v1913_v22 = vmax.f32 %v7390_v53, %v7392_v20  ;;  %v1720_v26 = vmul.f32 0.17677669, %v1647_v63 }
 0x3b7   : > { %v5837_v0 = vpop.permute.xlu1 %5836 }
 0x3b8   : > { %v5839_v50 = vunpack.i.h.bf16 %v5837_v0  ;;  %v5838_v36 = vunpack.i.l.bf16 %v5837_v0  ;;  %v1716_v0 = vmul.f32 0.17677669, %v1642_v4  ;;  %v1650_v49 = vpop.f32.mrf.mxu2 }
 0x3ba   : > { %v1405_v5 = vpack.c.bf16 %v5839_v50, %v5838_v36  ;;  %v1556_v50 = vpop.f32.mrf.mxu1  ;;  %v7410_v36 = vadd.f32 %v1780_v6, %v1716_v0 }
 0x3bb   : > { %v1717_v41 = vmul.f32 0.17677669, %v1556_v50 }
 0x3bc   : > { %1905 = vmax.xlane.f32.xlu0 %v1904_v10  ;;  %2482 = vmatpush.bf16.msra.mxu0 %v1405_v5  ;;  %v1922_v10 = vmax.f32 %v7408_v54, %v7410_v36 }
 0x3bd   : > { %5614 = vmatpush.bf16.msra.mxu2 %v1405_v5  ;;  %v7422_v46 = vadd.f32 %v1781_v43, %v1717_v41  ;;  %v1722_v41 = vmul.f32 0.17677669, %v1650_v49  ;;  %v1786_v43 = vld [vmem:[%s9558_s1 + $0x128] sm:$0xff] }
 0x3bf   : > { %2172 = vadd.xlane.f32.xlu2 %v2171_v60 }
 0x3c2   : > { %v1558_v61 = vpop.f32.mrf.mxu1 }
 0x3c3   : > { %v1719_v2 = vmul.f32 0.17677669, %v1558_v61 }
 0x3c4   : > { %1908 = vmax.xlane.f32.xlu0 %v1907_v55 }
 0x3c5   : > { %v7440_v27 = vadd.f32 %v1783_v9, %v1719_v2 }
 0x3c7   : > { %2187 = vadd.xlane.f32.xlu2 %v2186_v14  ;;  %v7424_v14 = vadd.f32 %v1782_v35, %v1718_v38  ;;  %v7456_v38 = vadd.f32 %v1786_v43, %v1722_v41 }
 0x3ca   : > { %v1561_v4 = vpop.f32.mrf.mxu1 }
 0x3cb   : > { %v1721_v0 = vmul.f32 0.17677669, %v1561_v4 }
 0x3cc   : > { %2178 = vadd.xlane.f32.xlu0 %v2177_v12 }
 0x3d4   : > { %1914 = vmax.xlane.f32.xlu0 %v1913_v22  ;;  %v1784_v22 = vld [vmem:[%s9558_s1 + $0x118] sm:$0xff] }
 0x3d5   : > { %v7442_v3 = vadd.f32 %v1784_v22, %v1720_v26 }
 0x3d7   : > { %v1928_v6 = vmax.f32 %v7440_v27, %v7442_v3 }
 0x3dc   : > { %2184 = vadd.xlane.f32.xlu0 %v2183_v7 }
 0x3e2   : > { %v1903_v5 = vpop.xlane.xlu1 %1902 }
 0x3e3   : > { %v1989_v47 = vsub.f32 %v7230_v15, %v1903_v5  ;;  %v1990_v23 = vsub.f32 %v7232_v44, %v1903_v5  ;;  %v1925_v15 = vmax.f32 %v7422_v46, %v7424_v14 }
 0x3e4   : > { %1923 = vmax.xlane.f32.xlu0 %v1922_v10 }
 0x3e5   : > { %v2069_v60 = vmul.f32 1.442695, %v1989_v47  ;;  %v2071_v55 = vmul.f32 1.442695, %v1990_v23  ;;  %v7454_v47 = vadd.f32 %v1785_v29, %v1721_v0 }
 0x3e7   : > { %5907 = vpow2.f32 %v2069_v60  ;;  %v1931_v60 = vmax.f32 %v7454_v47, %v7456_v38 }
 0x3e8   : > { %5909 = vpow2.f32 %v2071_v55  ;;  %v7460_v55 = vpop.f32.mrf.mxu1 }
 0x3e9   : > { %v2167_v24 = vpop.xlane.xlu2 %2166 }
 0x3ea   : > { %5911 = vrcp.f32 %v2167_v24 }
 0x3ec   : > { %1926 = vmax.xlane.f32.xlu0 %v1925_v15 }
 0x3ed   : > { %v7428_v44 = vpop.eup %5907 }
 0x3ee   : > { %v7430_v12 = vpop.eup %5909 }
 0x3ef   : > { %v2189_v32 = vadd.f32 %v7430_v12, %v7428_v44 }
 0x3f0   : > { %v5912_v7 = vpop.eup %5911 }
 0x3f1   : > { %v2170_v40 = vpop.xlane.xlu0 %2169  ;;  %2190 = vadd.xlane.f32.xlu2 %v2189_v32  ;;  %v2293_v5 = vmul.f32 %v5912_v7, %v7242_v19  ;;  %v5847_v35 = vpop.permute.xlu2 %5846 }
 0x3f2   : > { %5913 = vrcp.f32 %v2170_v40  ;;  %v7464_v19 = vpop.f32.mrf.mxu2  ;;  %v5849_v24 = vunpack.i.h.bf16 %v5847_v35  ;;  %v5848_v2 = vunpack.i.l.bf16 %v5847_v35  ;;  %v7466_v40 = vpop.f32.mrf.mxu1 }
 0x3f4   : > { %v1403_v49 = vpack.c.bf16 %v5849_v24, %v5848_v2 }
 0x3f8   : > { %v5914_v50 = vpop.eup %5913 }
 0x3f9   : > { %1929 = vmax.xlane.f32.xlu2 %v1928_v6  ;;  %v2295_v10 = vmul.f32 %v5914_v50, %v7250_v1  ;;  %v5852_v9 = vpop.permute.xlu2 %5851 }
 0x3fa   : > { %v5854_v0 = vunpack.i.h.bf16 %v5852_v9  ;;  %v5853_v6 = vunpack.i.l.bf16 %v5852_v9  ;;  %v7470_v29 = vpop.f32.mrf.mxu2 }
 0x3fb   : > { %v2357_v23 = vpack.c.bf16 %v2295_v10, %v2293_v5  ;;  %v2296_v10 = vmul.f32 %v5914_v50, %v7252_v48 }
 0x3fc   : > { %v1402_v43 = vpack.c.bf16 %v5854_v0, %v5853_v6 }
 0x3fd   : > { %2397 = vmatmul.bf16.vlgmr.msrb.gmra.mxu3 %v2357_v23  ;;  %v2294_v23 = vmul.f32 %v5912_v7, %v7244_v62 }
 0x401   : > { %v7462_v61 = vpop.xlane.xlu1 %2175  ;;  %1932 = vmax.xlane.f32.xlu2 %v1931_v60  ;;  %v7478_v60 = vpop.f32.mrf.mxu1 }
 0x404   : > { %v5842_v1 = vpop.permute.xlu0 %5841 }
 0x405   : > { %v5844_v15 = vunpack.i.h.bf16 %v5842_v1  ;;  %v5843_v63 = vunpack.i.l.bf16 %v5842_v1 }
 0x407   : > { %v1404_v32 = vpack.c.bf16 %v5844_v15, %v5843_v63  ;;  %v7482_v15 = vpop.f32.mrf.mxu2 }
 0x409   : > { %2483 = vmatpush.bf16.msra.mxu0 %v1404_v32  ;;  %5615 = vmatpush.bf16.msra.mxu2 %v1404_v32  ;;  %v1912_v26 = vpop.xlane.xlu1 %1911  ;;  %v7488_v2 = vpop.f32.mrf.mxu1 }
 0x40a   : > { %v1995_v22 = vsub.f32 %v7284_v57, %v1912_v26  ;;  %v1996_v4 = vsub.f32 %v7288_v39, %v1912_v26  ;;  %v2358_v39 = vpack.c.bf16 %v2296_v10, %v2294_v23  ;;  %v1795_v23 = vld [vmem:[%s9558_s1 + $0x170] sm:$0xff] }
 0x40c   : > { %v2081_v41 = vmul.f32 1.442695, %v1995_v22  ;;  %v2083_v5 = vmul.f32 1.442695, %v1996_v4 }
 0x40d   : > { %2484 = vmatpush.bf16.msra.mxu0 %v1403_v49  ;;  %5616 = vmatpush.bf16.msra.mxu2 %v1403_v49 }
 0x40e   : > { %5915 = vpow2.f32 %v2081_v41 }
 0x40f   : > { %5917 = vpow2.f32 %v2083_v5  ;;  %v7490_v32 = vpop.f32.mrf.mxu2 }
 0x411   : > { %2485 = vmatpush.bf16.msra.mxu0 %v1402_v43  ;;  %5617 = vmatpush.bf16.msra.mxu2 %v1402_v43  ;;  %v7474_v57 = vpop.xlane.xlu1 %2181  ;;  %v1573_v6 = vpop.f32.mrf.mxu1 }
 0x414   : > { %v7476_v35 = vpop.eup %5915  ;;  %2486 = vmatmul.bf16.vlgmr.msra.gmra.mxu0 %v2358_v39 }
 0x415   : > { %v7480_v1 = vpop.eup %5917 }
 0x416   : > { %v2198_v48 = vadd.f32 %v7480_v1, %v7476_v35 }
 0x417   : > { %v1662_v41 = vpop.f32.mrf.mxu2 }
 0x418   : > { %2199 = vadd.xlane.f32.xlu0 %v2198_v48  ;;  %v1732_v39 = vmul.f32 0.17677669, %v1662_v41  ;;  %v1798_v41 = vld [vmem:[%s9558_s1 + $0x188] sm:$0xff] }
 0x419   : > { %v1918_v50 = vpop.xlane.xlu1 %1917 }
 0x41a   : > { %v1999_v62 = vsub.f32 %v7306_v34, %v1918_v50  ;;  %v2000_v7 = vsub.f32 %v7308_v16, %v1918_v50 }
 0x41c   : > { %v2089_v63 = vmul.f32 1.442695, %v1999_v62  ;;  %v2091_v24 = vmul.f32 1.442695, %v2000_v7  ;;  %v1796_v62 = vld [vmem:[%s9558_s1 + $0x178] sm:$0xff]  ;;  %v1576_v7 = vpop.f32.mrf.mxu1 }
 0x41e   : > { %5919 = vpow2.f32 %v2089_v63 }
 0x41f   : > { %5921 = vpow2.f32 %v2091_v24 }
 0x421   : > { %v1921_v9 = vpop.xlane.xlu1 %1920 }
 0x422   : > { %v2001_v26 = vsub.f32 %v7318_v17, %v1921_v9  ;;  %v2002_v22 = vsub.f32 %v7320_v13, %v1921_v9  ;;  %v1731_v17 = vmul.f32 0.17677669, %v1573_v6 }
 0x424   : > { %v7494_v4 = vpop.eup %5919  ;;  %v2093_v49 = vmul.f32 1.442695, %v2001_v26  ;;  %v2095_v0 = vmul.f32 1.442695, %v2002_v22  ;;  %v7515_v26 = vadd.f32 %v1795_v23, %v1731_v17  ;;  %v1665_v22 = vpop.f32.mrf.mxu2 }
 0x425   : > { %v7496_v34 = vpop.eup %5921 }
 0x426   : > { %5923 = vpow2.f32 %v2093_v49  ;;  %v2204_v16 = vadd.f32 %v7496_v34, %v7494_v4  ;;  %v7517_v49 = vadd.f32 %v1796_v62, %v1732_v39 }
 0x427   : > { %5925 = vpow2.f32 %v2095_v0 }
 0x428   : > { %2205 = vadd.xlane.f32.xlu2 %v2204_v16  ;;  %5927 = vrcp.f32 %v7462_v61  ;;  %v1733_v61 = vmul.f32 0.17677669, %v1576_v7  ;;  %v1946_v0 = vmax.f32 %v7515_v26, %v7517_v49  ;;  %v1734_v16 = vmul.f32 0.17677669, %v1665_v22 }
 0x42c   : > { %v7500_v5 = vpop.eup %5923 }
 0x42d   : > { %v7502_v10 = vpop.eup %5925 }
 0x42e   : > { %v2207_v13 = vadd.f32 %v7502_v10, %v7500_v5 }
 0x42f   : > { %v1906_v43 = vpop.xlane.xlu0 %1905 }
 0x430   : > { %v1991_v48 = vsub.f32 %v7338_v11, %v1906_v43  ;;  %v1992_v50 = vsub.f32 %v7340_v21, %v1906_v43  ;;  %2208 = vadd.xlane.f32.xlu2 %v2207_v13  ;;  %v5928_v11 = vpop.eup %5927  ;;  %v1797_v21 = vld [vmem:[%s9558_s1 + $0x180] sm:$0xff] }
 0x431   : > { %v7529_v23 = vadd.f32 %v1797_v21, %v1733_v61  ;;  %v2299_v39 = vmul.f32 %v5928_v11, %v7264_v52 }
 0x432   : > { %v2073_v63 = vmul.f32 1.442695, %v1991_v48  ;;  %v2075_v24 = vmul.f32 1.442695, %v1992_v50  ;;  %v2173_v9 = vpop.xlane.xlu2 %2172  ;;  %v2300_v48 = vmul.f32 %v5928_v11, %v7266_v45  ;;  %v1723_v11 = vmul.f32 0.17677669, %v7460_v55 }
 0x433   : > { %5929 = vrcp.f32 %v2173_v9 }
 0x434   : > { %5931 = vpow2.f32 %v2073_v63 }
 0x435   : > { %5933 = vpow2.f32 %v2075_v24 }
 0x437   : > { %v1909_v6 = vpop.xlane.xlu0 %1908 }
 0x438   : > { %v1993_v17 = vsub.f32 %v7362_v33, %v1909_v6  ;;  %v1994_v13 = vsub.f32 %v7364_v8, %v1909_v6  ;;  %1947 = vmax.xlane.f32.xlu2 %v1946_v0  ;;  %v7539_v33 = vadd.f32 %v1798_v41, %v1734_v16  ;;  %v1787_v0 = vld [vmem:[%s9558_s1 + $0x130] sm:$0xff]  ;;  %v1724_v6 = vmul.f32 0.17677669, %v7464_v19 }
 0x439   : > { %v5930_v43 = vpop.eup %5929 }
 0x43a   : > { %v7533_v50 = vpop.eup %5931  ;;  %v2077_v62 = vmul.f32 1.442695, %v1993_v17  ;;  %v2079_v7 = vmul.f32 1.442695, %v1994_v13  ;;  %v2297_v63 = vmul.f32 %v5930_v43, %v7344_v30  ;;  %v2298_v24 = vmul.f32 %v5930_v43, %v7348_v51 }
 0x43b   : > { %v7537_v9 = vpop.eup %5933  ;;  %v1949_v45 = vmax.f32 %v7529_v23, %v7539_v33  ;;  %v7562_v43 = vadd.f32 %v1787_v0, %v1723_v11 }
 0x43c   : > { %5935 = vpow2.f32 %v2077_v62  ;;  %v2192_v8 = vadd.f32 %v7537_v9, %v7533_v50  ;;  %v2359_v22 = vpack.c.bf16 %v2299_v39, %v2297_v63  ;;  %v2360_v52 = vpack.c.bf16 %v2300_v48, %v2298_v24 }
 0x43d   : > { %5937 = vpow2.f32 %v2079_v7 }
 0x43e   : > { %2193 = vadd.xlane.f32.xlu1 %v2192_v8  ;;  %2402 = vmatmul.bf16.gmra.mxu3 %v2359_v22  ;;  %v1725_v8 = vmul.f32 0.17677669, %v7466_v40  ;;  %v1726_v22 = vmul.f32 0.17677669, %v7470_v29  ;;  %v1727_v29 = vmul.f32 0.17677669, %v7478_v60 }
 0x43f   : > { %2491 = vmatmul.bf16.gmra.mxu0 %v2360_v52  ;;  %v2179_v30 = vpop.xlane.xlu0 %2178  ;;  %v2188_v52 = vpop.xlane.xlu2 %2187  ;;  %v1792_v60 = vld [vmem:[%s9558_s1 + $0x158] sm:$0xff] }
 0x440   : > { %5939 = vrcp.f32 %v2179_v30  ;;  %1950 = vmax.xlane.f32.xlu2 %v1949_v45 }
 0x441   : > { %5941 = vrcp.f32 %v7474_v57  ;;  %v1788_v57 = vld [vmem:[%s9558_s1 + $0x138] sm:$0xff] }
 0x442   : > { %v7546_v51 = vpop.eup %5935  ;;  %v7566_v19 = vadd.f32 %v1788_v57, %v1724_v6 }
 0x443   : > { %v7548_v61 = vpop.eup %5937 }
 0x444   : > { %v2195_v21 = vadd.f32 %v7548_v61, %v7546_v51 }
 0x446   : > { %v5940_v16 = vpop.eup %5939  ;;  %2196 = vadd.xlane.f32.xlu1 %v2195_v21 }
 0x447   : > { %v5942_v41 = vpop.eup %5941  ;;  %v1915_v17 = vpop.xlane.xlu0 %1914  ;;  %v2301_v39 = vmul.f32 %v5940_v16, %v7374_v56  ;;  %v2302_v48 = vmul.f32 %v5940_v16, %v7376_v59  ;;  %v1789_v56 = vld [vmem:[%s9558_s1 + $0x140] sm:$0xff]  ;;  %v1791_v16 = vld [vmem:[%s9558_s1 + $0x150] sm:$0xff] }
 0x448   : > { %v1997_v13 = vsub.f32 %v7390_v53, %v1915_v17  ;;  %v1998_v55 = vsub.f32 %v7392_v20, %v1915_v17  ;;  %v2303_v63 = vmul.f32 %v5942_v41, %v7294_v25  ;;  %v2304_v24 = vmul.f32 %v5942_v41, %v7296_v37  ;;  %v1790_v25 = vld [vmem:[%s9558_s1 + $0x148] sm:$0xff] }
 0x449   : > { %v1934_v53 = vmax.f32 %v7562_v43, %v7566_v19  ;;  %v7580_v40 = vadd.f32 %v1789_v56, %v1725_v8  ;;  %v7584_v30 = vadd.f32 %v1790_v25, %v1726_v22  ;;  %v1728_v41 = vmul.f32 0.17677669, %v7482_v15 }
 0x44a   : > { %v2085_v62 = vmul.f32 1.442695, %v1997_v13  ;;  %v2087_v7 = vmul.f32 1.442695, %v1998_v55  ;;  %v2361_v20 = vpack.c.bf16 %v2303_v63, %v2301_v39  ;;  %v2362_v59 = vpack.c.bf16 %v2304_v24, %v2302_v48 }
 0x44b   : > { %v1937_v0 = vmax.f32 %v7580_v40, %v7584_v30  ;;  %v7602_v39 = vadd.f32 %v1791_v16, %v1727_v29  ;;  %v7606_v63 = vadd.f32 %v1792_v60, %v1728_v41 }
 0x44c   : > { %5943 = vpow2.f32 %v2085_v62 }
 0x44d   : > { %5945 = vpow2.f32 %v2087_v7 }
 0x44e   : > { %1935 = vmax.xlane.f32.xlu1 %v1934_v53  ;;  %2407 = vmatmul.bf16.gmra.mxu3 %v2361_v20  ;;  %v1729_v53 = vmul.f32 0.17677669, %v7488_v2  ;;  %v1730_v20 = vmul.f32 0.17677669, %v7490_v32 }
 0x44f   : > { %2496 = vmatmul.bf16.gmra.mxu0 %v2362_v59  ;;  %v2185_v37 = vpop.xlane.xlu0 %2184 }
 0x450   : > { %5947 = vrcp.f32 %v2185_v37 }
 0x451   : > { %5949 = vrcp.f32 %v2188_v52 }
 0x452   : > { %v7582_v45 = vpop.eup %5943 }
 0x453   : > { %v7586_v11 = vpop.eup %5945 }
 0x454   : > { %v2201_v21 = vadd.f32 %v7586_v11, %v7582_v45 }
 0x456   : > { %v5948_v6 = vpop.eup %5947  ;;  %2202 = vadd.xlane.f32.xlu0 %v2201_v21  ;;  %1938 = vmax.xlane.f32.xlu1 %v1937_v0 }
 0x457   : > { %v5950_v17 = vpop.eup %5949  ;;  %v1924_v57 = vpop.xlane.xlu0 %1923  ;;  %v2305_v48 = vmul.f32 %v5948_v6, %v7396_v18  ;;  %v2306_v62 = vmul.f32 %v5948_v6, %v7398_v58  ;;  %v1793_v18 = vld [vmem:[%s9558_s1 + $0x160] sm:$0xff] }
 0x458   : > { %v2003_v13 = vsub.f32 %v7408_v54, %v1924_v57  ;;  %v2004_v55 = vsub.f32 %v7410_v36, %v1924_v57  ;;  %v2307_v24 = vmul.f32 %v5950_v17, %v7366_v28  ;;  %v2308_v8 = vmul.f32 %v5950_v17, %v7368_v42  ;;  %v1794_v28 = vld [vmem:[%s9558_s1 + $0x168] sm:$0xff] }
 0x459   : > { %v1940_v54 = vmax.f32 %v7602_v39, %v7606_v63  ;;  %v7620_v2 = vadd.f32 %v1793_v18, %v1729_v53  ;;  %v7626_v52 = vadd.f32 %v1794_v28, %v1730_v20  ;;  %v1801_v18 = vld [vmem:[%s9558_s1 + $0x1a0] sm:$0xff] }
 0x45a   : > { %v2097_v7 = vmul.f32 1.442695, %v2003_v13  ;;  %v2099_v15 = vmul.f32 1.442695, %v2004_v55  ;;  %v2363_v36 = vpack.c.bf16 %v2307_v24, %v2305_v48  ;;  %v2364_v58 = vpack.c.bf16 %v2308_v8, %v2306_v62  ;;  %v1799_v55 = vld [vmem:[%s9558_s1 + $0x190] sm:$0xff] }
 0x45b   : > { %v1943_v0 = vmax.f32 %v7620_v2, %v7626_v52 }
 0x45c   : > { %5951 = vpow2.f32 %v2097_v7 }
 0x45d   : > { %5953 = vpow2.f32 %v2099_v15  ;;  %v1800_v15 = vld [vmem:[%s9558_s1 + $0x198] sm:$0xff] }
 0x45e   : > { %1941 = vmax.xlane.f32.xlu0 %v1940_v54  ;;  %2412 = vmatmul.bf16.gmra.mxu3 %v2363_v36 }
 0x45f   : > { %2501 = vmatmul.bf16.gmra.mxu0 %v2364_v58  ;;  %v1927_v42 = vpop.xlane.xlu0 %1926 }
 0x460   : > { %v2005_v56 = vsub.f32 %v7422_v46, %v1927_v42  ;;  %v2006_v59 = vsub.f32 %v7424_v14, %v1927_v42  ;;  %v1578_v46 = vpop.f32.mrf.mxu1  ;;  %v1667_v14 = vpop.f32.mrf.mxu2 }
 0x461   : > { %v1735_v41 = vmul.f32 0.17677669, %v1578_v46  ;;  %v1736_v48 = vmul.f32 0.17677669, %v1667_v14 }
 0x462   : > { %v7624_v22 = vpop.eup %5951  ;;  %v2101_v25 = vmul.f32 1.442695, %v2005_v56  ;;  %v2103_v32 = vmul.f32 1.442695, %v2006_v59  ;;  %v1802_v56 = vld [vmem:[%s9558_s1 + $0x1a8] sm:$0xff] }
 0x463   : > { %v7628_v37 = vpop.eup %5953  ;;  %v7650_v24 = vadd.f32 %v1799_v55, %v1735_v41 }
 0x464   : > { %5955 = vpow2.f32 %v2101_v25  ;;  %v7630_v29 = vpop.xlane.xlu2 %2190  ;;  %v2210_v21 = vadd.f32 %v7628_v37, %v7624_v22 }
 0x465   : > { %5957 = vpow2.f32 %v2103_v32 }
 0x466   : > { %2211 = vadd.xlane.f32.xlu1 %v2210_v21  ;;  %1944 = vmax.xlane.f32.xlu0 %v1943_v0 }
 0x468   : > { %v1581_v8 = vpop.f32.mrf.mxu1 }
 0x469   : > { %v1737_v53 = vmul.f32 0.17677669, %v1581_v8 }
 0x46a   : > { %v7636_v16 = vpop.eup %5955 }
 0x46b   : > { %v7638_v6 = vpop.eup %5957  ;;  %v7668_v21 = vadd.f32 %v1801_v18, %v1737_v53  ;;  %v1806_v18 = vld [vmem:[%s9558_s1 + $0x1c8] sm:$0xff] }
 0x46c   : > { %v1930_v17 = vpop.xlane.xlu2 %1929  ;;  %v2213_v57 = vadd.f32 %v7638_v6, %v7636_v16 }
 0x46d   : > { %v2007_v60 = vsub.f32 %v7440_v27, %v1930_v17  ;;  %v2008_v13 = vsub.f32 %v7442_v3, %v1930_v17  ;;  %v7652_v27 = vadd.f32 %v1800_v15, %v1736_v48  ;;  %v1670_v3 = vpop.f32.mrf.mxu2  ;;  %v1804_v48 = vld [vmem:[%s9558_s1 + $0x1b8] sm:$0xff] }
 0x46e   : > { %2214 = vadd.xlane.f32.xlu1 %v2213_v57  ;;  %v1738_v28 = vmul.f32 0.17677669, %v1670_v3 }
 0x46f   : > { %v2105_v62 = vmul.f32 1.442695, %v2007_v60  ;;  %v2107_v7 = vmul.f32 1.442695, %v2008_v13  ;;  %v1952_v36 = vmax.f32 %v7650_v24, %v7652_v27  ;;  %v1803_v13 = vld [vmem:[%s9558_s1 + $0x1b0] sm:$0xff] }
 0x470   : > { %v7672_v0 = vadd.f32 %v1802_v56, %v1738_v28 }
 0x471   : > { %5959 = vpow2.f32 %v2105_v62 }
 0x472   : > { %5961 = vpow2.f32 %v2107_v7  ;;  %v1955_v46 = vmax.f32 %v7668_v21, %v7672_v0 }
 0x474   : > { %v1933_v54 = vpop.xlane.xlu2 %1932 }
 0x475   : > { %v2009_v58 = vsub.f32 %v7454_v47, %v1933_v54  ;;  %v2010_v20 = vsub.f32 %v7456_v38, %v1933_v54  ;;  %v1583_v38 = vpop.f32.mrf.mxu1  ;;  %v1672_v14 = vpop.f32.mrf.mxu2  ;;  %v1805_v54 = vld [vmem:[%s9558_s1 + $0x1c0] sm:$0xff] }
 0x476   : > { %1953 = vmax.xlane.f32.xlu1 %v1952_v36  ;;  %v1739_v57 = vmul.f32 0.17677669, %v1583_v38  ;;  %v1740_v55 = vmul.f32 0.17677669, %v1672_v14 }
 0x477   : > { %v7661_v42 = vpop.eup %5959  ;;  %v2109_v59 = vmul.f32 1.442695, %v2009_v58  ;;  %v2111_v25 = vmul.f32 1.442695, %v2010_v20 }
 0x478   : > { %v7666_v32 = vpop.eup %5961  ;;  %v7688_v62 = vadd.f32 %v1803_v13, %v1739_v57  ;;  %v7690_v15 = vadd.f32 %v1804_v48, %v1740_v55 }
 0x479   : > { %5963 = vpow2.f32 %v2109_v59  ;;  %v2216_v47 = vadd.f32 %v7666_v32, %v7661_v42 }
 0x47a   : > { %5965 = vpow2.f32 %v2111_v25  ;;  %v1958_v53 = vmax.f32 %v7688_v62, %v7690_v15 }
 0x47b   : > { %2217 = vadd.xlane.f32.xlu0 %v2216_v47  ;;  %5967 = vrcp.f32 %v7630_v29 }
 0x47d   : > { %v1586_v7 = vpop.f32.mrf.mxu1  ;;  %v1675_v8 = vpop.f32.mrf.mxu2 }
 0x47e   : > { %1956 = vmax.xlane.f32.xlu1 %v1955_v46  ;;  %v1741_v3 = vmul.f32 0.17677669, %v1586_v7  ;;  %v1742_v36 = vmul.f32 0.17677669, %v1675_v8 }
 0x47f   : > { %v7676_v41 = vpop.eup %5963 }
 0x480   : > { %v7678_v17 = vpop.eup %5965  ;;  %v7700_v58 = vadd.f32 %v1805_v54, %v1741_v3  ;;  %v7702_v20 = vadd.f32 %v1806_v18, %v1742_v36  ;;  %v2398_v28 = vpop.f32.mrf.mxu3 }
 0x481   : > { %v2219_v60 = vadd.f32 %v7678_v17, %v7676_v41 }
 0x482   : > { %v1961_v59 = vmax.f32 %v7700_v58, %v7702_v20 }
 0x483   : > { %2220 = vadd.xlane.f32.xlu0 %v2219_v60 }
 0x48b   : > { %1959 = vmax.xlane.f32.xlu0 %v1958_v53  ;;  %v5968_v53 = vpop.eup %5967 }
 0x491   : > { %v2487_v56 = vpop.f32.mrf.mxu0 }
 0x492   : > { %v7706_v25 = vadd.f32 %v2487_v56, %v2398_v28  ;;  %v2309_v28 = vmul.f32 %v5968_v53, %v7428_v44  ;;  %v7726_v56 = vpop.f32.mrf.mxu3 }
 0x493   : > { %1962 = vmax.xlane.f32.xlu0 %v1961_v59  ;;  %v2310_v59 = vmul.f32 %v5968_v53, %v7430_v12 }
 0x499   : > { %v7715_v7 = vpop.f32.mrf.mxu0 }
 0x49b   : > { %v7708_v47 = vpop.xlane.xlu2 %2205 }
 0x4a3   : > { %v7710_v38 = vpop.xlane.xlu2 %2208 }
 0x4ab   : > { %v1948_v46 = vpop.xlane.xlu2 %1947 }
 0x4ac   : > { %v2019_v14 = vsub.f32 %v7515_v26, %v1948_v46  ;;  %v2020_v57 = vsub.f32 %v7517_v49, %v1948_v46 }
 0x4ae   : > { %v2129_v60 = vmul.f32 1.442695, %v2019_v14  ;;  %v2131_v13 = vmul.f32 1.442695, %v2020_v57 }
 0x4b0   : > { %5969 = vpow2.f32 %v2129_v60 }
 0x4b1   : > { %5971 = vpow2.f32 %v2131_v13  ;;  %v2194_v55 = vpop.xlane.xlu1 %2193  ;;  %v2200_v13 = vpop.xlane.xlu0 %2199 }
 0x4b2   : > { %5973 = vrcp.f32 %v2194_v55 }
 0x4b3   : > { %v1951_v48 = vpop.xlane.xlu2 %1950 }
 0x4b4   : > { %v2021_v8 = vsub.f32 %v7529_v23, %v1951_v48  ;;  %v2022_v3 = vsub.f32 %v7539_v33, %v1951_v48 }
 0x4b6   : > { %v7719_v54 = vpop.eup %5969  ;;  %v2133_v26 = vmul.f32 1.442695, %v2021_v8  ;;  %v2135_v49 = vmul.f32 1.442695, %v2022_v3 }
 0x4b7   : > { %v7721_v36 = vpop.eup %5971 }
 0x4b8   : > { %v5974_v18 = vpop.eup %5973  ;;  %5975 = vpow2.f32 %v2133_v26  ;;  %v2234_v29 = vadd.f32 %v7721_v36, %v7719_v54 }
 0x4b9   : > { %5977 = vpow2.f32 %v2135_v49  ;;  %v2197_v23 = vpop.xlane.xlu1 %2196  ;;  %v2311_v33 = vmul.f32 %v5974_v18, %v7533_v50  ;;  %v2312_v46 = vmul.f32 %v5974_v18, %v7537_v9 }
 0x4ba   : > { %2235 = vadd.xlane.f32.xlu0 %v2234_v29  ;;  %5979 = vrcp.f32 %v2197_v23 }
 0x4bb   : > { %v2365_v14 = vpack.c.bf16 %v2311_v33, %v2309_v28  ;;  %v2366_v57 = vpack.c.bf16 %v2312_v46, %v2310_v59  ;;  %5981 = vrcp.f32 %v2200_v13 }
 0x4bc   : > { %v2492_v60 = vpop.f32.mrf.mxu0 }
 0x4bd   : > { %2417 = vmatmul.bf16.gmra.mxu3 %v2365_v14  ;;  %2506 = vmatmul.bf16.gmra.mxu0 %v2366_v57 }
 0x4be   : > { %v7731_v55 = vpop.eup %5975 }
 0x4bf   : > { %v7733_v44 = vpop.eup %5977 }
 0x4c0   : > { %v2237_v50 = vadd.f32 %v7733_v44, %v7731_v55  ;;  %v5980_v53 = vpop.eup %5979 }
 0x4c1   : > { %v1936_v48 = vpop.xlane.xlu1 %1935  ;;  %v2403_v12 = vpop.f32.mrf.mxu3  ;;  %v2313_v28 = vmul.f32 %v5980_v53, %v7546_v51  ;;  %v2314_v23 = vmul.f32 %v5980_v53, %v7548_v61 }
 0x4c2   : > { %v2011_v9 = vsub.f32 %v7562_v43, %v1936_v48  ;;  %v2012_v8 = vsub.f32 %v7566_v19, %v1936_v48  ;;  %2238 = vadd.xlane.f32.xlu0 %v2237_v50  ;;  %v7739_v3 = vadd.f32 %v2492_v60, %v2403_v12  ;;  %v5982_v29 = vpop.eup %5981 }
 0x4c3   : > { %v2315_v43 = vmul.f32 %v5982_v29, %v7476_v35  ;;  %v2316_v19 = vmul.f32 %v5982_v29, %v7480_v1  ;;  %v1588_v35 = vpop.f32.mrf.mxu1 }
 0x4c4   : > { %v2113_v26 = vmul.f32 1.442695, %v2011_v9  ;;  %v2115_v49 = vmul.f32 1.442695, %v2012_v8  ;;  %v7741_v18 = vpop.f32.mrf.mxu0 }
 0x4c5   : > { %v2367_v60 = vpack.c.bf16 %v2315_v43, %v2313_v28  ;;  %v2368_v13 = vpack.c.bf16 %v2316_v19, %v2314_v23  ;;  %v1743_v43 = vmul.f32 0.17677669, %v1588_v35  ;;  %v1807_v19 = vld [vmem:[%s9558_s1 + $0x1d0] sm:$0xff] }
 0x4c6   : > { %5983 = vpow2.f32 %v2113_v26 }
 0x4c7   : > { %5985 = vpow2.f32 %v2115_v49 }
 0x4c9   : > { %v2203_v33 = vpop.xlane.xlu0 %2202  ;;  %v1939_v59 = vpop.xlane.xlu1 %1938 }
 0x4ca   : > { %v2013_v46 = vsub.f32 %v7580_v40, %v1939_v59  ;;  %v2014_v14 = vsub.f32 %v7584_v30, %v1939_v59  ;;  %v7749_v57 = vpop.f32.mrf.mxu3  ;;  %5987 = vrcp.f32 %v2203_v33  ;;  %v1677_v40 = vpop.f32.mrf.mxu2 }
 0x4cc   : > { %v7751_v50 = vpop.eup %5983  ;;  %v2117_v48 = vmul.f32 1.442695, %v2013_v46  ;;  %v2119_v51 = vmul.f32 1.442695, %v2014_v14  ;;  %v2497_v1 = vpop.f32.mrf.mxu0  ;;  %v1744_v46 = vmul.f32 0.17677669, %v1677_v40  ;;  %v7784_v40 = vadd.f32 %v1807_v19, %v1743_v43 }
 0x4cd   : > { %v7753_v12 = vpop.eup %5985  ;;  %2422 = vmatmul.bf16.gmra.mxu3 %v2367_v60  ;;  %2511 = vmatmul.bf16.gmra.mxu0 %v2368_v13  ;;  %v1591_v14 = vpop.f32.mrf.mxu1 }
 0x4ce   : > { %5989 = vpow2.f32 %v2117_v48  ;;  %v2222_v61 = vadd.f32 %v7753_v12, %v7751_v50 }
 0x4cf   : > { %5991 = vpow2.f32 %v2119_v51 }
 0x4d0   : > { %5993 = vrcp.f32 %v7708_v47  ;;  %2223 = vadd.xlane.f32.xlu2 %v2222_v61  ;;  %v5988_v26 = vpop.eup %5987 }
 0x4d1   : > { %v1942_v30 = vpop.xlane.xlu0 %1941 }
 0x4d2   : > { %v2015_v9 = vsub.f32 %v7602_v39, %v1942_v30  ;;  %v2016_v8 = vsub.f32 %v7606_v63, %v1942_v30  ;;  %v2408_v53 = vpop.f32.mrf.mxu3  ;;  %v2317_v39 = vmul.f32 %v5988_v26, %v7582_v45  ;;  %v2318_v63 = vmul.f32 %v5988_v26, %v7586_v11  ;;  %v1808_v45 = vld [vmem:[%s9558_s1 + $0x1d8] sm:$0xff]  ;;  %v1680_v30 = vpop.f32.mrf.mxu2 }
 0x4d3   : > { %v7760_v49 = vadd.f32 %v2497_v1, %v2408_v53  ;;  %v1746_v43 = vmul.f32 0.17677669, %v1680_v30 }
 0x4d4   : > { %v7762_v29 = vpop.eup %5989  ;;  %v2121_v28 = vmul.f32 1.442695, %v2015_v9  ;;  %v2123_v23 = vmul.f32 1.442695, %v2016_v8  ;;  %v7773_v60 = vpop.f32.mrf.mxu0 }
 0x4d5   : > { %v7764_v33 = vpop.eup %5991 }
 0x4d6   : > { %v5994_v59 = vpop.eup %5993  ;;  %5995 = vpow2.f32 %v2121_v28  ;;  %v2225_v47 = vadd.f32 %v7764_v33, %v7762_v29 }
 0x4d7   : > { %5997 = vpow2.f32 %v2123_v23  ;;  %v2319_v51 = vmul.f32 %v5994_v59, %v7494_v4  ;;  %v2320_v35 = vmul.f32 %v5994_v59, %v7496_v34  ;;  %v7788_v34 = vadd.f32 %v1808_v45, %v1744_v46  ;;  %v1809_v59 = vld [vmem:[%s9558_s1 + $0x1e0] sm:$0xff] }
 0x4d8   : > { %2226 = vadd.xlane.f32.xlu2 %v2225_v47  ;;  %v1810_v47 = vld [vmem:[%s9558_s1 + $0x1e8] sm:$0xff] }
 0x4d9   : > { %v2212_v13 = vpop.xlane.xlu1 %2211  ;;  %v1945_v48 = vpop.xlane.xlu0 %1944  ;;  %v2369_v9 = vpack.c.bf16 %v2319_v51, %v2317_v39  ;;  %v2370_v8 = vpack.c.bf16 %v2320_v35, %v2318_v63  ;;  %v1964_v23 = vmax.f32 %v7784_v40, %v7788_v34  ;;  %v7809_v35 = vadd.f32 %v1810_v47, %v1746_v43  ;;  %v1812_v43 = vld [vmem:[%s9558_s1 + $0x1f8] sm:$0xff] }
 0x4da   : > { %v2017_v11 = vsub.f32 %v7620_v2, %v1945_v48  ;;  %v2018_v1 = vsub.f32 %v7626_v52, %v1945_v48  ;;  %v7782_v61 = vpop.f32.mrf.mxu3  ;;  %5999 = vrcp.f32 %v2212_v13  ;;  %v1745_v2 = vmul.f32 0.17677669, %v1591_v14  ;;  %v1593_v13 = vpop.f32.mrf.mxu1 }
 0x4db   : > { %v1682_v45 = vpop.f32.mrf.mxu2 }
 0x4dc   : > { %v7786_v53 = vpop.eup %5995  ;;  %v2125_v4 = vmul.f32 1.442695, %v2017_v11  ;;  %v2127_v26 = vmul.f32 1.442695, %v2018_v1  ;;  %v7803_v63 = vadd.f32 %v1809_v59, %v1745_v2  ;;  %v2502_v19 = vpop.f32.mrf.mxu0  ;;  %v1747_v1 = vmul.f32 0.17677669, %v1593_v13 }
 0x4dd   : > { %v7790_v28 = vpop.eup %5997  ;;  %2427 = vmatmul.bf16.gmra.mxu3 %v2369_v9  ;;  %2516 = vmatmul.bf16.gmra.mxu0 %v2370_v8  ;;  %v1748_v2 = vmul.f32 0.17677669, %v1682_v45 }
 0x4de   : > { %6001 = vpow2.f32 %v2125_v4  ;;  %v2228_v52 = vadd.f32 %v7790_v28, %v7786_v53  ;;  %v1967_v9 = vmax.f32 %v7803_v63, %v7809_v35 }
 0x4df   : > { %6003 = vpow2.f32 %v2127_v26  ;;  %v1811_v26 = vld [vmem:[%s9558_s1 + $0x1f0] sm:$0xff]  ;;  %v7831_v45 = vadd.f32 %v1812_v43, %v1748_v2 }
 0x4e0   : > { %6005 = vrcp.f32 %v7710_v38  ;;  %2229 = vadd.xlane.f32.xlu1 %v2228_v52  ;;  %1965 = vmax.xlane.f32.xlu2 %v1964_v23  ;;  %v6000_v14 = vpop.eup %5999  ;;  %v7829_v47 = vadd.f32 %v1811_v26, %v1747_v1 }
 0x4e1   : > { %v2215_v39 = vpop.xlane.xlu1 %2214  ;;  %v2323_v8 = vmul.f32 %v6000_v14, %v7624_v22  ;;  %v2324_v4 = vmul.f32 %v6000_v14, %v7628_v37 }
 0x4e2   : > { %v2413_v46 = vpop.f32.mrf.mxu3  ;;  %6007 = vrcp.f32 %v2215_v39 }
 0x4e3   : > { %v7805_v48 = vadd.f32 %v2502_v19, %v2413_v46 }
 0x4e4   : > { %v7807_v51 = vpop.eup %6001 }
 0x4e5   : > { %v7811_v38 = vpop.eup %6003 }
 0x4e6   : > { %v6006_v11 = vpop.eup %6005  ;;  %v2231_v30 = vadd.f32 %v7811_v38, %v7807_v51 }
 0x4e7   : > { %v2321_v23 = vmul.f32 %v6006_v11, %v7500_v5  ;;  %v2322_v59 = vmul.f32 %v6006_v11, %v7502_v10  ;;  %v1970_v10 = vmax.f32 %v7829_v47, %v7831_v45 }
 0x4e8   : > { %2232 = vadd.xlane.f32.xlu1 %v2231_v30  ;;  %1968 = vmax.xlane.f32.xlu2 %v1967_v9  ;;  %v6008_v1 = vpop.eup %6007 }
 0x4e9   : > { %v1954_v52 = vpop.xlane.xlu1 %1953  ;;  %v2371_v19 = vpack.c.bf16 %v2323_v8, %v2321_v23  ;;  %v2372_v46 = vpack.c.bf16 %v2324_v4, %v2322_v59  ;;  %v2326_v23 = vmul.f32 %v6008_v1, %v7638_v6 }
 0x4ea   : > { %v2023_v22 = vsub.f32 %v7650_v24, %v1954_v52  ;;  %v2024_v37 = vsub.f32 %v7652_v27, %v1954_v52 }
 0x4ec   : > { %v2137_v14 = vmul.f32 1.442695, %v2023_v22  ;;  %v2139_v13 = vmul.f32 1.442695, %v2024_v37 }
 0x4ed   : > { %2432 = vmatmul.bf16.gmra.mxu3 %v2371_v19  ;;  %2521 = vmatmul.bf16.gmra.mxu0 %v2372_v46 }
 0x4ee   : > { %6009 = vpow2.f32 %v2137_v14  ;;  %v2218_v5 = vpop.xlane.xlu0 %2217 }
 0x4ef   : > { %6011 = vpow2.f32 %v2139_v13 }
 0x4f0   : > { %6013 = vrcp.f32 %v2218_v5  ;;  %1971 = vmax.xlane.f32.xlu1 %v1970_v10 }
 0x4f1   : > { %v1957_v24 = vpop.xlane.xlu1 %1956 }
 0x4f2   : > { %v2025_v27 = vsub.f32 %v7668_v21, %v1957_v24  ;;  %v2026_v11 = vsub.f32 %v7672_v0, %v1957_v24  ;;  %v2325_v0 = vmul.f32 %v6008_v1, %v7636_v16 }
 0x4f4   : > { %v7837_v30 = vpop.eup %6009  ;;  %v2141_v9 = vmul.f32 1.442695, %v2025_v27  ;;  %v2143_v39 = vmul.f32 1.442695, %v2026_v11 }
 0x4f5   : > { %v7839_v8 = vpop.eup %6011 }
 0x4f6   : > { %v6014_v4 = vpop.eup %6013  ;;  %6015 = vpow2.f32 %v2141_v9  ;;  %v2221_v26 = vpop.xlane.xlu0 %2220  ;;  %v2240_v2 = vadd.f32 %v7839_v8, %v7837_v30  ;;  %v5500_v9 = vld [vmem:[%s6482_s26 + $0x10] sm:$0xff] }
 0x4f7   : > { %6017 = vpow2.f32 %v2143_v39  ;;  %v2327_v52 = vmul.f32 %v6014_v4, %v7661_v42  ;;  %v2328_v21 = vmul.f32 %v6014_v4, %v7666_v32  ;;  %v7871_v39 = vpop.f32.mrf.mxu0  ;;  %v7873_v4 = vpop.f32.mrf.mxu3 }
 0x4f8   : > { %2241 = vadd.xlane.f32.xlu2 %v2240_v2 }
 0x4f9   : > { %v2373_v59 = vpack.c.bf16 %v2327_v52, %v2325_v0  ;;  %v2374_v43 = vpack.c.bf16 %v2328_v21, %v2326_v23  ;;  %v5505_v21 = vld [vmem:[%s6482_s26 + $0x38] sm:$0xff] }
 0x4fa   : > { %2796 = vmatpush.bf16.msrb.mxu0 %v5505_v21 }
 0x4fc   : > { %v7847_v22 = vpop.eup %6015 }
 0x4fd   : > { %v7849_v37 = vpop.eup %6017  ;;  %2437 = vmatmul.bf16.gmra.mxu3 %v2373_v59  ;;  %2526 = vmatmul.bf16.gmra.mxu0 %v2374_v43 }
 0x4fe   : > { %v1960_v19 = vpop.xlane.xlu0 %1959  ;;  %v2243_v46 = vadd.f32 %v7849_v37, %v7847_v22 }
 0x4ff   : > { %v2027_v42 = vsub.f32 %v7688_v62, %v1960_v19  ;;  %v2028_v32 = vsub.f32 %v7690_v15, %v1960_v19 }
 0x500   : > { %2244 = vadd.xlane.f32.xlu1 %v2243_v46 }
 0x501   : > { %v2145_v16 = vmul.f32 1.442695, %v2027_v42  ;;  %v2147_v14 = vmul.f32 1.442695, %v2028_v32 }
 0x503   : > { %6019 = vpow2.f32 %v2145_v16 }
 0x504   : > { %6021 = vpow2.f32 %v2147_v14 }
 0x506   : > { %v1963_v6 = vpop.xlane.xlu0 %1962 }
 0x507   : > { %v2029_v13 = vsub.f32 %v7700_v58, %v1963_v6  ;;  %v2030_v5 = vsub.f32 %v7702_v20, %v1963_v6  ;;  %v5501_v20 = vld [vmem:[%s6482_s26 + $0x18] sm:$0xff] }
 0x508   : > { %5618 = vmatpush.bf16.msra.mxu3 %v5501_v20  ;;  %2621 = vmatpush.bf16.msrb.mxu1 %v5501_v20 }
 0x509   : > { %v7857_v10 = vpop.eup %6019  ;;  %v2149_v24 = vmul.f32 1.442695, %v2029_v13  ;;  %v2151_v27 = vmul.f32 1.442695, %v2030_v5 }
 0x50a   : > { %v7859_v11 = vpop.eup %6021 }
 0x50b   : > { %6023 = vpow2.f32 %v2149_v24  ;;  %v2246_v62 = vadd.f32 %v7859_v11, %v7857_v10 }
 0x50c   : > { %6025 = vpow2.f32 %v2151_v27  ;;  %2622 = vmatpush.bf16.msrb.mxu1 %v5500_v9  ;;  %5619 = vmatpush.bf16.msra.mxu3 %v5500_v9 }
 0x50d   : > { %2247 = vadd.xlane.f32.xlu0 %v2246_v62  ;;  %6027 = vrcp.f32 %v2221_v26 }
 0x511   : > { %v7863_v15 = vpop.eup %6023 }
 0x512   : > { %v7865_v1 = vpop.eup %6025 }
 0x513   : > { %v2249_v58 = vadd.f32 %v7865_v1, %v7863_v15  ;;  %v6028_v59 = vpop.eup %6027 }
 0x514   : > { %v2329_v16 = vmul.f32 %v6028_v59, %v7676_v41  ;;  %v2330_v5 = vmul.f32 %v6028_v59, %v7678_v17 }
 0x515   : > { %2250 = vadd.xlane.f32.xlu2 %v2249_v58 }
 0x53a   : > { %v2507_v2 = vpop.f32.mrf.mxu0 }
 0x540   : > { %v2418_v52 = vpop.f32.mrf.mxu3 }
 0x541   : > { %v2508_v19 = vadd.f32 %v2507_v2, %v2418_v52 }
 0x542   : > { %v2509_v0 = vpop.f32.mrf.mxu0 }
 0x543   : > { %v2224_v23 = vpop.xlane.xlu2 %2223 }
 0x544   : > { %6029 = vrcp.f32 %v2224_v23 }
 0x548   : > { %v2420_v43 = vpop.f32.mrf.mxu3 }
 0x549   : > { %v2510_v46 = vadd.f32 %v2509_v0, %v2420_v43 }
 0x54a   : > { %v6030_v42 = vpop.eup %6029  ;;  %v2512_v32 = vpop.f32.mrf.mxu0 }
 0x54b   : > { %v2587_v14 = vpack.c.bf16 %v2510_v46, %v2508_v19  ;;  %v2227_v6 = vpop.xlane.xlu2 %2226  ;;  %v2331_v13 = vmul.f32 %v6030_v42, %v7751_v50  ;;  %v2332_v26 = vmul.f32 %v6030_v42, %v7753_v12 }
 0x54c   : > { %6031 = vrcp.f32 %v2227_v6 }
 0x54d   : > { %4997 = vmatmul.msk.bf16.vlgmr.msrb.gmra.mxu1 %vm1410_vm9, %v2587_v14  ;;  %v2375_v24 = vpack.c.bf16 %v2331_v13, %v2329_v16  ;;  %v2376_v27 = vpack.c.bf16 %v2332_v26, %v2330_v5 }
 0x54f   : > { %2442 = vmatmul.bf16.gmra.mxu3 %v2375_v24  ;;  %2531 = vmatmul.bf16.gmra.mxu0 %v2376_v27  ;;  %v2236_v27 = vpop.xlane.xlu0 %2235 }
 0x550   : > { %v2423_v62 = vpop.f32.mrf.mxu3 }
 0x551   : > { %v2513_v21 = vadd.f32 %v2512_v32, %v2423_v62 }
 0x552   : > { %v2514_v58 = vpop.f32.mrf.mxu0  ;;  %v6032_v52 = vpop.eup %6031 }
 0x553   : > { %v2230_v20 = vpop.xlane.xlu1 %2229  ;;  %v1966_v9 = vpop.xlane.xlu2 %1965  ;;  %v2333_v43 = vmul.f32 %v6032_v52, %v7762_v29 }
 0x554   : > { %6033 = vrcp.f32 %v2230_v20  ;;  %v2031_v41 = vsub.f32 %v7784_v40, %v1966_v9  ;;  %v2032_v50 = vsub.f32 %v7788_v34, %v1966_v9  ;;  %v2334_v40 = vmul.f32 %v6032_v52, %v7764_v33 }
 0x556   : > { %v2153_v2 = vmul.f32 1.442695, %v2031_v41  ;;  %v2155_v17 = vmul.f32 1.442695, %v2032_v50 }
 0x558   : > { %6035 = vpow2.f32 %v2153_v2  ;;  %v2425_v12 = vpop.f32.mrf.mxu3 }
 0x559   : > { %6037 = vpow2.f32 %v2155_v17  ;;  %v2515_v0 = vadd.f32 %v2514_v58, %v2425_v12 }
 0x55a   : > { %v6034_v23 = vpop.eup %6033  ;;  %v2517_v59 = vpop.f32.mrf.mxu0 }
 0x55b   : > { %v2588_v19 = vpack.c.bf16 %v2515_v0, %v2513_v21  ;;  %v2233_v46 = vpop.xlane.xlu1 %2232  ;;  %v1969_v42 = vpop.xlane.xlu2 %1968  ;;  %v2335_v16 = vmul.f32 %v6034_v23, %v7786_v53  ;;  %v2336_v34 = vmul.f32 %v6034_v23, %v7790_v28 }
 0x55c   : > { %v2033_v14 = vsub.f32 %v7803_v63, %v1969_v42  ;;  %v2034_v6 = vsub.f32 %v7809_v35, %v1969_v42  ;;  %6039 = vrcp.f32 %v2233_v46 }
 0x55d   : > { %4998 = vmatmul.msk.bf16.gmra.mxu1 %vm1410_vm9, %v2588_v19  ;;  %v2377_v32 = vpack.c.bf16 %v2335_v16, %v2333_v43  ;;  %v2378_v13 = vpack.c.bf16 %v2336_v34, %v2334_v40  ;;  %v2239_v34 = vpop.xlane.xlu0 %2238 }
 0x55e   : > { %v7890_v5 = vpop.eup %6035  ;;  %v2157_v29 = vmul.f32 1.442695, %v2033_v14  ;;  %v2159_v26 = vmul.f32 1.442695, %v2034_v6 }
 0x55f   : > { %v7892_v24 = vpop.eup %6037  ;;  %2447 = vmatmul.bf16.gmra.mxu3 %v2377_v32  ;;  %2536 = vmatmul.bf16.gmra.mxu0 %v2378_v13 }
 0x560   : > { %6041 = vpow2.f32 %v2157_v29  ;;  %v2428_v33 = vpop.f32.mrf.mxu3  ;;  %v2252_v53 = vadd.f32 %v7892_v24, %v7890_v5 }
 0x561   : > { %6043 = vpow2.f32 %v2159_v26  ;;  %v2518_v17 = vadd.f32 %v2517_v59, %v2428_v33 }
 0x562   : > { %6045 = vrcp.f32 %v2236_v27  ;;  %2253 = vadd.xlane.f32.xlu1 %v2252_v53  ;;  %v2519_v28 = vpop.f32.mrf.mxu0  ;;  %v6040_v58 = vpop.eup %6039 }
 0x563   : > { %v1972_v63 = vpop.xlane.xlu1 %1971 }
 0x564   : > { %v2035_v35 = vsub.f32 %v7829_v47, %v1972_v63  ;;  %v2036_v62 = vsub.f32 %v7831_v45, %v1972_v63  ;;  %v2337_v47 = vmul.f32 %v6040_v58, %v7807_v51  ;;  %v2338_v45 = vmul.f32 %v6040_v58, %v7811_v38 }
 0x566   : > { %v7898_v20 = vpop.eup %6041  ;;  %v2161_v9 = vmul.f32 1.442695, %v2035_v35  ;;  %v2163_v41 = vmul.f32 1.442695, %v2036_v62 }
 0x567   : > { %v7900_v50 = vpop.eup %6043 }
 0x568   : > { %v6046_v2 = vpop.eup %6045  ;;  %6047 = vpow2.f32 %v2161_v9  ;;  %v2430_v52 = vpop.f32.mrf.mxu3  ;;  %v2255_v12 = vadd.f32 %v7900_v50, %v7898_v20 }
 0x569   : > { %6049 = vpow2.f32 %v2163_v41  ;;  %v2520_v21 = vadd.f32 %v2519_v28, %v2430_v52  ;;  %v2339_v43 = vmul.f32 %v6046_v2, %v7719_v54  ;;  %v2340_v19 = vmul.f32 %v6046_v2, %v7721_v36  ;;  %v5504_v52 = vld [vmem:[%s6482_s26 + $0x30] sm:$0xff] }
 0x56a   : > { %2256 = vadd.xlane.f32.xlu0 %v2255_v12  ;;  %v2522_v23 = vpop.f32.mrf.mxu0  ;;  %2797 = vmatpush.bf16.msrb.mxu0 %v5504_v52 }
 0x56b   : > { %v2589_v0 = vpack.c.bf16 %v2520_v21, %v2518_v17  ;;  %v2242_v46 = vpop.xlane.xlu2 %2241  ;;  %v2379_v59 = vpack.c.bf16 %v2339_v43, %v2337_v47  ;;  %v2380_v42 = vpack.c.bf16 %v2340_v19, %v2338_v45 }
 0x56c   : > { %6051 = vrcp.f32 %v2242_v46 }
 0x56d   : > { %4999 = vmatmul.msk.bf16.gmra.mxu1 %vm1410_vm9, %v2589_v0  ;;  %6053 = vrcp.f32 %v2239_v34 }
 0x56e   : > { %v7909_v16 = vpop.eup %6047 }
 0x56f   : > { %v7911_v40 = vpop.eup %6049  ;;  %2452 = vmatmul.bf16.gmra.mxu3 %v2379_v59  ;;  %2541 = vmatmul.bf16.gmra.mxu0 %v2380_v42  ;;  %v5498_v59 = vld [vmem:[%s6482_s26] sm:$0xff] }
 0x570   : > { %v2433_v51 = vpop.f32.mrf.mxu3  ;;  %v2258_v38 = vadd.f32 %v7911_v40, %v7909_v16 }
 0x571   : > { %v7915_v54 = vadd.f32 %v2522_v23, %v2433_v51 }
 0x572   : > { %2259 = vadd.xlane.f32.xlu2 %v2258_v38  ;;  %v7917_v36 = vpop.f32.mrf.mxu0  ;;  %v6052_v14 = vpop.eup %6051 }
 0x573   : > { %v6054_v6 = vpop.eup %6053  ;;  %v2343_v13 = vmul.f32 %v6052_v14, %v7837_v30  ;;  %v2344_v29 = vmul.f32 %v6052_v14, %v7839_v8  ;;  %v2245_v28 = vpop.xlane.xlu1 %2244 }
 0x574   : > { %v2341_v26 = vmul.f32 %v6054_v6, %v7731_v55  ;;  %v2342_v27 = vmul.f32 %v6054_v6, %v7733_v44 }
 0x576   : > { %v2381_v33 = vpack.c.bf16 %v2343_v13, %v2341_v26  ;;  %v2382_v53 = vpack.c.bf16 %v2344_v29, %v2342_v27 }
 0x578   : > { %v7919_v32 = vpop.f32.mrf.mxu3 }
 0x57a   : > { %v2527_v63 = vpop.f32.mrf.mxu0 }
 0x57f   : > { %2457 = vmatmul.bf16.gmra.mxu3 %v2381_v33  ;;  %2546 = vmatmul.bf16.gmra.mxu0 %v2382_v53  ;;  %v5503_v33 = vld [vmem:[%s6482_s26 + $0x28] sm:$0xff] }
 0x580   : > { %v2248_v35 = vpop.xlane.xlu0 %2247  ;;  %v2438_v62 = vpop.f32.mrf.mxu3  ;;  %2731 = vmatpush.bf16.msrb.mxu3 %v5503_v33 }
 0x581   : > { %6055 = vrcp.f32 %v2248_v35  ;;  %v7925_v58 = vadd.f32 %v2527_v63, %v2438_v62 }
 0x582   : > { %6057 = vrcp.f32 %v2245_v28  ;;  %v7932_v12 = vpop.f32.mrf.mxu0  ;;  %v5502_v28 = vld [vmem:[%s6482_s26 + $0x20] sm:$0xff] }
 0x584   : > { %2732 = vmatpush.bf16.msrb.mxu3 %v5502_v28 }
 0x587   : > { %v6056_v30 = vpop.eup %6055 }
 0x588   : > { %v6058_v9 = vpop.eup %6057  ;;  %v2347_v8 = vmul.f32 %v6056_v30, %v7857_v10  ;;  %v2348_v55 = vmul.f32 %v6056_v30, %v7859_v11  ;;  %v7934_v21 = vpop.f32.mrf.mxu3 }
 0x589   : > { %v2345_v44 = vmul.f32 %v6058_v9, %v7847_v22  ;;  %v2346_v41 = vmul.f32 %v6058_v9, %v7849_v37  ;;  %v2251_v10 = vpop.xlane.xlu2 %2250  ;;  %v5499_v37 = vld [vmem:[%s6482_s26 + $0x8] sm:$0xff] }
 0x58a   : > { %6059 = vrcp.f32 %v2251_v10  ;;  %2674 = vmatpush.bf16.msrb.mxu2 %v5499_v37 }
 0x58b   : > { %v2383_v2 = vpack.c.bf16 %v2347_v8, %v2345_v44  ;;  %v2384_v17 = vpack.c.bf16 %v2348_v55, %v2346_v41 }
 0x58e   : > { %2675 = vmatpush.bf16.msrb.mxu2 %v5498_v59  ;;  %v2505_v59 = vadd.f32 %v7871_v39, %v7873_v4 }
 0x58f   : > { %2462 = vmatmul.bf16.gmra.mxu3 %v2383_v2  ;;  %2551 = vmatmul.bf16.gmra.mxu0 %v2384_v17  ;;  %v2490_v17 = vadd.f32 %v7715_v7, %v7726_v56  ;;  %v2530_v7 = vadd.f32 %v7932_v12, %v7934_v21 }
 0x590   : > { %v6060_v23 = vpop.eup %6059 }
 0x591   : > { %v2349_v42 = vmul.f32 %v6060_v23, %v7863_v15  ;;  %v2350_v51 = vmul.f32 %v6060_v23, %v7865_v1 }
 0x5cc   : > { %v2532_v47 = vpop.f32.mrf.mxu0 }
 0x5d2   : > { %v2443_v45 = vpop.f32.mrf.mxu3 }
 0x5d3   : > { %v7936_v11 = vadd.f32 %v2532_v47, %v2443_v45  ;;  %v2495_v45 = vadd.f32 %v7741_v18, %v7749_v57  ;;  %v2500_v57 = vadd.f32 %v7773_v60, %v7782_v61  ;;  %v2586_v61 = vpack.c.bf16 %v2505_v59, %v7805_v48 }
 0x5d4   : > { %v7938_v22 = vpop.f32.mrf.mxu0 }
 0x5d5   : > { %v2254_v0 = vpop.xlane.xlu1 %2253 }
 0x5d6   : > { %6061 = vrcp.f32 %v2254_v0 }
 0x5da   : > { %v7941_v43 = vpop.f32.mrf.mxu3 }
 0x5db   : > { %v2535_v12 = vadd.f32 %v7938_v22, %v7941_v43 }
 0x5dc   : > { %v6062_v19 = vpop.eup %6061  ;;  %v2537_v46 = vpop.f32.mrf.mxu0 }
 0x5dd   : > { %v2351_v34 = vmul.f32 %v6062_v19, %v7890_v5  ;;  %v2352_v38 = vmul.f32 %v6062_v19, %v7892_v24  ;;  %v2257_v13 = vpop.xlane.xlu0 %2256 }
 0x5de   : > { %6063 = vrcp.f32 %v2257_v13 }
 0x5df   : > { %v2385_v14 = vpack.c.bf16 %v2351_v34, %v2349_v42  ;;  %v2386_v6 = vpack.c.bf16 %v2352_v38, %v2350_v51 }
 0x5e1   : > { %2467 = vmatmul.bf16.gmra.mxu3 %v2385_v14  ;;  %2556 = vmatmul.bf16.gmra.mxu0 %v2386_v6 }
 0x5e2   : > { %v2448_v29 = vpop.f32.mrf.mxu3 }
 0x5e3   : > { %v7948_v26 = vadd.f32 %v2537_v46, %v2448_v29  ;;  %v2698_v46 = vpack.c.bf16 %v2535_v12, %v7936_v11 }
 0x5e4   : > { %v2539_v27 = vpop.f32.mrf.mxu0  ;;  %v6064_v5 = vpop.eup %6063 }
 0x5e5   : > { %v2260_v15 = vpop.xlane.xlu2 %2259  ;;  %v2354_v63 = vmul.f32 %v6064_v5, %v7900_v50  ;;  %v2353_v62 = vmul.f32 %v6064_v5, %v7898_v20  ;;  %v2525_v50 = vadd.f32 %v7917_v36, %v7919_v32  ;;  %v2583_v20 = vpack.c.bf16 %v2490_v17, %v7706_v25  ;;  %v2624_v5 = vpop.f32.mrf.mxu1 }
 0x5e6   : > { %6065 = vrcp.f32 %v2260_v15  ;;  %v2584_v25 = vpack.c.bf16 %v2495_v45, %v7739_v3 }
 0x5ea   : > { %v2450_v1 = vpop.f32.mrf.mxu3 }
 0x5eb   : > { %v2540_v60 = vadd.f32 %v2539_v27, %v2450_v1 }
 0x5ec   : > { %v6066_v53 = vpop.eup %6065  ;;  %v2542_v24 = vpop.f32.mrf.mxu0 }
 0x5ed   : > { %v2356_v35 = vmul.f32 %v6066_v53, %v7911_v40  ;;  %v2355_v30 = vmul.f32 %v6066_v53, %v7909_v16  ;;  %v2590_v16 = vpack.c.bf16 %v2525_v50, %v7915_v54  ;;  %v2697_v54 = vpack.c.bf16 %v2530_v7, %v7925_v58 }
 0x5ee   : > { %v2585_v58 = vpack.c.bf16 %v2500_v57, %v7760_v49  ;;  %v2699_v22 = vpack.c.bf16 %v2540_v60, %v7948_v26 }
 0x5ef   : > { %v2388_v9 = vpack.c.bf16 %v2356_v35, %v2354_v63  ;;  %v2387_v8 = vpack.c.bf16 %v2355_v30, %v2353_v62  ;;  %v2626_v62 = vpop.f32.mrf.mxu1 }
 0x5f1   : > { %2472 = vmatmul.bf16.gmra.mxu3 %v2387_v8  ;;  %2561 = vmatmul.bf16.vlgmr.msra.gmra.mxu2 %v2388_v9  ;;  %v6211_v9 = vld [vmem:[#allocation2 + $0x30] sm:$0xff] }
 0x5f2   : > { %v2453_v55 = vpop.f32.mrf.mxu3 }
 0x5f3   : > { %v2543_v44 = vadd.f32 %v2542_v24, %v2453_v55 }
 0x5f4   : > { %v2544_v41 = vpop.f32.mrf.mxu0 }
 0x5fa   : > { %v2455_v2 = vpop.f32.mrf.mxu3 }
 0x5fb   : > { %v2545_v49 = vadd.f32 %v2544_v41, %v2455_v2 }
 0x5fc   : > { %v2547_v40 = vpop.f32.mrf.mxu0 }
 0x5fd   : > { %v2700_v11 = vpack.c.bf16 %v2545_v49, %v2543_v44 }
 0x601   : > { %5000 = vmatmul.msk.bf16.vlgmr.msra.gmra.mxu3 %vm1410_vm9, %v2590_v16  ;;  %5009 = vmatmul.msk.bf16.vlgmr.msrb.gmra.mxu2 %vm1410_vm9, %v2583_v20  ;;  %v2629_v20 = vpop.f32.mrf.mxu1  ;;  %v6212_v16 = vld [vmem:[#allocation2] sm:$0xff] }
 0x602   : > { %v2458_v52 = vpop.f32.mrf.mxu3 }
 0x603   : > { %v2548_v56 = vadd.f32 %v2547_v40, %v2458_v52 }
 0x604   : > { %v2549_v47 = vpop.f32.mrf.mxu0 }
 0x60a   : > { %v2460_v10 = vpop.f32.mrf.mxu3 }
 0x60b   : > { %v2550_v36 = vadd.f32 %v2549_v47, %v2460_v10 }
 0x60c   : > { %v2552_v37 = vpop.f32.mrf.mxu0 }
 0x60d   : > { %v2762_v32 = vpack.c.bf16 %v2550_v36, %v2548_v56 }
 0x60f   : > { %5033 = vmatmul.msk.bf16.vlgmr.msrb.gmra.mxu0 %vm1410_vm9, %v2762_v32 }
 0x611   : > { %5010 = vmatmul.msk.bf16.gmra.mxu2 %vm1410_vm9, %v2584_v25  ;;  %5021 = vmatmul.msk.bf16.vlgmr.msrb.gmra.mxu3 %vm1410_vm9, %v2697_v54  ;;  %v6213_v25 = vld [vmem:[#allocation2 + $0x18] sm:$0xff] }
 0x612   : > { %v2463_v0 = vpop.f32.mrf.mxu3 }
 0x613   : > { %v2553_v21 = vadd.f32 %v2552_v37, %v2463_v0  ;;  %v2631_v37 = vpop.f32.mrf.mxu1 }
 0x614   : > { %v2554_v23 = vpop.f32.mrf.mxu0 }
 0x61a   : > { %v2465_v18 = vpop.f32.mrf.mxu3 }
 0x61b   : > { %v2555_v3 = vadd.f32 %v2554_v23, %v2465_v18  ;;  %v2634_v60 = vpop.f32.mrf.mxu1 }
 0x61d   : > { %v2763_v19 = vpack.c.bf16 %v2555_v3, %v2553_v21  ;;  %v6214_v3 = vld [vmem:[#allocation2 + $0x10] sm:$0xff] }
 0x61f   : > { %5034 = vmatmul.msk.bf16.gmra.mxu0 %vm1410_vm9, %v2763_v19 }
 0x621   : > { %5011 = vmatmul.msk.bf16.gmra.mxu2 %vm1410_vm9, %v2585_v58  ;;  %5022 = vmatmul.msk.bf16.gmra.mxu3 %vm1410_vm9, %v2698_v46 }
 0x631   : > { %5012 = vmatmul.msk.bf16.gmra.mxu2 %vm1410_vm9, %v2586_v61  ;;  %5023 = vmatmul.msk.bf16.gmra.mxu3 %vm1410_vm9, %v2699_v22 }
 0x641   : > { %5024 = vmatmul.msk.bf16.gmra.mxu3 %vm1410_vm9, %v2700_v11 }
 0x65e   : > { %v2557_v43 = vpop.f32.mrf.mxu0 }
 0x664   : > { %v2468_v42 = vpop.f32.mrf.mxu3 }
 0x665   : > { %v2558_v38 = vadd.f32 %v2557_v43, %v2468_v42 }
 0x666   : > { %v2559_v34 = vpop.f32.mrf.mxu0 }
 0x66c   : > { %v2470_v51 = vpop.f32.mrf.mxu3 }
 0x66d   : > { %v2560_v14 = vadd.f32 %v2559_v34, %v2470_v51  ;;  %v6215_v34 = vld [vmem:[#allocation2 + $0x8] sm:$0xff] }
 0x66f   : > { %v2764_v39 = vpack.c.bf16 %v2560_v14, %v2558_v38  ;;  %v2636_v38 = vpop.f32.mrf.mxu1 }
 0x671   : > { %5035 = vmatmul.msk.bf16.gmra.mxu0 %vm1410_vm9, %v2764_v39 }
 0x674   : > { %v2473_v48 = vpop.f32.mrf.mxu3  ;;  %v2562_v4 = vpop.f32.mrf.mxu2 }
 0x675   : > { %v2563_v29 = vadd.f32 %v2562_v4, %v2473_v48  ;;  %v5263_v48 = vld [vmem:[%s6505_s27 + $0x1c0] sm:$0xf] }
 0x676   : > { %v5566_v4 = vld [vmem:[%s6505_s27 + $0x1dc] sm:$0xf0] }
 0x67c   : > { %v2475_v6 = vpop.f32.mrf.mxu3  ;;  %v2564_v13 = vpop.f32.mrf.mxu2 }
 0x67d   : > { %v2565_v26 = vadd.f32 %v2564_v13, %v2475_v6  ;;  %v5562_v6 = vld [vmem:[%s6505_s27 + $0x1c4] sm:$0xf]  ;;  %v5264_v13 = vor.u32 %v5566_v4, %v5263_v48 }
 0x67f   : > { %v2765_v27 = vpack.c.bf16 %v2565_v26, %v2563_v29  ;;  %v5265_v29 = vld [vmem:[%s6505_s27 + $0x1e0] sm:$0xf0]  ;;  %v5271_v26 = vld [vmem:[%s6505_s27 + $0x1c8] sm:$0xf]  ;;  %3363 = vmatpush.bf16.msra.mxu1 %v5264_v13  ;;  %v5539_v13 = vld [vmem:[%s6505_s27 + $0x10c] sm:$0xf] }
 0x681   : > { %5036 = vmatmul.msk.bf16.gmra.mxu0 %vm1410_vm9, %v2765_v27  ;;  %v5567_v27 = vld [vmem:[%s6505_s27 + $0x1e4] sm:$0xf0] }
 0x684   : > { %v7991_v33 = vpop.f32.mrf.mxu3  ;;  %v2677_v15 = vpop.f32.mrf.mxu2 }
 0x685   : > { %v2678_v24 = vadd.f32 %v2677_v15, %v2624_v5  ;;  %v5268_v5 = vor.u32 %v5562_v6, %v5265_v29  ;;  %v5177_v29 = vld [vmem:[%s6505_s27 + $0x128] sm:$0xf0] }
 0x687   : > { %3392 = vmatpush.bf16.msra.mxu2 %v5268_v5 }
 0x68c   : > { %v7993_v1 = vpop.f32.mrf.mxu3  ;;  %v2799_v53 = vpop.f32.mrf.mxu0 }
 0x68d   : > { %v2679_v28 = vpop.f32.mrf.mxu2 }
 0x68e   : > { %v2680_v44 = vadd.f32 %v2679_v28, %v2626_v62  ;;  %v5273_v28 = vld [vmem:[%s6505_s27 + $0x1e8] sm:$0xf0] }
 0x694   : > { %v2734_v63 = vpop.f32.mrf.mxu3  ;;  %v2801_v55 = vpop.f32.mrf.mxu0 }
 0x695   : > { %v2754_v35 = vadd.f32 %v2734_v63, %v2678_v24  ;;  %v2682_v50 = vpop.f32.mrf.mxu2  ;;  %v5563_v24 = vld [vmem:[%s6505_s27 + $0x1cc] sm:$0xf] }
 0x696   : > { %v2683_v47 = vadd.f32 %v2682_v50, %v2629_v20  ;;  %v5276_v62 = vor.u32 %v5563_v24, %v5273_v28  ;;  %v5239_v50 = vld [vmem:[%s6505_s27 + $0x188] sm:$0xf]  ;;  %v6216_v20 = vld [vmem:[#allocation2 + $0x20] sm:$0xff] }
 0x697   : > { %v2819_v30 = vadd.f32 %v2799_v53, %v2754_v35  ;;  %v5272_v53 = vor.u32 %v5567_v27, %v5271_v26  ;;  %v5180_v27 = vor.u32 %v5539_v13, %v5177_v29  ;;  %v5534_v24 = vld [vmem:[%s6505_s27 + $0xdc] sm:$0xf0]  ;;  %v5530_v28 = vld [vmem:[%s6505_s27 + $0xc4] sm:$0xf] }
 0x698   : > { %3450 = vmatpush.bf16.msra.mxu0 %v5276_v62  ;;  %v5143_v62 = vld [vmem:[%s6505_s27 + $0xc8] sm:$0xf] }
 0x699   : > { %v7995_v8 = vadd.f32 %v6211_v9, %v2819_v30  ;;  %3421 = vmatpush.bf16.msra.mxu3 %v5272_v53  ;;  %v5231_v9 = vld [vmem:[%s6505_s27 + $0x180] sm:$0xf] }
 0x69a   : > { %v5135_v53 = vld [vmem:[%s6505_s27 + $0xc0] sm:$0xf] }
 0x69b   : > { %9607 = vst [vmem:[#allocation12_spill] sm:$0xff] %v7995_v8  ;;  %v2836_v41 = vmul.f32 %v7995_v8, %v7995_v8 }
 0x69c   : > { %v2736_v2 = vpop.f32.mrf.mxu3  ;;  %v2804_v45 = vpop.f32.mrf.mxu0 }
 0x69d   : > { %v2755_v17 = vadd.f32 %v2736_v2, %v2680_v44  ;;  %2844 = vadd.xlane.f32.xlu1 %v2836_v41  ;;  %v2684_v32 = vpop.f32.mrf.mxu2  ;;  %v5554_v44 = vld [vmem:[%s6505_s27 + $0x184] sm:$0xf] }
 0x69e   : > { %v2685_v0 = vadd.f32 %v2684_v32, %v2631_v37  ;;  %v5550_v37 = vld [vmem:[%s6505_s27 + $0x15c] sm:$0xf0] }
 0x69f   : > { %v2820_v40 = vadd.f32 %v2801_v55, %v2755_v17  ;;  %v5558_v55 = vld [vmem:[%s6505_s27 + $0x19c] sm:$0xf0]  ;;  %v5233_v17 = vld [vmem:[%s6505_s27 + $0x1a0] sm:$0xf0] }
 0x6a0   : > { %v5232_v2 = vor.u32 %v5558_v55, %v5231_v9 }
 0x6a1   : > { %v7999_v52 = vadd.f32 %v6212_v16, %v2820_v40  ;;  %v5559_v40 = vld [vmem:[%s6505_s27 + $0x1a4] sm:$0xf0] }
 0x6a2   : > { %3364 = vmatpush.bf16.msra.mxu1 %v5232_v2 }
 0x6a3   : > { %9608 = vst [vmem:[#allocation13_spill] sm:$0xff] %v7999_v52  ;;  %v2837_v10 = vmul.f32 %v7999_v52, %v7999_v52 }
 0x6a4   : > { %v2739_v7 = vpop.f32.mrf.mxu3  ;;  %v2806_v12 = vpop.f32.mrf.mxu0 }
 0x6a5   : > { %v2756_v56 = vadd.f32 %v2739_v7, %v2683_v47  ;;  %2846 = vadd.xlane.f32.xlu0 %v2837_v10  ;;  %v2687_v46 = vpop.f32.mrf.mxu2  ;;  %v5236_v47 = vor.u32 %v5554_v44, %v5233_v17  ;;  %v5240_v10 = vor.u32 %v5559_v40, %v5239_v50  ;;  %v5241_v7 = vld [vmem:[%s6505_s27 + $0x1a8] sm:$0xf0]  ;;  %v5103_v40 = vld [vmem:[%s6505_s27 + $0x80] sm:$0xf] }
 0x6a6   : > { %v2688_v61 = vadd.f32 %v2687_v46, %v2634_v60  ;;  %v5209_v46 = vld [vmem:[%s6505_s27 + $0x168] sm:$0xf0] }
 0x6a7   : > { %v2821_v36 = vadd.f32 %v2804_v45, %v2756_v56  ;;  %v5555_v45 = vld [vmem:[%s6505_s27 + $0x18c] sm:$0xf]  ;;  %3393 = vmatpush.bf16.msra.mxu2 %v5236_v47  ;;  %3422 = vmatpush.bf16.msra.mxu3 %v5240_v10  ;;  %v5522_v47 = vld [vmem:[%s6505_s27 + $0x84] sm:$0xf] }
 0x6a8   : > { %v5244_v56 = vor.u32 %v5555_v45, %v5241_v7  ;;  %v5531_v44 = vld [vmem:[%s6505_s27 + $0xcc] sm:$0xf]  ;;  %v5105_v45 = vld [vmem:[%s6505_s27 + $0xa0] sm:$0xf0]  ;;  %v5111_v7 = vld [vmem:[%s6505_s27 + $0x88] sm:$0xf] }
 0x6a9   : > { %v8003_v54 = vadd.f32 %v6213_v25, %v2821_v36  ;;  %v5199_v25 = vld [vmem:[%s6505_s27 + $0x140] sm:$0xf] }
 0x6aa   : > { %3451 = vmatpush.bf16.msra.mxu0 %v5244_v56  ;;  %v5527_v56 = vld [vmem:[%s6505_s27 + $0xa4] sm:$0xf0] }
 0x6ab   : > { %9609 = vst [vmem:[#allocation14_spill] sm:$0xff] %v8003_v54  ;;  %v2838_v23 = vmul.f32 %v8003_v54, %v8003_v54 }
 0x6ac   : > { %v2741_v18 = vpop.f32.mrf.mxu3 }
 0x6ad   : > { %v2757_v57 = vadd.f32 %v2741_v18, %v2685_v0  ;;  %2848 = vadd.xlane.f32.xlu2 %v2838_v23  ;;  %v2689_v22 = vpop.f32.mrf.mxu2  ;;  %v5546_v0 = vld [vmem:[%s6505_s27 + $0x144] sm:$0xf]  ;;  %v5200_v23 = vor.u32 %v5550_v37, %v5199_v25  ;;  %v5108_v25 = vor.u32 %v5522_v47, %v5105_v45  ;;  %v5112_v37 = vor.u32 %v5527_v56, %v5111_v7 }
 0x6ae   : > { %v2690_v14 = vadd.f32 %v2689_v22, %v2636_v38  ;;  %v5201_v18 = vld [vmem:[%s6505_s27 + $0x160] sm:$0xf0]  ;;  %v5167_v22 = vld [vmem:[%s6505_s27 + $0x100] sm:$0xf]  ;;  %v5175_v38 = vld [vmem:[%s6505_s27 + $0x108] sm:$0xf] }
 0x6af   : > { %v2822_v21 = vadd.f32 %v2806_v12, %v2757_v57  ;;  %v5207_v57 = vld [vmem:[%s6505_s27 + $0x148] sm:$0xf]  ;;  %3365 = vmatpush.bf16.msra.mxu1 %v5200_v23  ;;  %v5113_v23 = vld [vmem:[%s6505_s27 + $0xa8] sm:$0xf0] }
 0x6b0   : > { %v5551_v12 = vld [vmem:[%s6505_s27 + $0x164] sm:$0xf0] }
 0x6b1   : > { %v8007_v19 = vadd.f32 %v6214_v3, %v2822_v21  ;;  %v5208_v3 = vor.u32 %v5551_v12, %v5207_v57  ;;  %v5071_v12 = vld [vmem:[%s6505_s27 + $0x40] sm:$0xf] }
 0x6b3   : > { %9610 = vst [vmem:[#allocation15_spill] sm:$0xff] %v8007_v19  ;;  %v2839_v58 = vmul.f32 %v8007_v19, %v8007_v19  ;;  %3423 = vmatpush.bf16.msra.mxu3 %v5208_v3 }
 0x6b4   : > { %v2744_v59 = vpop.f32.mrf.mxu3 }
 0x6b5   : > { %2850 = vadd.xlane.f32.xlu1 %v2839_v58  ;;  %v2758_v49 = vadd.f32 %v2744_v59, %v2688_v61  ;;  %v2692_v63 = vpop.f32.mrf.mxu2  ;;  %v5547_v58 = vld [vmem:[%s6505_s27 + $0x14c] sm:$0xf] }
 0x6b6   : > { %v2693_v36 = vadd.f32 %v2692_v63, %v7991_v33  ;;  %v5204_v33 = vor.u32 %v5546_v0, %v5201_v18  ;;  %v5212_v60 = vor.u32 %v5547_v58, %v5209_v46  ;;  %v5136_v63 = vor.u32 %v5534_v24, %v5135_v53  ;;  %v5523_v0 = vld [vmem:[%s6505_s27 + $0x8c] sm:$0xf]  ;;  %v5073_v58 = vld [vmem:[%s6505_s27 + $0x60] sm:$0xf0]  ;;  %v5079_v46 = vld [vmem:[%s6505_s27 + $0x48] sm:$0xf] }
 0x6b7   : > { %v5116_v18 = vor.u32 %v5523_v0, %v5113_v23  ;;  %v8102_v0 = vld [vmem:[%s466_s13] ss:$0 sm:$0xff] }
 0x6b8   : > { %3394 = vmatpush.bf16.msra.mxu2 %v5204_v33  ;;  %3452 = vmatpush.bf16.msra.mxu0 %v5212_v60  ;;  %v5514_v33 = vld [vmem:[%s6505_s27 + $0x44] sm:$0xf] }
 0x6b9   : > { %v5076_v60 = vor.u32 %v5514_v33, %v5073_v58 }
 0x6bc   : > { %v2746_v11 = vpop.f32.mrf.mxu3  ;;  %3453 = vmatpush.bf16.msra.mxu0 %v5180_v27  ;;  %v5507_v27 = vld [vmem:[%s6505_s27 + $0xc] sm:$0xf] }
 0x6bd   : > { %v2759_v15 = vadd.f32 %v2746_v11, %v2690_v14  ;;  %v5538_v11 = vld [vmem:[%s6505_s27 + $0x104] sm:$0xf]  ;;  %v5543_v14 = vld [vmem:[%s6505_s27 + $0x124] sm:$0xf0] }
 0x6be   : > { %v5176_v6 = vor.u32 %v5543_v14, %v5175_v38 }
 0x6c0   : > { %3424 = vmatpush.bf16.msra.mxu3 %v5176_v6  ;;  %v5511_v6 = vld [vmem:[%s6505_s27 + $0x24] sm:$0xf0] }
 0x6c4   : > { %v2749_v41 = vpop.f32.mrf.mxu3 }
 0x6c5   : > { %v2760_v21 = vadd.f32 %v2749_v41, %v2693_v36  ;;  %v5145_v41 = vld [vmem:[%s6505_s27 + $0xe8] sm:$0xf0]  ;;  %v6218_v36 = vld [vmem:[#allocation2 + $0x38] sm:$0xff] }
 0x6c6   : > { %v5148_v17 = vor.u32 %v5531_v44, %v5145_v41 }
 0x6c8   : > { %3454 = vmatpush.bf16.msra.mxu0 %v5148_v17 }
 0x6cc   : > { %v2751_v26 = vpop.f32.mrf.mxu3  ;;  %3455 = vmatpush.bf16.msra.mxu0 %v5116_v18 }
 0x6ee   : > { %v2809_v43 = vpop.f32.mrf.mxu0 }
 0x6ef   : > { %v2823_v42 = vadd.f32 %v2809_v43, %v2758_v49  ;;  %v5542_v49 = vld [vmem:[%s6505_s27 + $0x11c] sm:$0xf0]  ;;  %v2694_v43 = vpop.f32.mrf.mxu2 }
 0x6f1   : > { %v8011_v51 = vadd.f32 %v6215_v34, %v2823_v42  ;;  %v5168_v42 = vor.u32 %v5542_v49, %v5167_v22  ;;  %v5169_v34 = vld [vmem:[%s6505_s27 + $0x120] sm:$0xf0]  ;;  %v5515_v22 = vld [vmem:[%s6505_s27 + $0x4c] sm:$0xf] }
 0x6f2   : > { %v5172_v4 = vor.u32 %v5538_v11, %v5169_v34  ;;  %v5081_v49 = vld [vmem:[%s6505_s27 + $0x68] sm:$0xf0]  ;;  %v5506_v34 = vld [vmem:[%s6505_s27 + $0x4] sm:$0xf] }
 0x6f3   : > { %9611 = vst [vmem:[#allocation16_spill] sm:$0xff] %v8011_v51  ;;  %v2840_v39 = vmul.f32 %v8011_v51, %v8011_v51  ;;  %3366 = vmatpush.bf16.msra.mxu1 %v5168_v42  ;;  %v5084_v11 = vor.u32 %v5515_v22, %v5081_v49  ;;  %v5510_v42 = vld [vmem:[%s6505_s27 + $0x1c] sm:$0xf0] }
 0x6f4   : > { %3395 = vmatpush.bf16.msra.mxu2 %v5172_v4  ;;  %v5047_v4 = vld [vmem:[%s6505_s27 + $0x8] sm:$0xf] }
 0x6f5   : > { %2852 = vadd.xlane.f32.xlu0 %v2840_v39  ;;  %v6217_v39 = vld [vmem:[#allocation2 + $0x28] sm:$0xff]  ;;  %3456 = vmatpush.bf16.msra.mxu0 %v5084_v11 }
 0x6f6   : > { %v2811_v35 = vpop.f32.mrf.mxu0 }
 0x6f7   : > { %v2824_v30 = vadd.f32 %v2811_v35, %v2759_v15  ;;  %v2695_v15 = vadd.f32 %v2694_v43, %v7993_v1  ;;  %v5137_v35 = vld [vmem:[%s6505_s27 + $0xe0] sm:$0xf0]  ;;  %3367 = vmatpush.bf16.msra.mxu1 %v5136_v63  ;;  %v5039_v43 = vld [vmem:[%s6505_s27] sm:$0xf] }
 0x6f8   : > { %v5140_v1 = vor.u32 %v5530_v28, %v5137_v35  ;;  %v5040_v14 = vor.u32 %v5510_v42, %v5039_v43 }
 0x6f9   : > { %v8029_v16 = vadd.f32 %v6216_v20, %v2824_v30  ;;  %v5535_v30 = vld [vmem:[%s6505_s27 + $0xe4] sm:$0xf0]  ;;  %v2761_v9 = vadd.f32 %v2751_v26, %v2695_v15  ;;  %v5526_v20 = vld [vmem:[%s6505_s27 + $0x9c] sm:$0xf0]  ;;  %v5048_v26 = vor.u32 %v5511_v6, %v5047_v4  ;;  %v5049_v15 = vld [vmem:[%s6505_s27 + $0x28] sm:$0xf0] }
 0x6fa   : > { %v5144_v55 = vor.u32 %v5535_v30, %v5143_v62  ;;  %3396 = vmatpush.bf16.msra.mxu2 %v5140_v1  ;;  %v5104_v10 = vor.u32 %v5526_v20, %v5103_v40 }
 0x6fb   : > { %9612 = vst [vmem:[#allocation17_spill] sm:$0xff] %v8029_v16  ;;  %v2841_v32 = vmul.f32 %v8029_v16, %v8029_v16 }
 0x6fc   : > { %3425 = vmatpush.bf16.msra.mxu3 %v5144_v55  ;;  %3368 = vmatpush.bf16.msra.mxu1 %v5104_v10 }
 0x6fd   : > { %2854 = vadd.xlane.f32.xlu2 %v2841_v32 }
 0x6fe   : > { %v2814_v59 = vpop.f32.mrf.mxu0  ;;  %3397 = vmatpush.bf16.msra.mxu2 %v5108_v25 }
 0x6ff   : > { %v2825_v61 = vadd.f32 %v2814_v59, %v2760_v21  ;;  %v5518_v21 = vld [vmem:[%s6505_s27 + $0x5c] sm:$0xf0]  ;;  %v5519_v59 = vld [vmem:[%s6505_s27 + $0x64] sm:$0xf0] }
 0x700   : > { %3426 = vmatpush.bf16.msra.mxu3 %v5112_v37  ;;  %v5072_v3 = vor.u32 %v5518_v21, %v5071_v12 }
 0x701   : > { %v8050_v48 = vadd.f32 %v6217_v39, %v2825_v61  ;;  %v5080_v61 = vor.u32 %v5519_v59, %v5079_v46  ;;  %v5041_v39 = vld [vmem:[%s6505_s27 + $0x20] sm:$0xf0] }
 0x702   : > { %3369 = vmatpush.bf16.msra.mxu1 %v5072_v3  ;;  %3398 = vmatpush.bf16.msra.mxu2 %v5076_v60  ;;  %v5044_v29 = vor.u32 %v5506_v34, %v5041_v39 }
 0x703   : > { %9613 = vst [vmem:[#allocation18_spill] sm:$0xff] %v8050_v48  ;;  %v2842_v5 = vmul.f32 %v8050_v48, %v8050_v48 }
 0x704   : > { %3427 = vmatpush.bf16.msra.mxu3 %v5080_v61 }
 0x705   : > { %2856 = vadd.xlane.f32.xlu1 %v2842_v5  ;;  %v5052_v5 = vor.u32 %v5507_v27, %v5049_v15  ;;  %v5569_v15 = vld [vmem:[%s6505_s27 + $0x1f4] sm:$0xf0] }
 0x706   : > { %v2816_v2 = vpop.f32.mrf.mxu0  ;;  %3370 = vmatpush.bf16.msra.mxu1 %v5040_v14  ;;  %3399 = vmatpush.bf16.msra.mxu2 %v5044_v29  ;;  %v5281_v29 = vld [vmem:[%s6505_s27 + $0x1f0] sm:$0xf0] }
 0x707   : > { %v2826_v50 = vadd.f32 %v2816_v2, %v2761_v9  ;;  %3457 = vmatpush.bf16.msra.mxu0 %v5052_v5 }
 0x708   : > { %3428 = vmatpush.bf16.msra.mxu3 %v5048_v26  ;;  %v5287_v26 = vld [vmem:[%s6505_s27 + $0x1d8] sm:$0xf] }
 0x709   : > { %v8071_v32 = vadd.f32 %v6218_v36, %v2826_v50  ;;  %v5288_v5 = vor.u32 %v5569_v15, %v5287_v26  ;;  %v5544_v15 = vld [vmem:[%s6505_s27 + $0x12c] sm:$0xf0] }
 0x70b   : > { %9614 = vst [vmem:[#allocation19_spill] sm:$0xff] %v8071_v32  ;;  %v2843_v57 = vmul.f32 %v8071_v32, %v8071_v32 }
 0x70c   : > { %3537 = vmatpush.bf16.msrb.mxu3 %v5288_v5  ;;  %v5541_v5 = vld [vmem:[%s6505_s27 + $0x11c] sm:$0xf] }
 0x70d   : > { %2858 = vadd.xlane.f32.xlu0 %v2843_v57 }
 0x710   : > { %v2845_v38 = vpop.xlane.xlu1 %2844 }
 0x711   : > { %v2860_v13 = vmul.f32 %v2845_v38, %v6615_v31 }
 0x713   : > { %v2868_v53 = vadd.f32 1e-05, %v2860_v13  ;;  %v5564_v13 = vld [vmem:[%s6505_s27 + $0x1d4] sm:$0xf] }
 0x714   : > { %v5284_v27 = vor.u32 %v5564_v13, %v5281_v29  ;;  %v5545_v13 = vld [vmem:[%s6505_s27 + $0x134] sm:$0xf0]  ;;  %v5183_v29 = vld [vmem:[%s6505_s27 + $0x110] sm:$0xf] }
 0x715   : > { %6067 = vrsqrt.f32 %v2868_v53  ;;  %vm2882_vm11 = vweird.f32 %v2868_v53 }
 0x716   : > { %3508 = vmatpush.bf16.msrb.mxu2 %v5284_v27 }
 0x718   : > { %v2847_v24 = vpop.xlane.xlu0 %2846 }
 0x719   : > { %v2861_v28 = vmul.f32 %v2847_v24, %v6615_v31 }
 0x71b   : > { %v6068_v63 = vpop.eup %6067  ;;  %v2869_v35 = vadd.f32 1e-05, %v2861_v28 }
 0x71c   : > { %v2877_v62 = vmul.f32 %v6068_v63, %v2868_v53  ;;  %vm2883_vm10 = vweird.f32 %v6068_v63 }
 0x71d   : > { %6069 = vrsqrt.f32 %v2869_v35  ;;  %vm2884_vm12 = vmor %vm2882_vm11, %vm2883_vm10  ;;  %vm2892_vm14 = vweird.f32 %v2869_v35 }
 0x71e   : > { %v2878_v30 = vmul.f32 %v6068_v63, %v2877_v62 }
 0x720   : > { %v2879_v9 = vmul.f32 0.5, %v2878_v30  ;;  %v2849_v1 = vpop.xlane.xlu2 %2848  ;;  %v5255_v30 = vld [vmem:[%s6505_s27 + $0x198] sm:$0xf] }
 0x721   : > { %v2862_v55 = vmul.f32 %v2849_v1, %v6615_v31  ;;  %v5279_v1 = vld [vmem:[%s6505_s27 + $0x1d0] sm:$0xf] }
 0x722   : > { %v2880_v44 = vsub.f32 1.5, %v2879_v9  ;;  %v5561_v9 = vld [vmem:[%s6505_s27 + $0x1b4] sm:$0xf0] }
 0x723   : > { %v6070_v41 = vpop.eup %6069  ;;  %v2870_v2 = vadd.f32 1e-05, %v2862_v55  ;;  %v5256_v55 = vor.u32 %v5561_v9, %v5255_v30 }
 0x724   : > { %v2887_v17 = vmul.f32 %v6070_v41, %v2869_v35  ;;  %v2881_v50 = vmul.f32 %v6068_v63, %v2880_v44  ;;  %vm2893_vm13 = vweird.f32 %v6070_v41  ;;  %v5249_v35 = vld [vmem:[%s6505_s27 + $0x1b0] sm:$0xf0]  ;;  %v5568_v44 = vld [vmem:[%s6505_s27 + $0x1ec] sm:$0xf0] }
 0x725   : > { %6071 = vrsqrt.f32 %v2870_v2  ;;  %vm2894_vm15 = vmor %vm2892_vm14, %vm2893_vm13  ;;  %vm2902_vm1 = vweird.f32 %v2870_v2  ;;  %3538 = vmatpush.bf16.msrb.mxu3 %v5256_v55  ;;  %v5537_v55 = vld [vmem:[%s6505_s27 + $0xf4] sm:$0xf0] }
 0x726   : > { %v2888_v40 = vmul.f32 %v6070_v41, %v2887_v17  ;;  %v2885_v45 = vsel %vm2884_vm12, %v6068_v63, %v2881_v50  ;;  %v5556_v63 = vld [vmem:[%s6505_s27 + $0x194] sm:$0xf]  ;;  %v5280_v17 = vor.u32 %v5568_v44, %v5279_v1  ;;  %v5159_v1 = vld [vmem:[%s6505_s27 + $0xd8] sm:$0xf] }
 0x727   : > { %v2956_v23 = vmul.f32 %v2885_v45, %v7995_v8  ;;  %v5252_v62 = vor.u32 %v5556_v63, %v5249_v35  ;;  %v5532_v63 = vld [vmem:[%s6505_s27 + $0xd4] sm:$0xf] }
 0x728   : > { %v2889_v20 = vmul.f32 0.5, %v2888_v40  ;;  %v2851_v47 = vpop.xlane.xlu1 %2850  ;;  %3479 = vmatpush.bf16.msrb.mxu1 %v5280_v17  ;;  %v5153_v35 = vld [vmem:[%s6505_s27 + $0xf0] sm:$0xf0]  ;;  %v5193_v17 = vld [vmem:[%s6505_s27 + $0x138] sm:$0xf0] }
 0x729   : > { %v2863_v10 = vmul.f32 %v2851_v47, %v6615_v31  ;;  %v2967_v33 = vmul.f32 %v8102_v0, %v2956_v23  ;;  %3509 = vmatpush.bf16.msrb.mxu2 %v5252_v62  ;;  %v5560_v47 = vld [vmem:[%s6505_s27 + $0x1ac] sm:$0xf0]  ;;  %v5553_v23 = vld [vmem:[%s6505_s27 + $0x174] sm:$0xf0]  ;;  %v5184_v62 = vor.u32 %v5544_v15, %v5183_v29  ;;  %v5156_v9 = vor.u32 %v5532_v63, %v5153_v35  ;;  %v5524_v44 = vld [vmem:[%s6505_s27 + $0x94] sm:$0xf] }
 0x72a   : > { %v2890_v7 = vsub.f32 1.5, %v2889_v20  ;;  %v5247_v20 = vld [vmem:[%s6505_s27 + $0x190] sm:$0xf]  ;;  %v5508_v15 = vld [vmem:[%s6505_s27 + $0x14] sm:$0xf] }
 0x72b   : > { %v6072_v56 = vpop.eup %6071  ;;  %v2871_v36 = vadd.f32 1e-05, %v2863_v10  ;;  %v5557_v10 = vld [vmem:[%s6505_s27 + $0x19c] sm:$0xf] }
 0x72c   : > { %v2891_v25 = vmul.f32 %v6070_v41, %v2890_v7  ;;  %v2897_v37 = vmul.f32 %v6072_v56, %v2870_v2  ;;  %vm2903_vm0 = vweird.f32 %v6072_v56  ;;  %v5289_v2 = vld [vmem:[%s6505_s27 + $0x1f8] sm:$0xf0]  ;;  %v5548_v7 = vld [vmem:[%s6505_s27 + $0x154] sm:$0xf] }
 0x72d   : > { %6073 = vrsqrt.f32 %v2871_v36  ;;  %vm2904_vm2 = vmor %vm2902_vm1, %vm2903_vm0  ;;  %vm2912_vm4 = vweird.f32 %v2871_v36  ;;  %v5517_v35 = vld [vmem:[%s6505_s27 + $0x5c] sm:$0xf] }
 0x72e   : > { %v2895_v18 = vsel %vm2894_vm15, %v6070_v41, %v2891_v25  ;;  %v2898_v57 = vmul.f32 %v6072_v56, %v2897_v37  ;;  %v5565_v41 = vld [vmem:[%s6505_s27 + $0x1dc] sm:$0xf]  ;;  %v5248_v25 = vor.u32 %v5560_v47, %v5247_v20  ;;  %v5196_v20 = vor.u32 %v5541_v5, %v5193_v17  ;;  %v5127_v47 = vld [vmem:[%s6505_s27 + $0x98] sm:$0xf]  ;;  %v5057_v5 = vld [vmem:[%s6505_s27 + $0x30] sm:$0xf0] }
 0x72f   : > { %v2957_v12 = vmul.f32 %v2895_v18, %v7999_v52  ;;  %v5292_v50 = vor.u32 %v5565_v41, %v5289_v2  ;;  %v5257_v18 = vld [vmem:[%s6505_s27 + $0x1b8] sm:$0xf0]  ;;  %v5160_v41 = vor.u32 %v5537_v55, %v5159_v1  ;;  %v5121_v2 = vld [vmem:[%s6505_s27 + $0xb0] sm:$0xf0]  ;;  %v5063_v1 = vld [vmem:[%s6505_s27 + $0x18] sm:$0xf] }
 0x730   : > { %v2899_v21 = vmul.f32 0.5, %v2898_v57  ;;  %3480 = vmatpush.bf16.msrb.mxu1 %v5248_v25  ;;  %v5089_v25 = vld [vmem:[%s6505_s27 + $0x70] sm:$0xf0]  ;;  %v5513_v55 = vld [vmem:[%s6505_s27 + $0x34] sm:$0xf0] }
 0x731   : > { %v2968_v3 = vmul.f32 %v8102_v0, %v2957_v12  ;;  %3566 = vmatpush.bf16.msrb.mxu0 %v5292_v50  ;;  %v5596_v52 = vld [vmem:[%s6510_s25 + $0xd0] sm:$0xff] }
 0x732   : > { %v2900_v58 = vsub.f32 1.5, %v2899_v21 }
 0x733   : > { %v6074_v46 = vpop.eup %6073  ;;  %v8108_v59 = vpack.c.bf16 %v2968_v3, %v2967_v33  ;;  %v5260_v33 = vor.u32 %v5557_v10, %v5257_v18  ;;  %v5529_v10 = vld [vmem:[%s6505_s27 + $0xb4] sm:$0xf0] }
 0x734   : > { %v2907_v60 = vmul.f32 %v6074_v46, %v2871_v36  ;;  %v2901_v61 = vmul.f32 %v6072_v56, %v2900_v58  ;;  %vm2913_vm3 = vweird.f32 %v6074_v46  ;;  %v5223_v36 = vld [vmem:[%s6505_s27 + $0x158] sm:$0xf]  ;;  %v5215_v58 = vld [vmem:[%s6505_s27 + $0x150] sm:$0xf] }
 0x735   : > { %3371 = vmatmul.bf16.vlgmr.msra.gmra.mxu1 %v8108_v59  ;;  %3400 = vmatmul.bf16.vlgmr.msra.gmra.mxu2 %v8108_v59  ;;  %vm2914_vm5 = vmor %vm2912_vm4, %vm2913_vm3  ;;  %v5224_v21 = vor.u32 %v5553_v23, %v5223_v36  ;;  %v5516_v36 = vld [vmem:[%s6505_s27 + $0x54] sm:$0xf] }
 0x736   : > { %v2908_v22 = vmul.f32 %v6074_v46, %v2907_v60  ;;  %3429 = vmatmul.bf16.vlgmr.msra.gmra.mxu3 %v8108_v59  ;;  %3458 = vmatmul.bf16.vlgmr.msra.gmra.mxu0 %v8108_v59  ;;  %v2905_v11 = vsel %vm2904_vm2, %v6072_v56, %v2901_v61  ;;  %v5217_v56 = vld [vmem:[%s6505_s27 + $0x170] sm:$0xf0]  ;;  %v5549_v60 = vld [vmem:[%s6505_s27 + $0x15c] sm:$0xf] }
 0x737   : > { %v2958_v34 = vmul.f32 %v2905_v11, %v8003_v54  ;;  %v5220_v37 = vor.u32 %v5548_v7, %v5217_v56  ;;  %3539 = vmatpush.bf16.msrb.mxu3 %v5224_v21  ;;  %3567 = vmatpush.bf16.msrb.mxu0 %v5260_v33  ;;  %v5124_v7 = vor.u32 %v5524_v44, %v5121_v2  ;;  %v5536_v56 = vld [vmem:[%s6505_s27 + $0xec] sm:$0xf0]  ;;  %v5533_v33 = vld [vmem:[%s6505_s27 + $0xdc] sm:$0xf] }
 0x738   : > { %v2909_v49 = vmul.f32 0.5, %v2908_v22  ;;  %v5225_v22 = vld [vmem:[%s6505_s27 + $0x178] sm:$0xf0] }
 0x739   : > { %v2969_v39 = vmul.f32 %v8102_v0, %v2958_v34  ;;  %3510 = vmatpush.bf16.msrb.mxu2 %v5220_v37  ;;  %v5228_v11 = vor.u32 %v5549_v60, %v5225_v22  ;;  %v5540_v34 = vld [vmem:[%s6505_s27 + $0x114] sm:$0xf]  ;;  %v5095_v60 = vld [vmem:[%s6505_s27 + $0x58] sm:$0xf]  ;;  %v5119_v22 = vld [vmem:[%s6505_s27 + $0x90] sm:$0xf] }
 0x73a   : > { %v2910_v43 = vsub.f32 1.5, %v2909_v49 }
 0x73b   : > { %3568 = vmatpush.bf16.msrb.mxu0 %v5228_v11 }
 0x73c   : > { %v2911_v42 = vmul.f32 %v6074_v46, %v2910_v43 }
 0x73e   : > { %v2915_v38 = vsel %vm2914_vm5, %v6074_v46, %v2911_v42  ;;  %v5552_v46 = vld [vmem:[%s6505_s27 + $0x16c] sm:$0xf0] }
 0x73f   : > { %v2959_v14 = vmul.f32 %v2915_v38, %v8007_v19  ;;  %v5216_v61 = vor.u32 %v5552_v46, %v5215_v58  ;;  %v5185_v38 = vld [vmem:[%s6505_s27 + $0x130] sm:$0xf0]  ;;  %3569 = vmatpush.bf16.msrb.mxu0 %v5196_v20  ;;  %v5512_v20 = vld [vmem:[%s6505_s27 + $0x2c] sm:$0xf0] }
 0x741   : > { %v2970_v4 = vmul.f32 %v8102_v0, %v2959_v14  ;;  %3481 = vmatpush.bf16.msrb.mxu1 %v5216_v61  ;;  %v5521_v61 = vld [vmem:[%s6505_s27 + $0x74] sm:$0xf0] }
 0x743   : > { %v8118_v6 = vpack.c.bf16 %v2970_v4, %v2969_v39  ;;  %v5188_v39 = vor.u32 %v5540_v34, %v5185_v38  ;;  %v5191_v4 = vld [vmem:[%s6505_s27 + $0x118] sm:$0xf]  ;;  %v5092_v38 = vor.u32 %v5516_v36, %v5089_v25 }
 0x744   : > { %v5192_v27 = vor.u32 %v5545_v13, %v5191_v4  ;;  %v5087_v4 = vld [vmem:[%s6505_s27 + $0x50] sm:$0xf] }
 0x745   : > { %3376 = vmatmul.bf16.gmra.mxu1 %v8118_v6  ;;  %3405 = vmatmul.bf16.gmra.mxu2 %v8118_v6 }
 0x746   : > { %3434 = vmatmul.bf16.gmra.mxu3 %v8118_v6  ;;  %3463 = vmatmul.bf16.gmra.mxu0 %v8118_v6 }
 0x747   : > { %3511 = vmatpush.bf16.msrb.mxu2 %v5188_v39  ;;  %3540 = vmatpush.bf16.msrb.mxu3 %v5192_v27  ;;  %v5520_v27 = vld [vmem:[%s6505_s27 + $0x6c] sm:$0xf0] }
 0x748   : > { %3482 = vmatpush.bf16.msrb.mxu1 %v5184_v62 }
 0x74b   : > { %3512 = vmatpush.bf16.msrb.mxu2 %v5156_v9  ;;  %3541 = vmatpush.bf16.msrb.mxu3 %v5160_v41  ;;  %v5088_v9 = vor.u32 %v5520_v27, %v5087_v4  ;;  %v5060_v41 = vor.u32 %v5508_v15, %v5057_v5  ;;  %v5585_v4 = vld [vmem:[%s6510_s25 + $0x78] sm:$0xff]  ;;  %v5584_v15 = vld [vmem:[%s6510_s25 + $0x70] sm:$0xff] }
 0x74c   : > { %v5592_v5 = vld [vmem:[%s6510_s25 + $0xb0] sm:$0xff] }
 0x74f   : > { %3513 = vmatpush.bf16.msrb.mxu2 %v5124_v7 }
 0x753   : > { %3514 = vmatpush.bf16.msrb.mxu2 %v5092_v38 }
 0x757   : > { %3515 = vmatpush.bf16.msrb.mxu2 %v5060_v41 }
 0x75b   : > { %4568 = vmatpush.bf16.msra.mxu2 %v5585_v4 }
 0x75f   : > { %4569 = vmatpush.bf16.msra.mxu2 %v5584_v15 }
 0x768   : > { %v2853_v53 = vpop.xlane.xlu0 %2852 }
 0x769   : > { %v2864_v24 = vmul.f32 %v2853_v53, %v6615_v31 }
 0x76b   : > { %v8129_v28 = vadd.f32 1e-05, %v2864_v24 }
 0x76d   : > { %6075 = vrsqrt.f32 %v8129_v28  ;;  %vm2922_vm7 = vweird.f32 %v8129_v28 }
 0x770   : > { %v2855_v40 = vpop.xlane.xlu2 %2854 }
 0x771   : > { %v2865_v45 = vmul.f32 %v2855_v40, %v6615_v31 }
 0x773   : > { %v8149_v57 = vpop.eup %6075  ;;  %v8151_v12 = vadd.f32 1e-05, %v2865_v45  ;;  %v5151_v45 = vld [vmem:[%s6505_s27 + $0xd0] sm:$0xf] }
 0x774   : > { %v2917_v3 = vmul.f32 %v8149_v57, %v8129_v28  ;;  %vm2923_vm6 = vweird.f32 %v8149_v57  ;;  %v5128_v28 = vor.u32 %v5529_v10, %v5127_v47  ;;  %v5152_v21 = vor.u32 %v5536_v56, %v5151_v45  ;;  %v5509_v10 = vld [vmem:[%s6505_s27 + $0x1c] sm:$0xf] }
 0x775   : > { %6077 = vrsqrt.f32 %v8151_v12  ;;  %vm8195_vm8 = vmor %vm2922_vm7, %vm2923_vm6  ;;  %vm2932_vm10 = vweird.f32 %v8151_v12  ;;  %v5065_v45 = vld [vmem:[%s6505_s27 + $0x38] sm:$0xf0] }
 0x776   : > { %v2918_v49 = vmul.f32 %v8149_v57, %v2917_v3  ;;  %v5161_v3 = vld [vmem:[%s6505_s27 + $0xf8] sm:$0xf0]  ;;  %3483 = vmatpush.bf16.msrb.mxu1 %v5152_v21  ;;  %3542 = vmatpush.bf16.msrb.mxu3 %v5128_v28 }
 0x777   : > { %v5164_v46 = vor.u32 %v5533_v33, %v5161_v3 }
 0x778   : > { %v2919_v43 = vmul.f32 0.5, %v2918_v49  ;;  %v2857_v42 = vpop.xlane.xlu1 %2856 }
 0x779   : > { %v2866_v14 = vmul.f32 %v2857_v42, %v6615_v31  ;;  %v5525_v42 = vld [vmem:[%s6505_s27 + $0x9c] sm:$0xf]  ;;  %3570 = vmatpush.bf16.msrb.mxu0 %v5164_v46 }
 0x77a   : > { %v2920_v26 = vsub.f32 1.5, %v2919_v43  ;;  %v5528_v43 = vld [vmem:[%s6505_s27 + $0xac] sm:$0xf0] }
 0x77b   : > { %v8169_v53 = vpop.eup %6077  ;;  %v8171_v24 = vadd.f32 1e-05, %v2866_v14  ;;  %v5096_v14 = vor.u32 %v5521_v61, %v5095_v60  ;;  %v5120_v39 = vor.u32 %v5528_v43, %v5119_v22 }
 0x77c   : > { %v2927_v30 = vmul.f32 %v8169_v53, %v8151_v12  ;;  %v2921_v50 = vmul.f32 %v8149_v57, %v2920_v26  ;;  %vm2933_vm9 = vweird.f32 %v8169_v53  ;;  %v5097_v12 = vld [vmem:[%s6505_s27 + $0x78] sm:$0xf0] }
 0x77d   : > { %6079 = vrsqrt.f32 %v8171_v24  ;;  %vm2934_vm11 = vmor %vm2932_vm10, %vm2933_vm9  ;;  %3484 = vmatpush.bf16.msrb.mxu1 %v5120_v39  ;;  %3543 = vmatpush.bf16.msrb.mxu3 %v5096_v14  ;;  %v5100_v17 = vor.u32 %v5517_v35, %v5097_v12  ;;  %vm2942_vm13 = vweird.f32 %v8171_v24 }
 0x77e   : > { %v2928_v40 = vmul.f32 %v8169_v53, %v2927_v30  ;;  %v2925_v49 = vsel %vm8195_vm8, %v8149_v57, %v2921_v50  ;;  %v5129_v57 = vld [vmem:[%s6505_s27 + $0xb8] sm:$0xf0]  ;;  %v5064_v50 = vor.u32 %v5513_v55, %v5063_v1 }
 0x77f   : > { %v5132_v26 = vor.u32 %v5525_v42, %v5129_v57  ;;  %v2960_v63 = vmul.f32 %v2925_v49, %v8011_v51  ;;  %v5597_v51 = vld [vmem:[%s6510_s25 + $0xd8] sm:$0xff] }
 0x780   : > { %v2929_v23 = vmul.f32 0.5, %v2928_v40  ;;  %v2859_v18 = vpop.xlane.xlu0 %2858  ;;  %v5055_v40 = vld [vmem:[%s6505_s27 + $0x10] sm:$0xf] }
 0x781   : > { %v2867_v58 = vmul.f32 %v2859_v18, %v6615_v31  ;;  %3571 = vmatpush.bf16.msrb.mxu0 %v5132_v26  ;;  %3485 = vmatpush.bf16.msrb.mxu1 %v5088_v9  ;;  %v5056_v25 = vor.u32 %v5512_v20, %v5055_v40  ;;  %v5577_v26 = vld [vmem:[%s6510_s25 + $0x38] sm:$0xff] }
 0x782   : > { %v2930_v11 = vsub.f32 1.5, %v2929_v23  ;;  %3544 = vmatpush.bf16.msrb.mxu3 %v5064_v50  ;;  %v5068_v23 = vor.u32 %v5509_v10, %v5065_v45 }
 0x783   : > { %v8211_v34 = vpop.eup %6079  ;;  %v8213_v31 = vadd.f32 1e-05, %v2867_v58 }
 0x784   : > { %v2931_v13 = vmul.f32 %v8169_v53, %v2930_v11  ;;  %v2937_v29 = vmul.f32 %v8211_v34, %v8171_v24  ;;  %vm2943_vm12 = vweird.f32 %v8211_v34 }
 0x785   : > { %6081 = vrsqrt.f32 %v8213_v31  ;;  %3572 = vmatpush.bf16.msrb.mxu0 %v5100_v17  ;;  %3486 = vmatpush.bf16.msrb.mxu1 %v5056_v25  ;;  %vm2944_vm14 = vmor %vm2942_vm13, %vm2943_vm12  ;;  %vm2952_vm0 = vweird.f32 %v8213_v31 }
 0x786   : > { %v2935_v62 = vsel %vm2934_vm11, %v8169_v53, %v2931_v13  ;;  %v2938_v30 = vmul.f32 %v8211_v34, %v2937_v29  ;;  %v2971_v53 = vmul.f32 %v8102_v0, %v2960_v63  ;;  %v5593_v13 = vld [vmem:[%s6510_s25 + $0xb8] sm:$0xff] }
 0x787   : > { %v2961_v44 = vmul.f32 %v2935_v62, %v8029_v16  ;;  %4597 = vmatpush.bf16.msra.mxu3 %v5593_v13  ;;  %v5601_v63 = vld [vmem:[%s6510_s25 + $0xf8] sm:$0xff] }
 0x788   : > { %v2939_v2 = vmul.f32 0.5, %v2938_v30 }
 0x789   : > { %v2972_v47 = vmul.f32 %v8102_v0, %v2961_v44  ;;  %3573 = vmatpush.bf16.msrb.mxu0 %v5068_v23  ;;  %4539 = vmatpush.bf16.msra.mxu1 %v5577_v26 }
 0x78a   : > { %v2940_v7 = vsub.f32 1.5, %v2939_v2 }
 0x78b   : > { %v6082_v56 = vpop.eup %6081  ;;  %v2977_v36 = vpack.c.bf16 %v2972_v47, %v2971_v53  ;;  %4598 = vmatpush.bf16.msra.mxu3 %v5592_v5 }
 0x78c   : > { %v2947_v37 = vmul.f32 %v6082_v56, %v8213_v31  ;;  %v2941_v18 = vmul.f32 %v8211_v34, %v2940_v7  ;;  %vm2953_vm15 = vweird.f32 %v6082_v56 }
 0x78d   : > { %3381 = vmatmul.bf16.gmra.mxu1 %v2977_v36  ;;  %3410 = vmatmul.bf16.gmra.mxu2 %v2977_v36  ;;  %vm2954_vm1 = vmor %vm2952_vm0, %vm2953_vm15 }
 0x78e   : > { %v2948_v28 = vmul.f32 %v6082_v56, %v2947_v37  ;;  %3439 = vmatmul.bf16.gmra.mxu3 %v2977_v36  ;;  %3468 = vmatmul.bf16.gmra.mxu0 %v2977_v36  ;;  %v2945_v33 = vsel %vm2944_vm14, %v8211_v34, %v2941_v18 }
 0x78f   : > { %v2962_v46 = vmul.f32 %v2945_v33, %v8050_v48  ;;  %4626 = vmatpush.bf16.msra.mxu0 %v5601_v63 }
 0x790   : > { %v2949_v21 = vmul.f32 0.5, %v2948_v28 }
 0x791   : > { %v2973_v22 = vmul.f32 %v8102_v0, %v2962_v46 }
 0x792   : > { %v2950_v3 = vsub.f32 1.5, %v2949_v21 }
 0x794   : > { %v2951_v58 = vmul.f32 %v6082_v56, %v2950_v3 }
 0x796   : > { %v2955_v60 = vsel %vm2954_vm1, %v6082_v56, %v2951_v58 }
 0x797   : > { %v2963_v61 = vmul.f32 %v2955_v60, %v8071_v32 }
 0x799   : > { %v2974_v24 = vmul.f32 %v8102_v0, %v2963_v61 }
 0x79b   : > { %v2978_v49 = vpack.c.bf16 %v2974_v24, %v2973_v22 }
 0x79d   : > { %3386 = vmatmul.bf16.gmra.mxu1 %v2978_v49  ;;  %3415 = vmatmul.bf16.gmra.mxu2 %v2978_v49 }
 0x79e   : > { %3444 = vmatmul.bf16.gmra.mxu3 %v2978_v49  ;;  %3473 = vmatmul.bf16.gmra.mxu0 %v2978_v49 }
 0x7ad   : > { %3487 = vmatmul.bf16.vlgmr.msrb.gmra.mxu1 %v8108_v59  ;;  %3516 = vmatmul.bf16.vlgmr.msrb.gmra.mxu2 %v8108_v59 }
 0x7ae   : > { %3545 = vmatmul.bf16.vlgmr.msrb.gmra.mxu3 %v8108_v59  ;;  %3574 = vmatmul.bf16.vlgmr.msrb.gmra.mxu0 %v8108_v59 }
 0x7b2   : > { %v8259_v0 = vpop.f32.mrf.mxu1 }
 0x7b3   : > { %v5293_v59 = vmul.f32 -1.442695, %v8259_v0  ;;  %v8262_v11 = vpop.f32.mrf.mxu0 }
 0x7b4   : > { %v5296_v42 = vmul.f32 -1.442695, %v8262_v11 }
 0x7b5   : > { %6083 = vpow2.f32 %v5293_v59 }
 0x7b6   : > { %6085 = vpow2.f32 %v5296_v42 }
 0x7b8   : > { %v8264_v43 = vpop.f32.mrf.mxu2 }
 0x7b9   : > { %v5294_v34 = vmul.f32 -1.442695, %v8264_v43 }
 0x7ba   : > { %v8271_v38 = vpop.f32.mrf.mxu1 }
 0x7bb   : > { %6087 = vpow2.f32 %v5294_v34  ;;  %v6084_v14 = vpop.eup %6083  ;;  %v5297_v39 = vmul.f32 -1.442695, %v8271_v38  ;;  %v8274_v57 = vpop.f32.mrf.mxu0 }
 0x7bc   : > { %v8278_v29 = vadd.f32 1.0, %v6084_v14  ;;  %v6086_v27 = vpop.eup %6085  ;;  %v5300_v12 = vmul.f32 -1.442695, %v8274_v57 }
 0x7bd   : > { %3492 = vmatmul.bf16.gmra.mxu1 %v8118_v6  ;;  %3521 = vmatmul.bf16.gmra.mxu2 %v8118_v6  ;;  %v8286_v30 = vadd.f32 1.0, %v6086_v27 }
 0x7be   : > { %3550 = vmatmul.bf16.gmra.mxu3 %v8118_v6  ;;  %3579 = vmatmul.bf16.gmra.mxu0 %v8118_v6  ;;  %v8266_v6 = vpop.f32.mrf.mxu3  ;;  %v3732_v28 = vand.u32 2147483647, %v8278_v29  ;;  %v3734_v21 = vand.u32 2147483648, %v8278_v29  ;;  %vm3728_vm2 = vweird.f32 %v8278_v29 }
 0x7bf   : > { %v5295_v31 = vmul.f32 -1.442695, %v8266_v6  ;;  %v3779_v60 = vand.u32 2147483648, %v8286_v30  ;;  %v3777_v42 = vand.u32 2147483647, %v8286_v30  ;;  %vm3773_vm4 = vweird.f32 %v8286_v30 }
 0x7c0   : > { %v8290_v1 = vpop.f32.mrf.mxu2  ;;  %vm8343_vm3 = vcmp.eq.f32.partialorder %v3732_v28, 8.507059e+37  ;;  %v3735_v14 = vor.u32 1.1754944e-38, %v3734_v21 }
 0x7c1   : > { %6089 = vpow2.f32 %v5295_v31  ;;  %v6088_v35 = vpop.eup %6087  ;;  %v5298_v41 = vmul.f32 -1.442695, %v8290_v1  ;;  %v8351_v26 = vor.u32 1.1754944e-38, %v3779_v60  ;;  %vm8382_vm10 = vcmp.eq.f32.partialorder %v3777_v42, 8.507059e+37 }
 0x7c2   : > { %6091 = vpow2.f32 %v5297_v39  ;;  %v8288_v9 = vadd.f32 1.0, %v6088_v35  ;;  %v8309_v10 = vpop.f32.mrf.mxu1 }
 0x7c3   : > { %6093 = vrcp.f32 %v8278_v29  ;;  %v5301_v37 = vmul.f32 -1.442695, %v8309_v10  ;;  %v8321_v23 = vpop.f32.mrf.mxu0 }
 0x7c4   : > { %6095 = vpow2.f32 %v5300_v12  ;;  %v5304_v34 = vmul.f32 -1.442695, %v8321_v23  ;;  %vm3743_vm6 = vweird.f32 %v8288_v9  ;;  %v3749_v27 = vand.u32 2147483648, %v8288_v9 }
 0x7c5   : > { %6097 = vrcp.f32 %v8286_v30  ;;  %v3747_v12 = vand.u32 2147483647, %v8288_v9 }
 0x7c6   : > { %v8294_v44 = vpop.f32.mrf.mxu3  ;;  %6099 = vrcp.f32 %v8288_v9 }
 0x7c7   : > { %v6090_v62 = vpop.eup %6089  ;;  %v5299_v50 = vmul.f32 -1.442695, %v8294_v44  ;;  %vm8401_vm12 = vcmp.eq.f32.partialorder %v3747_v12, 8.507059e+37 }
 0x7c8   : > { %v8292_v55 = vadd.f32 1.0, %v6090_v62  ;;  %v6092_v2 = vpop.eup %6091  ;;  %v8330_v58 = vpop.f32.mrf.mxu2 }
 0x7c9   : > { %v8299_v17 = vpop.eup %6093  ;;  %v8303_v20 = vadd.f32 1.0, %v6092_v2 }
 0x7ca   : > { %6101 = vrcp.f32 %v8292_v55  ;;  %v6096_v40 = vpop.eup %6095  ;;  %v3724_v53 = vmul.f32 %v8299_v17, %v8278_v29  ;;  %vm3729_vm5 = vweird.f32 %v8299_v17  ;;  %v3762_v62 = vand.u32 2147483647, %v8292_v55 }
 0x7cb   : > { %6103 = vpow2.f32 %v5298_v41  ;;  %v8307_v47 = vpop.eup %6097  ;;  %v8313_v7 = vadd.f32 1.0, %v6096_v40  ;;  %v3764_v41 = vand.u32 2147483648, %v8292_v55  ;;  %vm3758_vm7 = vweird.f32 %v8292_v55  ;;  %vm8377_vm8 = vmor %vm3728_vm2, %vm3729_vm5 }
 0x7cc   : > { %6105 = vpow2.f32 %v5299_v50  ;;  %v8311_v45 = vpop.eup %6099  ;;  %v3769_v25 = vmul.f32 %v8307_v47, %v8286_v30  ;;  %vm3774_vm9 = vweird.f32 %v8307_v47  ;;  %v3794_v28 = vand.u32 2147483648, %v8303_v20 }
 0x7cd   : > { %3497 = vmatmul.bf16.gmra.mxu1 %v2977_v36  ;;  %3526 = vmatmul.bf16.gmra.mxu2 %v2977_v36  ;;  %6107 = vrcp.f32 %v8303_v20  ;;  %v3739_v33 = vmul.f32 %v8311_v45, %v8288_v9  ;;  %vm3744_vm11 = vweird.f32 %v8311_v45  ;;  %vm8405_vm13 = vcmp.eq.f32.partialorder %v3762_v62, 8.507059e+37  ;;  %vm8427_vm0 = vmor %vm3773_vm4, %vm3774_vm9 }
 0x7ce   : > { %3555 = vmatmul.bf16.gmra.mxu3 %v2977_v36  ;;  %3584 = vmatmul.bf16.gmra.mxu0 %v2977_v36  ;;  %v3725_v36 = vsub.f32 1.0, %v3724_v53  ;;  %6109 = vrcp.f32 %v8313_v7  ;;  %v8333_v61 = vpop.f32.mrf.mxu3  ;;  %v3770_v24 = vsub.f32 1.0, %v3769_v25  ;;  %v8369_v53 = vpop.f32.mrf.mxu1  ;;  %vm3788_vm15 = vweird.f32 %v8303_v20  ;;  %vm8443_vm1 = vmor %vm3743_vm6, %vm3744_vm11 }
 0x7cf   : > { %6111 = vpow2.f32 %v5301_v37  ;;  %v3740_v39 = vsub.f32 1.0, %v3739_v33  ;;  %v5576_v33 = vld [vmem:[%s6510_s25 + $0x30] sm:$0xff]  ;;  %v5303_v12 = vmul.f32 -1.442695, %v8333_v61  ;;  %v5305_v25 = vmul.f32 -1.442695, %v8369_v53 }
 0x7d0   : > { %v8315_v56 = vpop.eup %6101  ;;  %v3726_v22 = vmul.f32 %v8299_v17, %v3725_v36  ;;  %v3771_v63 = vmul.f32 %v8307_v47, %v3770_v24  ;;  %v8371_v36 = vpop.f32.mrf.mxu0  ;;  %4540 = vmatpush.bf16.msra.mxu1 %v5576_v33 }
 0x7d1   : > { %v6104_v18 = vpop.eup %6103  ;;  %v3754_v3 = vmul.f32 %v8315_v56, %v8292_v55  ;;  %v3741_v50 = vmul.f32 %v8311_v45, %v3740_v39  ;;  %v8398_v24 = vpop.f32.mrf.mxu2  ;;  %v3765_v39 = vor.u32 1.1754944e-38, %v3764_v41  ;;  %vm3759_vm14 = vweird.f32 %v8315_v56 }
 0x7d2   : > { %v6106_v46 = vpop.eup %6105  ;;  %v3727_v5 = vadd.f32 %v8299_v17, %v3726_v22  ;;  %v5302_v22 = vmul.f32 -1.442695, %v8330_v58  ;;  %vm8453_vm2 = vmor %vm3758_vm7, %vm3759_vm14  ;;  %vm3833_vm7 = vweird.f32 %v8313_v7 }
 0x7d3   : > { %v8338_v59 = vpop.eup %6107  ;;  %v3755_v4 = vsub.f32 1.0, %v3754_v3  ;;  %v8348_v13 = vadd.f32 1.0, %v6106_v46  ;;  %v5583_v3 = vld [vmem:[%s6510_s25 + $0x68] sm:$0xff]  ;;  %v3772_v46 = vadd.f32 %v8307_v47, %v3771_v63  ;;  %v3742_v63 = vadd.f32 %v8311_v45, %v3741_v50 }
 0x7d4   : > { %v8355_v15 = vpop.eup %6109  ;;  %v3784_v35 = vmul.f32 %v8338_v59, %v8303_v20  ;;  %v3731_v29 = vsel %vm8377_vm8, %v8299_v17, %v3727_v5  ;;  %v3792_v17 = vand.u32 2147483647, %v8303_v20  ;;  %4570 = vmatpush.bf16.msra.mxu2 %v5583_v3  ;;  %v8431_v50 = vor.u32 1.1754944e-38, %v3794_v28 }
 0x7d5   : > { %v6112_v2 = vpop.eup %6111  ;;  %v3756_v40 = vmul.f32 %v8315_v56, %v3755_v4  ;;  %v3829_v21 = vmul.f32 %v8355_v15, %v8313_v7  ;;  %v3736_v41 = vsel %vm8343_vm3, %v3735_v14, %v3731_v29  ;;  %v3776_v31 = vsel %vm8427_vm0, %v8307_v47, %v3772_v46  ;;  %v5591_v29 = vld [vmem:[%s6510_s25 + $0xa8] sm:$0xff]  ;;  %v5600_v46 = vld [vmem:[%s6510_s25 + $0xf0] sm:$0xff] }
 0x7d6   : > { %v3785_v60 = vsub.f32 1.0, %v3784_v35  ;;  %v8410_v4 = vadd.f32 1.0, %v6112_v2  ;;  %v5308_v28 = vmul.f32 -1.442695, %v8371_v36  ;;  %v3837_v47 = vand.u32 2147483647, %v8313_v7  ;;  %4599 = vmatpush.bf16.msra.mxu3 %v5591_v29  ;;  %4627 = vmatpush.bf16.msra.mxu0 %v5600_v46 }
 0x7d7   : > { %v3757_v35 = vadd.f32 %v8315_v56, %v3756_v40  ;;  %v3830_v40 = vsub.f32 1.0, %v3829_v21  ;;  %v5306_v3 = vmul.f32 -1.442695, %v8398_v24  ;;  %vm8470_vm3 = vcmp.eq.f32.partialorder %v3792_v17, 8.507059e+37 }
 0x7d8   : > { %v3786_v14 = vmul.f32 %v8338_v59, %v3785_v60  ;;  %v3746_v60 = vsel %vm8443_vm1, %v8311_v45, %v3742_v63  ;;  %vm3789_vm4 = vweird.f32 %v8338_v59  ;;  %vm3834_vm5 = vweird.f32 %v8355_v15 }
 0x7d9   : > { %v3761_v55 = vsel %vm8453_vm2, %v8315_v56, %v3757_v35  ;;  %v3831_v16 = vmul.f32 %v8355_v15, %v3830_v40  ;;  %v3781_v56 = vsel %vm8382_vm10, %v8351_v26, %v3776_v31  ;;  %vm8506_vm6 = vmor %vm3788_vm15, %vm3789_vm4  ;;  %vm8524_vm8 = vcmp.eq.f32.partialorder %v3837_v47, 8.507059e+37 }
 0x7da   : > { %v3787_v17 = vadd.f32 %v8338_v59, %v3786_v14  ;;  %v3766_v37 = vsel %vm8405_vm13, %v3765_v39, %v3761_v55  ;;  %v5582_v39 = vld [vmem:[%s6510_s25 + $0x60] sm:$0xff]  ;;  %vm8539_vm9 = vmor %vm3833_vm7, %vm3834_vm5  ;;  %v3852_v29 = vand.u32 2147483647, %v8410_v4  ;;  %vm3848_vm2 = vweird.f32 %v8410_v4 }
 0x7db   : > { %4571 = vmatpush.bf16.msra.mxu2 %v5582_v39 }
 0x7dc   : > { %v3791_v20 = vsel %vm8506_vm6, %v8338_v59, %v3787_v17  ;;  %v8535_v59 = vmul.f32 %v3766_v37, %v8266_v6 }
 0x7dd   : > { %3502 = vmatmul.bf16.gmra.mxu1 %v2978_v49  ;;  %3531 = vmatmul.bf16.gmra.mxu2 %v2978_v49 }
 0x7de   : > { %3560 = vmatmul.bf16.gmra.mxu3 %v2978_v49  ;;  %3589 = vmatmul.bf16.gmra.mxu0 %v2978_v49  ;;  %v8336_v49 = vadd.f32 1.0, %v6104_v18  ;;  %v8386_v18 = vor.u32 1.1754944e-38, %v3749_v27  ;;  %v8412_v27 = vpop.f32.mrf.mxu3  ;;  %9641 = vst [vmem:[#allocation22_spill] sm:$0xff] %v8535_v59 }
 0x7df   : > { %v5307_v63 = vmul.f32 -1.442695, %v8412_v27 }
 0x7e0   : > { %6113 = vrcp.f32 %v8336_v49  ;;  %v3751_v26 = vsel %vm8401_vm12, %v8386_v18, %v3746_v60  ;;  %v3807_v31 = vand.u32 2147483647, %v8336_v49  ;;  %v3809_v42 = vand.u32 2147483648, %v8336_v49 }
 0x7e1   : > { %6115 = vpow2.f32 %v5304_v34  ;;  %v5575_v34 = vld [vmem:[%s6510_s25 + $0x28] sm:$0xff]  ;;  %vm3803_vm10 = vweird.f32 %v8336_v49  ;;  %vm3818_vm12 = vweird.f32 %v8348_v13 }
 0x7e2   : > { %6117 = vrcp.f32 %v8348_v13  ;;  %4541 = vmatpush.bf16.msra.mxu1 %v5575_v34  ;;  %vm8552_vm11 = vcmp.eq.f32.partialorder %v3807_v31, 8.507059e+37 }
 0x7e3   : > { %6119 = vpow2.f32 %v5302_v22  ;;  %v3824_v22 = vand.u32 2147483648, %v8348_v13 }
 0x7e4   : > { %6121 = vrcp.f32 %v8410_v4 }
 0x7e5   : > { %6123 = vpow2.f32 %v5303_v12  ;;  %v3839_v12 = vand.u32 2147483648, %v8313_v7  ;;  %v3825_v7 = vor.u32 1.1754944e-38, %v3824_v22 }
 0x7e6   : > { %v8414_v5 = vpop.eup %6113  ;;  %6125 = vpow2.f32 %v5305_v25 }
 0x7e7   : > { %v6116_v62 = vpop.eup %6115  ;;  %v3799_v9 = vmul.f32 %v8414_v5, %v8336_v49  ;;  %6127 = vpow2.f32 %v5308_v28  ;;  %v3832_v28 = vadd.f32 %v8355_v15, %v3831_v16  ;;  %v3840_v46 = vor.u32 1.1754944e-38, %v3839_v12 }
 0x7e8   : > { %v8434_v33 = vpop.eup %6117  ;;  %v8474_v2 = vadd.f32 1.0, %v6116_v62  ;;  %6129 = vpow2.f32 %v5306_v3  ;;  %v8518_v3 = vmul.f32 %v3781_v56, %v8262_v11  ;;  %v8532_v11 = vmul.f32 %v3751_v26, %v8264_v43 }
 0x7e9   : > { %v3814_v45 = vmul.f32 %v8434_v33, %v8348_v13  ;;  %v3800_v62 = vsub.f32 1.0, %v3799_v9  ;;  %v6120_v25 = vpop.eup %6119  ;;  %v8515_v9 = vmul.f32 %v3736_v41, %v8259_v0  ;;  %v3796_v43 = vsel %vm8470_vm3, %v8431_v50, %v3791_v20 }
 0x7ea   : > { %6131 = vrcp.f32 %v8474_v2  ;;  %v8502_v30 = vpop.eup %6121  ;;  %v8529_v55 = vadd.f32 1.0, %v6120_v25  ;;  %v3836_v6 = vsel %vm8539_vm9, %v8355_v15, %v3832_v28  ;;  %v3822_v12 = vand.u32 2147483647, %v8348_v13 }
 0x7eb   : > { %v3815_v18 = vsub.f32 1.0, %v3814_v45  ;;  %6133 = vpow2.f32 %v5307_v63  ;;  %v6124_v21 = vpop.eup %6123  ;;  %v3801_v60 = vmul.f32 %v8414_v5, %v3800_v62  ;;  %v3844_v41 = vmul.f32 %v8502_v30, %v8410_v4 }
 0x7ec   : > { %v6126_v16 = vpop.eup %6125  ;;  %v3810_v63 = vor.u32 1.1754944e-38, %v3809_v42  ;;  %v8562_v50 = vadd.f32 1.0, %v6124_v21  ;;  %vm3804_vm13 = vweird.f32 %v8414_v5  ;;  %6135 = vrcp.f32 %v8529_v55 }
 0x7ed   : > { %v6128_v0 = vpop.eup %6127  ;;  %v3816_v56 = vmul.f32 %v8434_v33, %v3815_v18  ;;  %v3802_v26 = vadd.f32 %v8414_v5, %v3801_v60  ;;  %v8571_v37 = vadd.f32 1.0, %v6126_v16  ;;  %v8574_v31 = vmul.f32 %v3796_v43, %v8271_v38  ;;  %vm8592_vm15 = vmor %vm3803_vm10, %vm3804_vm13  ;;  %v5599_v60 = vld [vmem:[%s6510_s25 + $0xe8] sm:$0xff] }
 0x7ee   : > { %v6130_v47 = vpop.eup %6129  ;;  %v3841_v14 = vsel %vm8524_vm8, %v3840_v46, %v3836_v6  ;;  %v3845_v28 = vsub.f32 1.0, %v3844_v41  ;;  %v8578_v42 = vadd.f32 1.0, %v6128_v0  ;;  %vm3819_vm14 = vweird.f32 %v8434_v33  ;;  %4628 = vmatpush.bf16.msra.mxu0 %v5599_v60 }
 0x7ef   : > { %v3817_v34 = vadd.f32 %v8434_v33, %v3816_v56  ;;  %v8586_v21 = vadd.f32 1.0, %v6130_v47  ;;  %vm8596_vm0 = vcmp.eq.f32.partialorder %v3822_v12, 8.507059e+37  ;;  %6137 = vrcp.f32 %v8562_v50  ;;  %vm8614_vm1 = vmor %vm3818_vm12, %vm3819_vm14 }
 0x7f0   : > { %v8557_v17 = vpop.eup %6131  ;;  %v8606_v0 = vmul.f32 %v3841_v14, %v8274_v57  ;;  %v3806_v49 = vsel %vm8592_vm15, %v8414_v5, %v3802_v26  ;;  %6139 = vrcp.f32 %v8571_v37  ;;  %v3846_v47 = vmul.f32 %v8502_v30, %v3845_v28  ;;  %v5574_v26 = vld [vmem:[%s6510_s25 + $0x20] sm:$0xff] }
 0x7f1   : > { %v6134_v25 = vpop.eup %6133  ;;  %v3889_v39 = vmul.f32 %v8557_v17, %v8474_v2  ;;  %v3854_v57 = vand.u32 2147483648, %v8410_v4  ;;  %6141 = vrcp.f32 %v8578_v42  ;;  %v3821_v13 = vsel %vm8614_vm1, %v8434_v33, %v3817_v34  ;;  %v5598_v14 = vld [vmem:[%s6510_s25 + $0xe0] sm:$0xff]  ;;  %4542 = vmatpush.bf16.msra.mxu1 %v5574_v26 }
 0x7f2   : > { %v8602_v46 = vadd.f32 1.0, %v6134_v25  ;;  %v8622_v43 = vpop.eup %6135  ;;  %6143 = vrcp.f32 %v8586_v21  ;;  %v3811_v12 = vsel %vm8552_vm11, %v3810_v63, %v3806_v49  ;;  %vm8632_vm3 = vcmp.eq.f32.partialorder %v3852_v29, 8.507059e+37  ;;  %v5590_v25 = vld [vmem:[%s6510_s25 + $0xa0] sm:$0xff]  ;;  %4629 = vmatpush.bf16.msra.mxu0 %v5598_v14 }
 0x7f3   : > { %v3890_v6 = vsub.f32 1.0, %v3889_v39  ;;  %vm3849_vm4 = vweird.f32 %v8502_v30  ;;  %v3897_v33 = vand.u32 2147483647, %v8474_v2  ;;  %v3899_v28 = vand.u32 2147483648, %v8474_v2  ;;  %4600 = vmatpush.bf16.msra.mxu3 %v5590_v25 }
 0x7f4   : > { %6145 = vrcp.f32 %v8602_v46  ;;  %v3869_v45 = vand.u32 2147483648, %v8529_v55  ;;  %v3826_v34 = vsel %vm8596_vm0, %v3825_v7, %v3821_v13  ;;  %v3847_v39 = vadd.f32 %v8502_v30, %v3846_v47  ;;  %vm8680_vm6 = vmor %vm3848_vm2, %vm3849_vm4 }
 0x7f5   : > { %v8644_v63 = vpop.eup %6137  ;;  %v3859_v38 = vmul.f32 %v8622_v43, %v8529_v55  ;;  %v3855_v41 = vor.u32 1.1754944e-38, %v3854_v57  ;;  %v3891_v16 = vmul.f32 %v8557_v17, %v3890_v6  ;;  %vm3893_vm5 = vweird.f32 %v8474_v2  ;;  %v5573_v57 = vld [vmem:[%s6510_s25 + $0x18] sm:$0xff] }
 0x7f6   : > { %v8655_v49 = vpop.eup %6139  ;;  %v3884_v25 = vand.u32 2147483648, %v8562_v50  ;;  %vm8684_vm7 = vcmp.eq.f32.partialorder %v3897_v33, 8.507059e+37  ;;  %v3900_v14 = vor.u32 1.1754944e-38, %v3899_v28  ;;  %v8688_v13 = vor.u32 1.1754944e-38, %v3869_v45  ;;  %4543 = vmatpush.bf16.msra.mxu1 %v5573_v57  ;;  %4630 = vmatpush.bf16.msra.mxu0 %v5597_v51  ;;  %v5572_v57 = vld [vmem:[%s6510_s25 + $0x10] sm:$0xff] }
 0x7f7   : > { %v8659_v47 = vpop.eup %6141  ;;  %v3860_v4 = vsub.f32 1.0, %v3859_v38  ;;  %v3874_v33 = vmul.f32 %v8644_v63, %v8562_v50  ;;  %v3892_v28 = vadd.f32 %v8557_v17, %v3891_v16  ;;  %vm3894_vm8 = vweird.f32 %v8557_v17 }
 0x7f8   : > { %v8671_v6 = vpop.eup %6143  ;;  %v3904_v45 = vmul.f32 %v8655_v49, %v8571_v37  ;;  %vm3863_vm9 = vweird.f32 %v8529_v55  ;;  %v3949_v38 = vmul.f32 %v8659_v47, %v8578_v42  ;;  %vm3864_vm10 = vweird.f32 %v8622_v43  ;;  %vm8724_vm11 = vmor %vm3893_vm5, %vm3894_vm8 }
 0x7f9   : > { %v3919_v16 = vmul.f32 %v8671_v6, %v8586_v21  ;;  %vm3878_vm12 = vweird.f32 %v8562_v50  ;;  %v3912_v59 = vand.u32 2147483647, %v8571_v37  ;;  %vm3879_vm13 = vweird.f32 %v8644_v63  ;;  %vm8790_vm1 = vmor %vm3863_vm9, %vm3864_vm10 }
 0x7fa   : > { %v8692_v54 = vpop.eup %6145  ;;  %4544 = vmatpush.bf16.msra.mxu1 %v5572_v57  ;;  %v3905_v2 = vsub.f32 1.0, %v3904_v45  ;;  %4631 = vmatpush.bf16.msra.mxu0 %v5596_v52  ;;  %vm3908_vm14 = vweird.f32 %v8571_v37  ;;  %v5571_v45 = vld [vmem:[%s6510_s25 + $0x8] sm:$0xff]  ;;  %vm3953_vm15 = vweird.f32 %v8578_v42  ;;  %vm3923_vm4 = vweird.f32 %v8586_v21  ;;  %vm8829_vm8 = vmor %vm3878_vm12, %vm3879_vm13 }
 0x7fb   : > { %vm8808_vm5 = vcmp.eq.f32.partialorder %v3912_v59, 8.507059e+37  ;;  %v5594_v59 = vld [vmem:[%s6510_s25 + $0xc0] sm:$0xff]  ;;  %vm3924_vm9 = vweird.f32 %v8671_v6 }
 0x7fc   : > { %vm8876_vm13 = vmor %vm3923_vm4, %vm3924_vm9 }
 0x7fe   : > { %4545 = vmatpush.bf16.msra.mxu1 %v5571_v45 }
 0x80a   : > { %v8476_v32 = vpop.f32.mrf.mxu1 }
 0x80b   : > { %v8478_v48 = vpop.f32.mrf.mxu0  ;;  %v5309_v5 = vmul.f32 -1.442695, %v8476_v32 }
 0x80c   : > { %v5312_v56 = vmul.f32 -1.442695, %v8478_v48 }
 0x80d   : > { %6147 = vpow2.f32 %v5309_v5  ;;  %v8662_v5 = vmul.f32 %v3811_v12, %v8290_v1 }
 0x80e   : > { %6149 = vpow2.f32 %v5312_v56  ;;  %v8674_v56 = vmul.f32 %v3826_v34, %v8294_v44  ;;  %v3851_v44 = vsel %vm8680_vm6, %v8502_v30, %v3847_v39  ;;  %v8706_v39 = vor.u32 1.1754944e-38, %v3884_v25  ;;  %v5595_v30 = vld [vmem:[%s6510_s25 + $0xc8] sm:$0xff] }
 0x80f   : > { %9660 = vst [vmem:[#allocation29_spill] sm:$0xff] %v8662_v5  ;;  %v3856_v51 = vsel %vm8632_vm3, %v3855_v41, %v3851_v44  ;;  %v3934_v25 = vmul.f32 %v8692_v54, %v8602_v46  ;;  %v5581_v41 = vld [vmem:[%s6510_s25 + $0x58] sm:$0xff]  ;;  %4632 = vmatpush.bf16.msra.mxu0 %v5595_v30  ;;  %vm3909_vm3 = vweird.f32 %v8655_v49 }
 0x810   : > { %v8489_v35 = vpop.f32.mrf.mxu2  ;;  %9662 = vst [vmem:[#allocation31_spill] sm:$0xff] %v8674_v56  ;;  %v5589_v44 = vld [vmem:[%s6510_s25 + $0x98] sm:$0xff]  ;;  %v3896_v56 = vsel %vm8724_vm11, %v8557_v17, %v3892_v28  ;;  %4572 = vmatpush.bf16.msra.mxu2 %v5581_v41  ;;  %v8750_v52 = vmul.f32 %v3856_v51, %v8309_v10  ;;  %v3906_v51 = vmul.f32 %v8655_v49, %v3905_v2  ;;  %vm8843_vm10 = vmor %vm3908_vm14, %vm3909_vm3  ;;  %vm3939_vm11 = vweird.f32 %v8692_v54 }
 0x811   : > { %9635 = vst [vmem:[#allocation20_spill] sm:$0xff] %v8489_v35  ;;  %v8493_v40 = vpop.f32.mrf.mxu3  ;;  %v5310_v7 = vmul.f32 -1.442695, %v8489_v35  ;;  %v3875_v35 = vsub.f32 1.0, %v3874_v33  ;;  %v3920_v33 = vsub.f32 1.0, %v3919_v16  ;;  %4601 = vmatpush.bf16.msra.mxu3 %v5589_v44  ;;  %v3901_v16 = vsel %vm8684_vm7, %v3900_v14, %v3896_v56  ;;  %v5588_v56 = vld [vmem:[%s6510_s25 + $0x90] sm:$0xff] }
 0x812   : > { %9636 = vst [vmem:[#allocation21_spill] sm:$0xff] %v8493_v40  ;;  %v8564_v62 = vpop.f32.mrf.mxu1  ;;  %v5311_v34 = vmul.f32 -1.442695, %v8493_v40  ;;  %v3861_v40 = vmul.f32 %v8622_v43, %v3860_v4  ;;  %v3950_v4 = vsub.f32 1.0, %v3949_v38  ;;  %v3935_v38 = vsub.f32 1.0, %v3934_v25 }
 0x813   : > { %9646 = vst [vmem:[#allocation23_spill] sm:$0xff] %v8564_v62  ;;  %v8566_v15 = vpop.f32.mrf.mxu0  ;;  %6151 = vpow2.f32 %v5310_v7  ;;  %v6148_v1 = vpop.eup %6147  ;;  %v3914_v7 = vand.u32 2147483648, %v8571_v37  ;;  %v5313_v22 = vmul.f32 -1.442695, %v8564_v62  ;;  %v3876_v44 = vmul.f32 %v8644_v63, %v3875_v35  ;;  %v5580_v62 = vld [vmem:[%s6510_s25 + $0x50] sm:$0xff]  ;;  %4633 = vmatpush.bf16.msra.mxu0 %v5594_v59 }
 0x814   : > { %9647 = vst [vmem:[#allocation24_spill] sm:$0xff] %v8566_v15  ;;  %v6150_v8 = vpop.eup %6149  ;;  %6153 = vpow2.f32 %v5311_v34  ;;  %v8737_v5 = vadd.f32 1.0, %v6148_v1  ;;  %v8759_v41 = vadd.f32 %v8622_v43, %v3861_v40  ;;  %v5316_v25 = vmul.f32 -1.442695, %v8566_v15  ;;  %4573 = vmatpush.bf16.msra.mxu2 %v5580_v62  ;;  %v5579_v15 = vld [vmem:[%s6510_s25 + $0x48] sm:$0xff] }
 0x815   : > { %v8741_v34 = vadd.f32 1.0, %v6150_v8  ;;  %9670 = vst [vmem:[#allocation33_spill] sm:$0xff] %v8750_v52  ;;  %v8752_v57 = vor.u32 1.1754944e-38, %v3914_v7  ;;  %v3957_v8 = vand.u32 2147483647, %v8578_v42  ;;  %6155 = vpow2.f32 %v5313_v22  ;;  %4602 = vmatpush.bf16.msra.mxu3 %v5588_v56 }
 0x816   : > { %v3959_v7 = vand.u32 2147483648, %v8578_v42  ;;  %6157 = vrcp.f32 %v8737_v5  ;;  %v9671_v35 = vand.u32 2147483647, %v8529_v55  ;;  %v3951_v22 = vmul.f32 %v8659_v47, %v3950_v4 }
 0x817   : > { %v3921_v2 = vmul.f32 %v8671_v6, %v3920_v33  ;;  %6159 = vrcp.f32 %v8741_v34  ;;  %v8784_v30 = vmul.f32 %v3901_v16, %v8321_v23  ;;  %v9677_v4 = vand.u32 2147483647, %v8562_v50  ;;  %v5586_v50 = vld [vmem:[%s6510_s25 + $0x80] sm:$0xff] }
 0x818   : > { %v8580_v18 = vpop.f32.mrf.mxu2  ;;  %vm8774_vm0 = vcmp.eq.f32.partialorder %v9671_v35, 8.507059e+37  ;;  %v3936_v23 = vmul.f32 %v8692_v54, %v3935_v38  ;;  %v3866_v55 = vsel %vm8790_vm1, %v8622_v43, %v8759_v41  ;;  %v3877_v62 = vadd.f32 %v8644_v63, %v3876_v44  ;;  %v5587_v38 = vld [vmem:[%s6510_s25 + $0x88] sm:$0xff]  ;;  %v5570_v43 = vld [vmem:[%s6510_s25] sm:$0xff]  ;;  %4574 = vmatpush.bf16.msra.mxu2 %v5579_v15 }
 0x819   : > { %9648 = vst [vmem:[#allocation25_spill] sm:$0xff] %v8580_v18  ;;  %v8588_v20 = vpop.f32.mrf.mxu3  ;;  %v6152_v1 = vpop.eup %6151  ;;  %vm8796_vm2 = vcmp.eq.f32.partialorder %v9677_v4, 8.507059e+37  ;;  %vm8812_vm6 = vcmp.eq.f32.partialorder %v3957_v8, 8.507059e+37  ;;  %v5314_v4 = vmul.f32 -1.442695, %v8580_v18  ;;  %v3907_v56 = vadd.f32 %v8655_v49, %v3906_v51  ;;  %4603 = vmatpush.bf16.msra.mxu3 %v5587_v38  ;;  %4546 = vmatpush.bf16.msra.mxu1 %v5570_v43  ;;  %v5578_v8 = vld [vmem:[%s6510_s25 + $0x40] sm:$0xff] }
 0x81a   : > { %9649 = vst [vmem:[#allocation26_spill] sm:$0xff] %v8588_v20  ;;  %v8651_v29 = vpop.f32.mrf.mxu1  ;;  %v6154_v40 = vpop.eup %6153  ;;  %v8781_v45 = vadd.f32 1.0, %v6152_v1  ;;  %vm3954_vm7 = vweird.f32 %v8659_v47  ;;  %6161 = vpow2.f32 %v5316_v25  ;;  %v3952_v44 = vadd.f32 %v8659_v47, %v3951_v22 }
 0x81b   : > { %9658 = vst [vmem:[#allocation27_spill] sm:$0xff] %v8651_v29  ;;  %v8653_v60 = vpop.f32.mrf.mxu0  ;;  %v8821_v35 = vadd.f32 1.0, %v6154_v40  ;;  %v6156_v41 = vpop.eup %6155  ;;  %v3922_v51 = vadd.f32 %v8671_v6, %v3921_v2  ;;  %v3960_v40 = vor.u32 1.1754944e-38, %v3959_v7  ;;  %v3929_v22 = vand.u32 2147483648, %v8586_v21  ;;  %vm8859_vm12 = vmor %vm3953_vm15, %vm3954_vm7 }
 0x81c   : > { %9659 = vst [vmem:[#allocation28_spill] sm:$0xff] %v8653_v60  ;;  %6163 = vrcp.f32 %v8781_v45  ;;  %v8837_v25 = vpop.eup %6157  ;;  %v3937_v2 = vadd.f32 %v8692_v54, %v3936_v23  ;;  %v3881_v18 = vsel %vm8829_vm8, %v8644_v63, %v3877_v62  ;;  %v3927_v7 = vand.u32 2147483647, %v8586_v21  ;;  %4575 = vmatpush.bf16.msra.mxu2 %v5578_v8 }
 0x81d   : > { %9674 = vst [vmem:[#allocation34_spill] sm:$0xff] %v8784_v30  ;;  %v8850_v15 = vpop.eup %6159  ;;  %v3944_v23 = vand.u32 2147483648, %v8602_v46  ;;  %6165 = vpow2.f32 %v5314_v4  ;;  %v3911_v42 = vsel %vm8843_vm10, %v8655_v49, %v3907_v56  ;;  %vm3938_vm14 = vweird.f32 %v8602_v46  ;;  %4604 = vmatpush.bf16.msra.mxu3 %v5586_v50 }
 0x81e   : > { %v3942_v62 = vand.u32 2147483647, %v8602_v46  ;;  %6167 = vrcp.f32 %v8821_v35  ;;  %v3956_v4 = vsel %vm8859_vm12, %v8659_v47, %v3952_v44  ;;  %v3926_v49 = vsel %vm8876_vm13, %v8671_v6, %v3922_v51  ;;  %vm8891_vm15 = vmor %vm3938_vm14, %vm3939_vm11 }
 0x81f   : > { %v3964_v56 = vmul.f32 %v8837_v25, %v8737_v5  ;;  %v8897_v46 = vadd.f32 1.0, %v6156_v41  ;;  %v3871_v6 = vsel %vm8774_vm0, %v8688_v13, %v3866_v55  ;;  %v3930_v44 = vor.u32 1.1754944e-38, %v3929_v22 }
 0x820   : > { %v8667_v26 = vpop.f32.mrf.mxu2  ;;  %v6162_v47 = vpop.eup %6161  ;;  %v3941_v51 = vsel %vm8891_vm15, %v8692_v54, %v3937_v2  ;;  %v4009_v37 = vmul.f32 %v8850_v15, %v8741_v34  ;;  %v3886_v30 = vsel %vm8796_vm2, %v8706_v39, %v3881_v18  ;;  %vm3928_vm1 = vcmp.eq.f32.partialorder %v3927_v7, 8.507059e+37 }
 0x821   : > { %9661 = vst [vmem:[#allocation30_spill] sm:$0xff] %v8667_v26  ;;  %v8690_v19 = vpop.f32.mrf.mxu3  ;;  %v3945_v52 = vor.u32 1.1754944e-38, %v3944_v23  ;;  %v5315_v13 = vmul.f32 -1.442695, %v8588_v20  ;;  %v3916_v54 = vsel %vm8808_vm5, %v8752_v57, %v3911_v42  ;;  %v3961_v14 = vsel %vm8812_vm6, %v3960_v40, %v3956_v4 }
 0x822   : > { %v8743_v17 = vpop.f32.mrf.mxu1  ;;  %v8913_v41 = vpop.eup %6163  ;;  %v3931_v55 = vsel %vm3928_vm1, %v3930_v44, %v3926_v49  ;;  %vm3943_vm0 = vcmp.eq.f32.partialorder %v3942_v62, 8.507059e+37  ;;  %v3965_v21 = vsub.f32 1.0, %v3964_v56  ;;  %6169 = vrcp.f32 %v8897_v46 }
 0x823   : > { %9669 = vst [vmem:[#allocation32_spill] sm:$0xff] %v8743_v17  ;;  %v8745_v28 = vpop.f32.mrf.mxu0  ;;  %v6166_v22 = vpop.eup %6165  ;;  %v3946_v2 = vsel %vm3943_vm0, %v3945_v52, %v3941_v51  ;;  %v8925_v18 = vadd.f32 1.0, %v6162_v47  ;;  %v8930_v33 = vmul.f32 %v3871_v6, %v8330_v58  ;;  %v8933_v1 = vmul.f32 %v3886_v30, %v8333_v61 }
 0x824   : > { %v8927_v39 = vpop.eup %6167  ;;  %v4010_v57 = vsub.f32 1.0, %v4009_v37  ;;  %v3979_v16 = vmul.f32 %v8913_v41, %v8781_v45  ;;  %v8938_v40 = vmul.f32 %v3916_v54, %v8369_v53  ;;  %v3972_v52 = vand.u32 2147483647, %v8737_v5 }
 0x825   : > { %v3974_v7 = vand.u32 2147483648, %v8737_v5  ;;  %6171 = vpow2.f32 %v5315_v13  ;;  %v8943_v23 = vmul.f32 %v3961_v14, %v8371_v36  ;;  %v8946_v58 = vmul.f32 %v3931_v55, %v8398_v24 }
 0x826   : > { %v8949_v61 = vmul.f32 %v3946_v2, %v8412_v27  ;;  %v4017_v30 = vand.u32 2147483647, %v8741_v34  ;;  %v3966_v42 = vmul.f32 %v8837_v25, %v3965_v21  ;;  %v3994_v53 = vmul.f32 %v8927_v39, %v8821_v35 }
 0x827   : > { %6173 = vrcp.f32 %v8925_v18  ;;  %v8956_v62 = vadd.f32 1.0, %v6166_v22  ;;  %vm3968_vm2 = vweird.f32 %v8737_v5  ;;  %v4011_v24 = vmul.f32 %v8850_v15, %v4010_v57 }
 0x828   : > { %v8763_v10 = vpop.f32.mrf.mxu2  ;;  %v3980_v27 = vsub.f32 1.0, %v3979_v16  ;;  %v5317_v49 = vmul.f32 -1.442695, %v8651_v29  ;;  %v8965_v56 = vpop.eup %6169  ;;  %vm8967_vm3 = vcmp.eq.f32.partialorder %v3972_v52, 8.507059e+37  ;;  %v3975_v50 = vor.u32 1.1754944e-38, %v3974_v7 }
 0x829   : > { %v8769_v12 = vpop.f32.mrf.mxu3  ;;  %vm4013_vm4 = vweird.f32 %v8741_v34  ;;  %v4019_v47 = vand.u32 2147483648, %v8741_v34  ;;  %vm3969_vm5 = vweird.f32 %v8837_v25  ;;  %vm8976_vm6 = vcmp.eq.f32.partialorder %v4017_v30, 8.507059e+37 }
 0x82a   : > { %v8865_v38 = vpop.f32.mrf.mxu1  ;;  %v3987_v51 = vand.u32 2147483647, %v8781_v45  ;;  %v3989_v37 = vand.u32 2147483648, %v8781_v45  ;;  %v3967_v14 = vadd.f32 %v8837_v25, %v3966_v42  ;;  %vm4014_vm7 = vweird.f32 %v8850_v15  ;;  %vm9000_vm9 = vmor %vm3968_vm2, %vm3969_vm5 }
 0x82b   : > { %v8867_v43 = vpop.f32.mrf.mxu0  ;;  %v6172_v54 = vpop.eup %6171  ;;  %v3995_v55 = vsub.f32 1.0, %v3994_v53  ;;  %6175 = vrcp.f32 %v8956_v62  ;;  %v4012_v22 = vadd.f32 %v8850_v15, %v4011_v24  ;;  %v3981_v2 = vmul.f32 %v8913_v41, %v3980_v27  ;;  %vm9019_vm12 = vmor %vm4013_vm4, %vm4014_vm7 }
 0x82c   : > { %v4024_v21 = vmul.f32 %v8965_v56, %v8897_v46  ;;  %6177 = vpow2.f32 %v5317_v49  ;;  %v4020_v16 = vor.u32 1.1754944e-38, %v4019_v47  ;;  %vm3983_vm8 = vweird.f32 %v8781_v45 }
 0x82d   : > { %v8991_v57 = vpop.eup %6173  ;;  %v4004_v52 = vand.u32 2147483648, %v8821_v35  ;;  %v4034_v7 = vand.u32 2147483648, %v8897_v46  ;;  %vm9004_vm10 = vcmp.eq.f32.partialorder %v3987_v51, 8.507059e+37  ;;  %v3990_v53 = vor.u32 1.1754944e-38, %v3989_v37 }
 0x82e   : > { %vm3998_vm11 = vweird.f32 %v8821_v35  ;;  %v4002_v24 = vand.u32 2147483647, %v8821_v35  ;;  %v9010_v27 = vadd.f32 1.0, %v6172_v54  ;;  %v3971_v49 = vsel %vm9000_vm9, %v8837_v25, %v3967_v14 }
 0x82f   : > { %vm3984_vm13 = vweird.f32 %v8913_v41  ;;  %v3996_v47 = vmul.f32 %v8927_v39, %v3995_v55  ;;  %v5320_v51 = vmul.f32 -1.442695, %v8653_v60  ;;  %v4016_v37 = vsel %vm9019_vm12, %v8850_v15, %v4012_v22 }
 0x830   : > { %v8899_v59 = vpop.f32.mrf.mxu2  ;;  %v3982_v25 = vadd.f32 %v8913_v41, %v3981_v2  ;;  %v4025_v54 = vsub.f32 1.0, %v4024_v21  ;;  %v4069_v34 = vmul.f32 %v8991_v57, %v8925_v18  ;;  %vm3999_vm14 = vweird.f32 %v8927_v39  ;;  %vm9057_vm1 = vmor %vm3983_vm8, %vm3984_vm13  ;;  %v9717_v2 = vld [vmem:[#allocation22_spill] sm:$0xff] }
 0x831   : > { %v8911_v63 = vpop.f32.mrf.mxu3  ;;  %v9032_v14 = vpop.eup %6175  ;;  %v4005_v30 = vor.u32 1.1754944e-38, %v4004_v52  ;;  %v4032_v29 = vand.u32 2147483647, %v8897_v46  ;;  %v9036_v55 = vor.u32 1.1754944e-38, %v4034_v7  ;;  %v3976_v22 = vsel %vm8967_vm3, %v3975_v50, %v3971_v49  ;;  %vm9092_vm3 = vmor %vm3998_vm11, %vm3999_vm14 }
 0x832   : > { %v8958_v4 = vpop.f32.mrf.mxu1  ;;  %v6178_v15 = vpop.eup %6177  ;;  %vm9044_vm15 = vcmp.eq.f32.partialorder %v4002_v24, 8.507059e+37  ;;  %v4077_v21 = vand.u32 2147483647, %v8925_v18  ;;  %6179 = vrcp.f32 %v9010_v27  ;;  %v5318_v52 = vmul.f32 -1.442695, %v8667_v26 }
 0x833   : > { %v8960_v36 = vpop.f32.mrf.mxu0  ;;  %v4021_v7 = vsel %vm8976_vm6, %v4020_v16, %v4016_v37  ;;  %v3997_v50 = vadd.f32 %v8927_v39, %v3996_v47  ;;  %vm4028_vm0 = vweird.f32 %v8897_v46  ;;  %6181 = vpow2.f32 %v5320_v51 }
 0x834   : > { %v5321_v24 = vmul.f32 -1.442695, %v8743_v17  ;;  %v3986_v44 = vsel %vm9057_vm1, %v8913_v41, %v3982_v25  ;;  %v4026_v16 = vmul.f32 %v8965_v56, %v4025_v54  ;;  %v4070_v45 = vsub.f32 1.0, %v4069_v34 }
 0x835   : > { %v5324_v5 = vmul.f32 -1.442695, %v8745_v28  ;;  %v9074_v47 = vmul.f32 %v3976_v22, %v8476_v32  ;;  %v4079_v51 = vand.u32 2147483648, %v8925_v18  ;;  %v4039_v26 = vmul.f32 %v9032_v14, %v8956_v62 }
 0x836   : > { %v9079_v17 = vadd.f32 1.0, %v6178_v15  ;;  %v9082_v8 = vmul.f32 %v4021_v7, %v8478_v48  ;;  %vm4029_vm2 = vweird.f32 %v8965_v56  ;;  %6183 = vpow2.f32 %v5318_v52 }
 0x837   : > { %v5322_v41 = vmul.f32 -1.442695, %v8763_v10  ;;  %v3991_v25 = vsel %vm9004_vm10, %v3990_v53, %v3986_v44  ;;  %vm4074_vm4 = vweird.f32 %v8991_v57  ;;  %6185 = vpow2.f32 %v5321_v24  ;;  %vm9134_vm7 = vmor %vm4028_vm0, %vm4029_vm2 }
 0x838   : > { %v8973_v6 = vpop.f32.mrf.mxu2  ;;  %v5323_v48 = vmul.f32 -1.442695, %v8769_v12  ;;  %v9098_v54 = vpop.eup %6179  ;;  %v4001_v42 = vsel %vm9092_vm3, %v8927_v39, %v3997_v50  ;;  %v4027_v53 = vadd.f32 %v8965_v56, %v4026_v16  ;;  %vm9104_vm5 = vcmp.eq.f32.partialorder %v4032_v29, 8.507059e+37 }
 0x839   : > { %v8982_v13 = vpop.f32.mrf.mxu3  ;;  %v4071_v35 = vmul.f32 %v8991_v57, %v4070_v45  ;;  %vm4073_vm6 = vweird.f32 %v8925_v18  ;;  %6187 = vpow2.f32 %v5324_v5  ;;  %v6182_v15 = vpop.eup %6181  ;;  %v4040_v22 = vsub.f32 1.0, %v4039_v26 }
 0x83a   : > { %v9038_v60 = vpop.f32.mrf.mxu1  ;;  %6189 = vrcp.f32 %v9079_v17  ;;  %v5319_v52 = vmul.f32 -1.442695, %v8690_v19  ;;  %v4235_v39 = vmul.f32 %v8515_v9, %v8865_v38  ;;  %v4238_v29 = vmul.f32 %v8518_v3, %v8867_v43  ;;  %vm9178_vm10 = vmor %vm4073_vm6, %vm4074_vm4 }
 0x83b   : > { %v9040_v20 = vpop.f32.mrf.mxu0  ;;  %6191 = vpow2.f32 %v5322_v41  ;;  %v4239_v7 = vmul.f32 %v8574_v31, %v8958_v4  ;;  %v4242_v50 = vmul.f32 %v8606_v0, %v8960_v36  ;;  %v4006_v26 = vsel %vm9044_vm15, %v4005_v30, %v4001_v42  ;;  %v9716_v4 = vld [vmem:[#allocation29_spill] sm:$0xff] }
 0x83c   : > { %v4054_v24 = vmul.f32 %v9098_v54, %v9010_v27  ;;  %6193 = vpow2.f32 %v5323_v48  ;;  %v4236_v9 = vmul.f32 %v8532_v11, %v8899_v59  ;;  %v6184_v3 = vpop.eup %6183  ;;  %vm9138_vm8 = vcmp.eq.f32.partialorder %v4077_v21, 8.507059e+37  ;;  %v9718_v21 = vld [vmem:[#allocation31_spill] sm:$0xff] }
 0x83d   : > { %v9142_v43 = vadd.f32 1.0, %v6182_v15  ;;  %v4267_v11 = vpack.c.bf16 %v4239_v7, %v4235_v39  ;;  %v4270_v59 = vpack.c.bf16 %v4242_v50, %v4238_v29  ;;  %v4240_v36 = vmul.f32 %v9716_v4, %v8973_v6  ;;  %v6186_v30 = vpop.eup %6185  ;;  %v9719_v7 = vld [vmem:[#allocation20_spill] sm:$0xff] }
 0x83e   : > { %v4031_v46 = vsel %vm9134_vm7, %v8965_v56, %v4027_v53  ;;  %6195 = vpow2.f32 %v5319_v52  ;;  %v4237_v16 = vmul.f32 %v9717_v2, %v8911_v63  ;;  %v4241_v45 = vmul.f32 %v9718_v21, %v8982_v13 }
 0x83f   : > { %v6188_v41 = vpop.eup %6187  ;;  %v4072_v32 = vadd.f32 %v8991_v57, %v4071_v35  ;;  %v4041_v48 = vmul.f32 %v9032_v14, %v4040_v22  ;;  %v4047_v6 = vand.u32 2147483647, %v8956_v62  ;;  %4547 = vmatmul.bf16.vlgmr.msra.gmra.mxu1 %v4267_v11  ;;  %4634 = vmatmul.bf16.vlgmr.msra.gmra.mxu0 %v4270_v59  ;;  %v4268_v42 = vpack.c.bf16 %v4240_v36, %v4236_v9  ;;  %v9720_v9 = vld [vmem:[#allocation21_spill] sm:$0xff] }
 0x840   : > { %v9064_v49 = vpop.f32.mrf.mxu2  ;;  %v9156_v56 = vpop.eup %6189  ;;  %v4080_v53 = vor.u32 1.1754944e-38, %v4079_v51  ;;  %v4055_v52 = vsub.f32 1.0, %v4054_v24  ;;  %v9158_v63 = vadd.f32 1.0, %v6184_v3  ;;  %v4269_v39 = vpack.c.bf16 %v4241_v45, %v4237_v16 }
 0x841   : > { %v9071_v37 = vpop.f32.mrf.mxu3  ;;  %v6192_v13 = vpop.eup %6191  ;;  %vm4043_vm9 = vweird.f32 %v8956_v62  ;;  %v4049_v35 = vand.u32 2147483648, %v8956_v62  ;;  %6197 = vrcp.f32 %v9142_v43  ;;  %v9163_v22 = vadd.f32 1.0, %v6186_v30  ;;  %4576 = vmatmul.bf16.vlgmr.msra.gmra.mxu2 %v4268_v42  ;;  %v9725_v30 = vld [vmem:[#allocation23_spill] sm:$0xff] }
 0x842   : > { %v9126_v38 = vpop.f32.mrf.mxu1  ;;  %v6194_v29 = vpop.eup %6193  ;;  %v9166_v50 = vmul.f32 %v3991_v25, %v9719_v7  ;;  %v9169_v51 = vmul.f32 %v4006_v26, %v9720_v9  ;;  %v4036_v24 = vsel %vm9104_vm5, %v9036_v55, %v4031_v46  ;;  %v9182_v31 = vadd.f32 1.0, %v6188_v41  ;;  %4605 = vmatmul.bf16.vlgmr.msra.gmra.mxu3 %v4269_v39 }
 0x843   : > { %v9128_v44 = vpop.f32.mrf.mxu0  ;;  %v4076_v25 = vsel %vm9178_vm10, %v8991_v57, %v4072_v32  ;;  %v4042_v26 = vadd.f32 %v9032_v14, %v4041_v48  ;;  %vm4044_vm11 = vweird.f32 %v9032_v14  ;;  %vm9189_vm12 = vcmp.eq.f32.partialorder %v4047_v6, 8.507059e+37 }
 0x844   : > { %v4062_v18 = vand.u32 2147483647, %v9010_v27  ;;  %v6196_v34 = vpop.eup %6195  ;;  %v4056_v11 = vmul.f32 %v9098_v54, %v4055_v52  ;;  %v4084_v59 = vmul.f32 %v9156_v56, %v9079_v17  ;;  %6199 = vrcp.f32 %v9158_v63  ;;  %vm9221_vm14 = vmor %vm4043_vm9, %vm4044_vm11 }
 0x845   : > { %v9198_v4 = vadd.f32 1.0, %v6192_v13  ;;  %v4050_v57 = vor.u32 1.1754944e-38, %v4049_v35  ;;  %vm4058_vm13 = vweird.f32 %v9010_v27  ;;  %6201 = vrcp.f32 %v9163_v22  ;;  %v9730_v13 = vld [vmem:[#allocation33_spill] sm:$0xff] }
 0x846   : > { %v9202_v36 = vadd.f32 1.0, %v6194_v29  ;;  %v9205_v46 = vmul.f32 %v4036_v24, %v9725_v30  ;;  %v4081_v2 = vsel %vm9138_vm8, %v4080_v53, %v4076_v25  ;;  %v4064_v16 = vand.u32 2147483648, %v9010_v27  ;;  %v9732_v25 = vld [vmem:[#allocation24_spill] sm:$0xff] }
 0x847   : > { %6203 = vrcp.f32 %v9182_v31  ;;  %v9215_v41 = vpop.eup %6197  ;;  %vm4059_vm15 = vweird.f32 %v9098_v54  ;;  %vm9226_vm1 = vcmp.eq.f32.partialorder %v4062_v18, 8.507059e+37  ;;  %v9230_v48 = vadd.f32 1.0, %v6196_v34 }
 0x848   : > { %v3524_v5 = vpop.f32.mrf.mxu2  ;;  %v4247_v6 = vmul.f32 %v8938_v40, %v9126_v38  ;;  %v4250_v42 = vmul.f32 %v8943_v23, %v9128_v44  ;;  %v4046_v62 = vsel %vm9221_vm14, %v9032_v14, %v4042_v26  ;;  %v4057_v53 = vadd.f32 %v9098_v54, %v4056_v11  ;;  %v9731_v40 = vld [vmem:[#allocation34_spill] sm:$0xff]  ;;  %vm9271_vm0 = vmor %vm4058_vm13, %vm4059_vm15 }
 0x849   : > { %v3553_v15 = vpop.f32.mrf.mxu3  ;;  %v4085_v52 = vsub.f32 1.0, %v4084_v59  ;;  %6205 = vrcp.f32 %v9198_v4  ;;  %v4243_v35 = vmul.f32 %v9730_v13, %v9038_v60  ;;  %v4246_v38 = vmul.f32 %v9731_v40, %v9040_v20 }
 0x84a   : > { %v9211_v21 = vpop.f32.mrf.mxu1  ;;  %6207 = vrcp.f32 %v9202_v36  ;;  %v4248_v23 = vmul.f32 %v8946_v58, %v3524_v5  ;;  %v9251_v14 = vpop.eup %6199  ;;  %v4065_v29 = vor.u32 1.1754944e-38, %v4064_v16  ;;  %v4094_v7 = vand.u32 2147483648, %v9079_v17 }
 0x84b   : > { %v9213_v45 = vpop.f32.mrf.mxu0  ;;  %v4129_v9 = vmul.f32 %v9215_v41, %v9142_v43  ;;  %v4249_v24 = vmul.f32 %v8949_v61, %v3553_v15  ;;  %v9257_v3 = vpop.eup %6201  ;;  %6209 = vrcp.f32 %v9230_v48  ;;  %v4244_v20 = vmul.f32 %v8930_v33, %v9064_v49 }
 0x84c   : > { %v4271_v60 = vpack.c.bf16 %v4247_v6, %v4243_v35  ;;  %v4274_v58 = vpack.c.bf16 %v4250_v42, %v4246_v38  ;;  %v4226_v26 = vmul.f32 %v4081_v2, %v9732_v25  ;;  %v4051_v18 = vsel %vm9189_vm12, %v4050_v57, %v4046_v62 }
 0x84d   : > { %v9262_v5 = vpop.eup %6203  ;;  %v4139_v15 = vand.u32 2147483648, %v9142_v43  ;;  %v4245_v33 = vmul.f32 %v8933_v1, %v9071_v37  ;;  %v4061_v49 = vsel %vm9271_vm0, %v9098_v54, %v4057_v53  ;;  %v4086_v55 = vmul.f32 %v9156_v56, %v4085_v52  ;;  %v9735_v37 = vld [vmem:[#allocation25_spill] sm:$0xff] }
 0x84e   : > { %vm4088_vm2 = vweird.f32 %v9079_v17  ;;  %v4272_v34 = vpack.c.bf16 %v4248_v23, %v4244_v20  ;;  %v4130_v27 = vsub.f32 1.0, %v4129_v9  ;;  %v4099_v59 = vmul.f32 %v9251_v14, %v9158_v63  ;;  %v9736_v20 = vld [vmem:[#allocation26_spill] sm:$0xff] }
 0x84f   : > { %v9283_v11 = vpop.eup %6205  ;;  %v4144_v57 = vmul.f32 %v9257_v3, %v9163_v22  ;;  %v4273_v30 = vpack.c.bf16 %v4249_v24, %v4245_v33  ;;  %v4224_v2 = vmul.f32 %v4051_v18, %v9735_v37  ;;  %v4092_v54 = vand.u32 2147483647, %v9079_v17  ;;  %4552 = vmatmul.bf16.gmra.mxu1 %v4271_v60  ;;  %4639 = vmatmul.bf16.gmra.mxu0 %v4274_v58 }
 0x850   : > { %v9241_v39 = vpop.f32.mrf.mxu2  ;;  %v9289_v1 = vpop.eup %6207  ;;  %v9293_v16 = vor.u32 1.1754944e-38, %v4094_v7  ;;  %v4189_v32 = vmul.f32 %v9262_v5, %v9182_v31  ;;  %v4066_v6 = vsel %vm9226_vm1, %v4065_v29, %v4061_v49  ;;  %v4137_v42 = vand.u32 2147483647, %v9142_v43 }
 0x851   : > { %v9249_v44 = vpop.f32.mrf.mxu3  ;;  %v9300_v62 = vor.u32 1.1754944e-38, %v4139_v15  ;;  %v4107_v53 = vand.u32 2147483647, %v9158_v63  ;;  %v9303_v35 = vpop.eup %6209  ;;  %v9306_v40 = vadd.f32 %v9156_v56, %v4086_v55  ;;  %vm4089_vm3 = vweird.f32 %v9156_v56  ;;  %4581 = vmatmul.bf16.gmra.mxu2 %v4272_v34 }
 0x852   : > { %v3500_v52 = vpop.f32.mrf.mxu1  ;;  %v4109_v38 = vand.u32 2147483648, %v9158_v63  ;;  %v4159_v0 = vmul.f32 %v9283_v11, %v9198_v4  ;;  %v4131_v23 = vmul.f32 %v9215_v41, %v4130_v27  ;;  %vm4133_vm4 = vweird.f32 %v9142_v43  ;;  %4610 = vmatmul.bf16.gmra.mxu3 %v4273_v30  ;;  %vm9323_vm5 = vmor %vm4088_vm2, %vm4089_vm3 }
 0x853   : > { %v3587_v13 = vpop.f32.mrf.mxu0  ;;  %v4100_v29 = vsub.f32 1.0, %v4099_v59  ;;  %v4145_v7 = vsub.f32 1.0, %v4144_v57  ;;  %v4174_v9 = vmul.f32 %v9289_v1, %v9202_v36  ;;  %v4225_v60 = vmul.f32 %v4066_v6, %v9736_v20 }
 0x854   : > { %v4154_v25 = vand.u32 2147483648, %v9163_v22  ;;  %v4190_v18 = vsub.f32 1.0, %v4189_v32  ;;  %vm4134_vm6 = vweird.f32 %v9215_v41  ;;  %v4114_v33 = vmul.f32 %v9303_v35, %v9230_v48 }
 0x855   : > { %v4124_v49 = vand.u32 2147483648, %v9230_v48  ;;  %vm4148_vm7 = vweird.f32 %v9163_v22  ;;  %v4091_v55 = vsel %vm9323_vm5, %v9156_v56, %v9306_v40  ;;  %v4152_v17 = vand.u32 2147483647, %v9163_v22  ;;  %vm9378_vm0 = vmor %vm4133_vm4, %vm4134_vm6 }
 0x856   : > { %vm4193_vm8 = vweird.f32 %v9182_v31  ;;  %v4160_v34 = vsub.f32 1.0, %v4159_v0  ;;  %v9339_v27 = vadd.f32 %v9215_v41, %v4131_v23  ;;  %v4101_v59 = vmul.f32 %v9251_v14, %v4100_v29 }
 0x857   : > { %v4146_v57 = vmul.f32 %v9257_v3, %v4145_v7  ;;  %v4175_v30 = vsub.f32 1.0, %v4174_v9  ;;  %vm4104_vm9 = vweird.f32 %v9251_v14  ;;  %v9344_v37 = vor.u32 1.1754944e-38, %v4154_v25 }
 0x858   : > { %v3529_v24 = vpop.f32.mrf.mxu2  ;;  %v4191_v32 = vmul.f32 %v9262_v5, %v4190_v18  ;;  %v4255_v6 = vmul.f32 %v9205_v46, %v3500_v52  ;;  %v4258_v20 = vmul.f32 %v4226_v26, %v3587_v13  ;;  %vm9348_vm10 = vcmp.eq.f32.partialorder %v4092_v54, 8.507059e+37  ;;  %v9760_v52 = vld [vmem:[#allocation27_spill] sm:$0xff] }
 0x859   : > { %v3558_v61 = vpop.f32.mrf.mxu3  ;;  %v4115_v0 = vsub.f32 1.0, %v4114_v33  ;;  %vm4119_vm11 = vweird.f32 %v9303_v35  ;;  %vm4149_vm12 = vweird.f32 %v9257_v3  ;;  %v4197_v23 = vand.u32 2147483647, %v9182_v31 }
 0x85a   : > { %v4199_v29 = vand.u32 2147483648, %v9182_v31  ;;  %vm4103_vm13 = vweird.f32 %v9158_v63  ;;  %v4161_v7 = vmul.f32 %v9283_v11, %v4160_v34  ;;  %v4251_v46 = vmul.f32 %v9074_v47, %v9211_v21  ;;  %v9370_v18 = vpop.f32.mrf.mxu1  ;;  %vm9405_vm3 = vmor %vm4148_vm7, %vm4149_vm12  ;;  %v9761_v63 = vld [vmem:[#allocation28_spill] sm:$0xff] }
 0x85b   : > { %v4254_v26 = vmul.f32 %v9082_v8, %v9213_v45  ;;  %v4256_v54 = vmul.f32 %v4224_v2, %v3529_v24  ;;  %vm9362_vm14 = vcmp.eq.f32.partialorder %v4137_v42, 8.507059e+37  ;;  %vm4118_vm15 = vweird.f32 %v9230_v48  ;;  %v9372_v47 = vpop.f32.mrf.mxu0  ;;  %vm9467_vm5 = vmor %vm4103_vm13, %vm4104_vm9 }
 0x85c   : > { %v4147_v13 = vadd.f32 %v9257_v3, %v4146_v57  ;;  %vm4194_vm1 = vweird.f32 %v9262_v5  ;;  %v4176_v9 = vmul.f32 %v9289_v1, %v4175_v30  ;;  %v4257_v25 = vmul.f32 %v4225_v60, %v3558_v61  ;;  %vm9485_vm9 = vmor %vm4118_vm15, %vm4119_vm11 }
 0x85d   : > { %v4192_v21 = vadd.f32 %v9262_v5, %v4191_v32  ;;  %v4252_v45 = vmul.f32 %v9166_v50, %v9241_v39  ;;  %v4275_v2 = vpack.c.bf16 %v4255_v6, %v4251_v46  ;;  %v4278_v42 = vpack.c.bf16 %v4258_v20, %v4254_v26 }
 0x85e   : > { %v4136_v24 = vsel %vm9378_vm0, %v9215_v41, %v9339_v27  ;;  %v4102_v60 = vadd.f32 %v9251_v14, %v4101_v59  ;;  %v4116_v43 = vmul.f32 %v9303_v35, %v4115_v0  ;;  %v4253_v61 = vmul.f32 %v9169_v51, %v9249_v44  ;;  %vm9418_vm0 = vmor %vm4193_vm8, %vm4194_vm1 }
 0x85f   : > { %vm9397_vm2 = vcmp.eq.f32.partialorder %v4107_v53, 8.507059e+37  ;;  %v4162_v39 = vadd.f32 %v9283_v11, %v4161_v7  ;;  %vm4163_vm4 = vweird.f32 %v9198_v4  ;;  %vm4164_vm6 = vweird.f32 %v9283_v11  ;;  %4557 = vmatmul.bf16.gmra.mxu1 %v4275_v2  ;;  %4644 = vmatmul.bf16.gmra.mxu0 %v4278_v42  ;;  %v9759_v7 = vld [vmem:[#allocation32_spill] sm:$0xff]  ;;  %v9763_v42 = vld [vmem:[#allocation30_spill] sm:$0xff] }
 0x860   : > { %v9393_v33 = vpop.f32.mrf.mxu2  ;;  %v4276_v51 = vpack.c.bf16 %v4256_v54, %v4252_v45  ;;  %v4169_v34 = vand.u32 2147483648, %v9198_v4  ;;  %v4177_v27 = vadd.f32 %v9289_v1, %v4176_v9  ;;  %vm4179_vm7 = vweird.f32 %v9289_v1  ;;  %vm9438_vm8 = vmor %vm4163_vm4, %vm4164_vm6 }
 0x861   : > { %v9412_v44 = vpop.f32.mrf.mxu3  ;;  %v4277_v59 = vpack.c.bf16 %v4257_v25, %v4253_v61  ;;  %v4151_v57 = vsel %vm9405_vm3, %v9257_v3, %v4147_v13  ;;  %v4196_v30 = vsel %vm9418_vm0, %v9262_v5, %v4192_v21  ;;  %v4167_v31 = vand.u32 2147483647, %v9198_v4 }
 0x862   : > { %v4184_v32 = vand.u32 2147483648, %v9202_v36  ;;  %v4117_v6 = vadd.f32 %v9303_v35, %v4116_v43  ;;  %v4200_v20 = vor.u32 1.1754944e-38, %v4199_v29  ;;  %vm4178_vm12 = vweird.f32 %v9202_v36  ;;  %4586 = vmatmul.bf16.gmra.mxu2 %v4276_v51 }
 0x863   : > { %v4182_v3 = vand.u32 2147483647, %v9202_v36  ;;  %v4096_v5 = vsel %vm9348_vm10, %v9293_v16, %v4091_v55  ;;  %vm4153_vm1 = vcmp.eq.f32.partialorder %v4152_v17, 8.507059e+37  ;;  %vm4198_vm3 = vcmp.eq.f32.partialorder %v4197_v23, 8.507059e+37  ;;  %vm9459_vm4 = vmor %vm4178_vm12, %vm4179_vm7  ;;  %4615 = vmatmul.bf16.gmra.mxu3 %v4277_v59  ;;  %v3592_v23 = vpop.f32.mrf.mxu0  ;;  %v9765_v36 = vld [vmem:[#allocation13_spill] sm:$0xff] }
 0x864   : > { %v4166_v4 = vsel %vm9438_vm8, %v9283_v11, %v4162_v39  ;;  %v4156_v22 = vsel %vm4153_vm1, %v9344_v37, %v4151_v57  ;;  %v4201_v16 = vsel %vm4198_vm3, %v4200_v20, %v4196_v30  ;;  %v4170_v40 = vor.u32 1.1754944e-38, %v4169_v34 }
 0x865   : > { %v4181_v11 = vsel %vm9459_vm4, %v9289_v1, %v4177_v27  ;;  %v4141_v58 = vsel %vm9362_vm14, %v9300_v62, %v4136_v24  ;;  %v4106_v15 = vsel %vm9467_vm5, %v9251_v14, %v4102_v60  ;;  %vm4168_vm10 = vcmp.eq.f32.partialorder %v4167_v31, 8.507059e+37  ;;  %v3505_v14 = vpop.f32.mrf.mxu1 }
 0x866   : > { %v4185_v17 = vor.u32 1.1754944e-38, %v4184_v32  ;;  %v4110_v1 = vor.u32 1.1754944e-38, %v4109_v38  ;;  %v4121_v62 = vsel %vm9485_vm9, %v9303_v35, %v4117_v6  ;;  %v4171_v37 = vsel %vm4168_vm10, %v4170_v40, %v4166_v4 }
 0x867   : > { %vm4183_vm13 = vcmp.eq.f32.partialorder %v4182_v3, 8.507059e+37  ;;  %v4125_v29 = vor.u32 1.1754944e-38, %v4124_v49  ;;  %v4231_v46 = vmul.f32 %v4156_v22, %v9759_v7  ;;  %v4234_v26 = vmul.f32 %v4201_v16, %v8745_v28 }
 0x868   : > { %v4186_v54 = vsel %vm4183_vm13, %v4185_v17, %v4181_v11  ;;  %v4227_v13 = vmul.f32 %v4096_v5, %v9760_v52  ;;  %v4230_v38 = vmul.f32 %v4141_v58, %v9761_v63  ;;  %v4111_v9 = vsel %vm9397_vm2, %v4110_v1, %v4106_v15  ;;  %v3534_v25 = vpop.f32.mrf.mxu2  ;;  %v9766_v17 = vld [vmem:[#allocation14_spill] sm:$0xff] }
 0x869   : > { %v9762_v35 = vand.u32 2147483647, %v9230_v48  ;;  %v4232_v21 = vmul.f32 %v4171_v37, %v8763_v10  ;;  %v4263_v49 = vmul.f32 %v4231_v46, %v3505_v14  ;;  %v4266_v45 = vmul.f32 %v4234_v26, %v3592_v23  ;;  %v3563_v2 = vpop.f32.mrf.mxu3  ;;  %v9767_v26 = vld [vmem:[#allocation15_spill] sm:$0xff] }
 0x86a   : > { %v4233_v28 = vmul.f32 %v4186_v54, %v8769_v12  ;;  %v4228_v24 = vmul.f32 %v4111_v9, %v9763_v42  ;;  %v4259_v60 = vmul.f32 %v4227_v13, %v9370_v18  ;;  %v4262_v43 = vmul.f32 %v4230_v38, %v9372_v47 }
 0x86b   : > { %vm4123_vm11 = vcmp.eq.f32.partialorder %v9762_v35, 8.507059e+37  ;;  %v4264_v61 = vmul.f32 %v4232_v21, %v3534_v25 }
 0x86c   : > { %v4126_v8 = vsel %vm4123_vm11, %v4125_v29, %v4121_v62  ;;  %v4265_v48 = vmul.f32 %v4233_v28, %v3563_v2  ;;  %v4260_v41 = vmul.f32 %v4228_v24, %v9393_v33  ;;  %v4279_v39 = vpack.c.bf16 %v4263_v49, %v4259_v60  ;;  %v9764_v33 = vld [vmem:[#allocation12_spill] sm:$0xff]  ;;  %v9769_v60 = vld [vmem:[#allocation17_spill] sm:$0xff] }
 0x86d   : > { %v4229_v50 = vmul.f32 %v4126_v8, %v8690_v19  ;;  %v4282_v51 = vpack.c.bf16 %v4266_v45, %v4262_v43  ;;  %v9768_v8 = vld [vmem:[#allocation16_spill] sm:$0xff] }
 0x86e   : > { %v4280_v53 = vpack.c.bf16 %v4264_v61, %v4260_v41 }
 0x86f   : > { %v4261_v10 = vmul.f32 %v4229_v50, %v9412_v44  ;;  %4562 = vmatmul.bf16.gmra.mxu1 %v4279_v39  ;;  %4649 = vmatmul.bf16.gmra.mxu0 %v4282_v51 }
 0x871   : > { %v4281_v34 = vpack.c.bf16 %v4265_v48, %v4261_v10  ;;  %v9770_v10 = vld [vmem:[#allocation18_spill] sm:$0xff] }
 0x872   : > { %4591 = vmatmul.bf16.gmra.mxu2 %v4280_v53 }
 0x873   : > { %4620 = vmatmul.bf16.gmra.mxu3 %v4281_v34 }
 0x8bc   : > { %v4548_v12 = vpop.f32.mrf.mxu1  ;;  %v4635_v18 = vpop.f32.mrf.mxu0 }
 0x8c4   : > { %v4550_v27 = vpop.f32.mrf.mxu1  ;;  %v4637_v47 = vpop.f32.mrf.mxu0 }
 0x8c5   : > { %v4577_v59 = vpop.f32.mrf.mxu2  ;;  %v4606_v57 = vpop.f32.mrf.mxu3 }
 0x8c6   : > { %v4578_v19 = vadd.f32 %v4577_v59, %v4548_v12 }
 0x8c8   : > { %v4607_v30 = vadd.f32 %v4606_v57, %v4578_v19  ;;  %v9771_v19 = vld [vmem:[#allocation19_spill] sm:$0xff] }
 0x8ca   : > { %v4636_v31 = vadd.f32 %v4635_v18, %v4607_v30 }
 0x8cc   : > { %v4655_v32 = vadd.f32 %v4636_v31, %v9764_v33  ;;  %v4553_v6 = vpop.f32.mrf.mxu1  ;;  %v4640_v0 = vpop.f32.mrf.mxu0 }
 0x8cd   : > { %v4579_v20 = vpop.f32.mrf.mxu2  ;;  %v4608_v44 = vpop.f32.mrf.mxu3 }
 0x8ce   : > { %4663 = vst [vmem:[#allocation2 + $0x30] sm:$0xff] %v4655_v32  ;;  %v4580_v3 = vadd.f32 %v4579_v20, %v4550_v27 }
 0x8cf   : > { %4671 = vst [vmem:[%s9567_s10] sm:$0xff] %v4655_v32 }
 0x8d0   : > { %v4609_v5 = vadd.f32 %v4608_v44, %v4580_v3 }
 0x8d2   : > { %v4638_v4 = vadd.f32 %v4637_v47, %v4609_v5 }
 0x8d4   : > { %v4656_v56 = vadd.f32 %v4638_v4, %v9765_v36  ;;  %v4555_v22 = vpop.f32.mrf.mxu1  ;;  %v4642_v58 = vpop.f32.mrf.mxu0 }
 0x8d5   : > { %v4582_v16 = vpop.f32.mrf.mxu2  ;;  %v4611_v40 = vpop.f32.mrf.mxu3 }
 0x8d6   : > { %4664 = vst [vmem:[#allocation2] sm:$0xff] %v4656_v56  ;;  %v4583_v11 = vadd.f32 %v4582_v16, %v4553_v6 }
 0x8d7   : > { %4672 = vst [vmem:[%s9567_s10 + $0x8] sm:$0xff] %v4656_v56 }
 0x8d8   : > { %v4612_v15 = vadd.f32 %v4611_v40, %v4583_v11 }
 0x8da   : > { %v4641_v55 = vadd.f32 %v4640_v0, %v4612_v15 }
 0x8dc   : > { %v4657_v1 = vadd.f32 %v4641_v55, %v9766_v17  ;;  %v4558_v23 = vpop.f32.mrf.mxu1  ;;  %v4645_v7 = vpop.f32.mrf.mxu0 }
 0x8dd   : > { %v4584_v62 = vpop.f32.mrf.mxu2  ;;  %v4613_v37 = vpop.f32.mrf.mxu3 }
 0x8de   : > { %4665 = vst [vmem:[#allocation2 + $0x18] sm:$0xff] %v4657_v1  ;;  %v4585_v14 = vadd.f32 %v4584_v62, %v4555_v22 }
 0x8df   : > { %4673 = vst [vmem:[%s9567_s10 + $0x10] sm:$0xff] %v4657_v1 }
 0x8e0   : > { %v4614_v29 = vadd.f32 %v4613_v37, %v4585_v14 }
 0x8e2   : > { %v4643_v46 = vadd.f32 %v4642_v58, %v4614_v29 }
 0x8e4   : > { %v4658_v54 = vadd.f32 %v4643_v46, %v9767_v26  ;;  %v4560_v9 = vpop.f32.mrf.mxu1  ;;  %v4647_v25 = vpop.f32.mrf.mxu0 }
 0x8e5   : > { %v4587_v52 = vpop.f32.mrf.mxu2 }
 0x8e6   : > { %v4616_v13 = vpop.f32.mrf.mxu3  ;;  %4666 = vst [vmem:[#allocation2 + $0x10] sm:$0xff] %v4658_v54  ;;  %v4588_v63 = vadd.f32 %v4587_v52, %v4558_v23 }
 0x8e7   : > { %4674 = vst [vmem:[%s9567_s10 + $0x18] sm:$0xff] %v4658_v54 }
 0x8e8   : > { %v4617_v38 = vadd.f32 %v4616_v13, %v4588_v63 }
 0x8ea   : > { %v4646_v35 = vadd.f32 %v4645_v7, %v4617_v38 }
 0x8ec   : > { %v4659_v21 = vadd.f32 %v4646_v35, %v9768_v8  ;;  %v4563_v24 = vpop.f32.mrf.mxu1  ;;  %v4650_v41 = vpop.f32.mrf.mxu0 }
 0x8ed   : > { %v4589_v49 = vpop.f32.mrf.mxu2 }
 0x8ee   : > { %v4618_v45 = vpop.f32.mrf.mxu3  ;;  %4667 = vst [vmem:[#allocation2 + $0x8] sm:$0xff] %v4659_v21  ;;  %v4590_v2 = vadd.f32 %v4589_v49, %v4560_v9 }
 0x8ef   : > { %4675 = vst [vmem:[%s9567_s10 + $0x20] sm:$0xff] %v4659_v21 }
 0x8f0   : > { %v4619_v28 = vadd.f32 %v4618_v45, %v4590_v2 }
 0x8f2   : > { %v4648_v42 = vadd.f32 %v4647_v25, %v4619_v28 }
 0x8f4   : > { %v4660_v43 = vadd.f32 %v4648_v42, %v9769_v60  ;;  %v4565_v34 = vpop.f32.mrf.mxu1  ;;  %v4652_v59 = vpop.f32.mrf.mxu0 }
 0x8f5   : > { %v4592_v61 = vpop.f32.mrf.mxu2 }
 0x8f6   : > { %v4621_v50 = vpop.f32.mrf.mxu3  ;;  %4668 = vst [vmem:[#allocation2 + $0x20] sm:$0xff] %v4660_v43  ;;  %v4593_v48 = vadd.f32 %v4592_v61, %v4563_v24 }
 0x8f7   : > { %4676 = vst [vmem:[%s9567_s10 + $0x28] sm:$0xff] %v4660_v43 }
 0x8f8   : > { %v4622_v39 = vadd.f32 %v4621_v50, %v4593_v48 }
 0x8fa   : > { %v4651_v51 = vadd.f32 %v4650_v41, %v4622_v39 }
 0x8fc   : > { %v4661_v53 = vadd.f32 %v4651_v51, %v9770_v10 }
 0x8fd   : > { %v4594_v12 = vpop.f32.mrf.mxu2 }
 0x8fe   : > { %4669 = vst [vmem:[#allocation2 + $0x28] sm:$0xff] %v4661_v53  ;;  %v4595_v18 = vadd.f32 %v4594_v12, %v4565_v34  ;;  %v4623_v27 = vpop.f32.mrf.mxu3 }
 0x8ff   : > { %4677 = vst [vmem:[%s9567_s10 + $0x30] sm:$0xff] %v4661_v53 }
 0x900   : > { %v4624_v47 = vadd.f32 %v4623_v27, %v4595_v18 }
 0x902   : > { %v4653_v57 = vadd.f32 %v4652_v59, %v4624_v47 }
 0x904   : > { %v4662_v30 = vadd.f32 %v4653_v57, %v9771_v19 }
 0x906   : > { %4670 = vst [vmem:[#allocation2 + $0x38] sm:$0xff] %v4662_v30 }
 0x907   : > { %4678 = vst [vmem:[%s9567_s10 + $0x38] sm:$0xff] %v4662_v30 }
 0x908 PF: > { %s9772_s16 = sld [smem:[#allocation10_spill]]  ;;  %s9775_s13 = smov %s6309_s14 }
 0x909   : > { %s9773_s18 = sld [smem:[#allocation9_spill]] }
 0x90a   : > { %s9774_s15 = sld [smem:[#allocation11_spill]] }
 0x90e   : > { %p23_p11 = scmp.ge.s32.totalorder %s9772_s16, 4  }
 0x90f   : > { %s9776_s14 = smov %s9773_s18 }
 0x910   :  { %25 = sbr.rel (!%p23_p11) target bundleno = 7 (0x7), region = 125 }
 0x915   :  { %4690 = vsyncpa [#allocation4], 1 }
 0x916   :  { %4692 = vsyncpa [#allocation4 + $0x1], 1 }
 0x917   :  { %4693 = vsyncpa [#allocation6], 1 }
 0x918   :  { %4695 = vsyncpa [#allocation6 + $0x1], 1 }

</bundles_post_ra>
